<compile_context>
chip_gen: v6e
topology: v6e:2x2x1
jax: 0.10.0
libtpu: 0.0.40
codegen_flags: <defaults>
</compile_context>

<pallas_src>
import jax
import jax.numpy as jnp
from jax.experimental import pallas as pl
from jax.experimental.pallas import tpu as pltpu

DEGREE = 3        # Chebyshev degree of the KACN projections
BN_EPS = 1e-5     # PyTorch BatchNorm default eps


# --------------------------------------------------------------------------
# Fused Pallas kernel
# --------------------------------------------------------------------------

def _fused_self_kantention_kernel(
    x_ref,        # (B, C, P)       f32  input, channels-first, pixels in lanes
    w_in_ref,     # (d, C)          inner 1x1 conv weight (pre-transposed)
    w_qkv_ref,    # (DEGREE, 3d, d) stacked q|k|v KACN weights, one slab per degree
    w_out_ref,    # (C, d)          outer 1x1 conv weight (pre-transposed)
    pvec_ref,     # (3d, 8)         packed column-vector params (biases / BN affines)
    gamma_ref,    # (1,)            SMEM scalar (residual gate)
    o_ref,        # (B, C, P)       f32 output
    qkv_scr,      # (3d, B*P)       f32 VMEM scratch: pre-BN stacked q|k|v
):
    B, C, P = x_ref.shape
    d = w_in_ref.shape[0]
    ndeg = w_qkv_ref.shape[0]
    d3 = 3 * d
    npix = B * P
    inv_n = 1.0 / npix

    # ---- unpack the packed parameter block (tiny, single-vreg slices) ------
    w_in = w_in_ref[...]                     # (d, C)
    w_out = w_out_ref[...]                   # (C, d)
    b_in = pvec_ref[0:d, 0:1]                # (d, 1)
    b_qkv = pvec_ref[:, 1:2]                 # (3d, 1)
    bnq_w = pvec_ref[:, 2:3]                 # (3d, 1)
    bnq_b = pvec_ref[:, 3:4]                 # (3d, 1)
    b_out = pvec_ref[0:C, 4:5]               # (C, 1)
    bn_w = pvec_ref[0:C, 5:6]                # (C, 1)
    bn_b = pvec_ref[0:C, 6:7]                # (C, 1)
    gamma = gamma_ref[0]

    # ------------------------------------------------------------------
    # Pass 1: inner projection + Chebyshev basis + stacked q/k/v matmuls.
    # Written per batch into the VMEM scratch (no concatenates); BatchNorm
    # statistics accumulated in the same sweep (single-pass BN).
    # ------------------------------------------------------------------
    s1 = jnp.zeros((d3, 1), jnp.float32)
    s2 = jnp.zeros((d3, 1), jnp.float32)
    for b in range(B):                                           # static unroll
        x_b = x_ref[b]                                           # (C, P)
        att = jnp.dot(w_in, x_b, preferred_element_type=jnp.float32) + b_in
        th = jnp.tanh(att)                                       # T1(tanh x)
        t_prev = jnp.ones_like(th)                               # T0
        t_cur = th
        qkv_b = jnp.dot(w_qkv_ref[0], t_cur,
                        preferred_element_type=jnp.float32)      # degree-1 term
        for n in range(1, ndeg):                                 # Chebyshev recurrence
            t_prev, t_cur = t_cur, 2.0 * th * t_cur - t_prev
            qkv_b = qkv_b + jnp.dot(w_qkv_ref[n], t_cur,
                                    preferred_element_type=jnp.float32)
        qkv_b = qkv_b + b_qkv                                    # (3d, P); T0 folded in
        qkv_scr[:, b * P:(b + 1) * P] = qkv_b                    # stage pre-BN q|k|v
        s1 = s1 + jnp.sum(qkv_b, axis=-1, keepdims=True)
        s2 = s2 + jnp.sum(qkv_b * qkv_b, axis=-1, keepdims=True)

    mu = s1 * inv_n
    var = s2 * inv_n - mu * mu
    scale = bnq_w * jax.lax.rsqrt(var + BN_EPS)                  # fused BN: y*scale+shift
    shift = bnq_b - mu * scale

    # ------------------------------------------------------------------
    # Pass 2: BN apply, per-batch attention with deferred softmax
    # normalisation, outer projection, residual.  Pre-BN y is staged in
    # o_ref; final-BN statistics are accumulated in the same sweep.
    # ------------------------------------------------------------------
    ones_1p = jnp.ones((1, P), jnp.float32)
    ys1 = jnp.zeros((C, 1), jnp.float32)
    ys2 = jnp.zeros((C, 1), jnp.float32)
    for b in range(B):
        qkv_b = qkv_scr[:, b * P:(b + 1) * P] * scale + shift    # (3d, P)
        q = qkv_b[0 * d:1 * d, :]                                # (d, P) tile-aligned
        k = qkv_b[1 * d:2 * d, :]
        v = qkv_b[2 * d:3 * d, :]

        # energy[i, j] = sum_c q[c, i] * k[c, j]
        energy = jax.lax.dot_general(q, k, (((0,), (0,)), ((), ())),
                                     preferred_element_type=jnp.float32)   # (P, P)
        m = jnp.max(energy, axis=-1, keepdims=True)              # (P, 1)
        p = jnp.exp(energy - m)                                  # unnormalised probs
        # Row sums produced already lane-oriented (1, P) via a matmul: no
        # (P,1)->(1,P) relayout and no O(P^2) normalisation pass.
        l_t = jax.lax.dot_general(ones_1p, p, (((1,), (1,)), ((), ())),
                                  preferred_element_type=jnp.float32)      # (1, P)
        # pv[c, i] = sum_j v[c, j] * p[i, j]
        pv = jax.lax.dot_general(v, p, (((1,), (1,)), ((), ())),
                                 preferred_element_type=jnp.float32)       # (d, P)
        att_o = pv * (1.0 / l_t)                                 # deferred softmax norm

        proj = jnp.dot(w_out, att_o,
                       preferred_element_type=jnp.float32) + b_out          # (C, P)
        y_b = gamma * x_ref[b] + proj                            # matches torch: g*x + att
        o_ref[b] = y_b                                           # stage pre-BN output
        ys1 = ys1 + jnp.sum(y_b, axis=-1, keepdims=True)
        ys2 = ys2 + jnp.sum(y_b * y_b, axis=-1, keepdims=True)

    mu2 = ys1 * inv_n
    var2 = ys2 * inv_n - mu2 * mu2
    scale2 = bn_w * jax.lax.rsqrt(var2 + BN_EPS)
    shift2 = bn_b - mu2 * scale2

    # ---- Pass 3: apply the final fused BatchNorm in place on the output ----
    for b in range(B):
        o_ref[b] = o_ref[b] * scale2 + shift2


# --------------------------------------------------------------------------
# Wrapper
# --------------------------------------------------------------------------

def init_params(key, input_dim, inner_projection):
    C, d = input_dim, inner_projection
    ks = jax.random.split(key, 5)
    return {
        # inner / outer 1x1 projections (Conv2d with bias), stored (in, out)
        "w_in": 0.2 * jax.random.normal(ks[0], (C, d), jnp.float32),
        "b_in": 0.05 * jax.random.normal(ks[1], (d,), jnp.float32),
        "w_out": 0.2 * jax.random.normal(ks[2], (d, C), jnp.float32),
        "b_out": 0.05 * jax.random.normal(ks[3], (C,), jnp.float32),
        # KACN poly-conv weights for q/k/v: (degree+1, d_in, d_out)
        "w_q": 0.2 * jax.random.normal(jax.random.fold_in(ks[4], 0),
                                       (DEGREE + 1, d, d), jnp.float32),
        "w_k": 0.2 * jax.random.normal(jax.random.fold_in(ks[4], 1),
                                       (DEGREE + 1, d, d), jnp.float32),
        "w_v": 0.2 * jax.random.normal(jax.random.fold_in(ks[4], 2),
                                       (DEGREE + 1, d, d), jnp.float32),
        # BatchNorm affine params (PyTorch default init: weight=1, bias=0)
        "bn_q_w": jnp.ones((d,), jnp.float32), "bn_q_b": jnp.zeros((d,), jnp.float32),
        "bn_k_w": jnp.ones((d,), jnp.float32), "bn_k_b": jnp.zeros((d,), jnp.float32),
        "bn_v_w": jnp.ones((d,), jnp.float32), "bn_v_b": jnp.zeros((d,), jnp.float32),
        "bn_w": jnp.ones((C,), jnp.float32), "bn_b": jnp.zeros((C,), jnp.float32),
        # gamma = nn.Parameter(torch.zeros(1))
        "gamma": jnp.zeros((1,), jnp.float32),
    }


def self_kantention_forward(x_nchw, params):
    B, C, H, W = x_nchw.shape
    P = H * W
    d = params["w_in"].shape[1]
    d3 = 3 * d
    assert P % 128 == 0, "TODO(synk): pad P to a multiple of 128 and mask BN/softmax"

    # Free (contiguous) reshape, no NCHW<->NHWC transpose round trips.
    x3 = x_nchw.reshape(B, C, P).astype(jnp.float32)

    # ---- tiny parameter prep: transpose, stack q/k/v per degree, fold T0 ----
    w_in_t = params["w_in"].T                                    # (d, C)
    w_out_t = params["w_out"].T                                  # (C, d)

    def per_degree(n):  # stacked (q|k|v) weight slab for Chebyshev degree n
        return jnp.concatenate(
            [params["w_q"][n].T, params["w_k"][n].T, params["w_v"][n].T], axis=0)
    w_qkv_stack = jnp.stack([per_degree(n) for n in range(1, DEGREE + 1)], axis=0)

    # T0 == 1 contribution folded into a bias
    b_qkv = jnp.concatenate([jnp.sum(params["w_q"][0], axis=0),
                             jnp.sum(params["w_k"][0], axis=0),
                             jnp.sum(params["w_v"][0], axis=0)])            # (3d,)
    bn_qkv_w = jnp.concatenate([params["bn_q_w"], params["bn_k_w"], params["bn_v_w"]])
    bn_qkv_b = jnp.concatenate([params["bn_q_b"], params["bn_k_b"], params["bn_v_b"]])

    # Pack all column-vector params into one (3d, 8) VMEM block.
    pvec = jnp.zeros((d3, 8), jnp.float32)
    pvec = pvec.at[0:d, 0].set(params["b_in"])
    pvec = pvec.at[:, 1].set(b_qkv)
    pvec = pvec.at[:, 2].set(bn_qkv_w)
    pvec = pvec.at[:, 3].set(bn_qkv_b)
    pvec = pvec.at[0:C, 4].set(params["b_out"])
    pvec = pvec.at[0:C, 5].set(params["bn_w"])
    pvec = pvec.at[0:C, 6].set(params["bn_b"])

    gamma = params["gamma"].reshape(1)

    vmem = pl.BlockSpec(memory_space=pltpu.MemorySpace.VMEM)
    smem = pl.BlockSpec(memory_space=pltpu.MemorySpace.SMEM)

    y3 = pl.pallas_call(
        _fused_self_kantention_kernel,
        out_shape=jax.ShapeDtypeStruct((B, C, P), jnp.float32),
        in_specs=[vmem, vmem, vmem, vmem, vmem, smem],
        out_specs=vmem,
        scratch_shapes=[pltpu.VMEM((d3, B * P), jnp.float32)],
        compiler_params=pltpu.CompilerParams(
            vmem_limit_bytes=56 * 1024 * 1024),
    )(x3, w_in_t, w_qkv_stack, w_out_t, pvec, gamma)

    return y3.reshape(B, C, H, W)      # free reshape back to NCHW


if __name__ == "__main__":
    key = jax.random.PRNGKey(0)
    kx, kp = jax.random.split(key)

    B, C, H, W = 2, 4, 16, 16        # input_dim = 4
    inner_projection = 8             # projected attention dim

    x = jax.random.normal(kx, (B, C, H, W), jnp.float32)
    params = init_params(kp, C, inner_projection)

    out = jax.jit(self_kantention_forward)(x, params)
    out = jax.block_until_ready(out)

    assert out.shape == (B, C, H, W), out.shape
    assert bool(jnp.all(jnp.isfinite(out)))
    print("KERNEL_OK")
</pallas_src>

<mosaic_0001>
module attributes {stable_mosaic.version = 11 : i64} {
  func.func @_fused_self_kantention_kernel(%arg0: memref<2x4x256xf32, #tpu.memory_space<vmem>>, %arg1: memref<8x4xf32, #tpu.memory_space<vmem>>, %arg2: memref<3x24x8xf32, #tpu.memory_space<vmem>>, %arg3: memref<4x8xf32, #tpu.memory_space<vmem>>, %arg4: memref<24x8xf32, #tpu.memory_space<vmem>>, %arg5: memref<1xf32, #tpu.memory_space<smem>>, %arg6: memref<2x4x256xf32, #tpu.memory_space<vmem>>, %arg7: memref<24x512xf32, #tpu.memory_space<vmem>>) attributes {dimension_semantics = [], scalar_prefetch = 0 : i64, scratch_operands = 1 : i64, tpu.core_type = #tpu.core_type<tc>} {
    %c0 = arith.constant 0 : index
    %c0_0 = arith.constant 0 : index
    %0 = vector.load %arg1[%c0, %c0_0] : memref<8x4xf32, #tpu.memory_space<vmem>>, vector<8x4xf32>
    %c0_1 = arith.constant 0 : index
    %c0_2 = arith.constant 0 : index
    %1 = vector.load %arg3[%c0_1, %c0_2] : memref<4x8xf32, #tpu.memory_space<vmem>>, vector<4x8xf32>
    %c0_3 = arith.constant 0 : index
    %c0_4 = arith.constant 0 : index
    %2 = vector.load %arg4[%c0_3, %c0_4] : memref<24x8xf32, #tpu.memory_space<vmem>>, vector<8x1xf32>
    %c0_5 = arith.constant 0 : index
    %c1 = arith.constant 1 : index
    %3 = vector.load %arg4[%c0_5, %c1] : memref<24x8xf32, #tpu.memory_space<vmem>>, vector<24x1xf32>
    %c0_6 = arith.constant 0 : index
    %c2 = arith.constant 2 : index
    %4 = vector.load %arg4[%c0_6, %c2] : memref<24x8xf32, #tpu.memory_space<vmem>>, vector<24x1xf32>
    %c0_7 = arith.constant 0 : index
    %c3 = arith.constant 3 : index
    %5 = vector.load %arg4[%c0_7, %c3] : memref<24x8xf32, #tpu.memory_space<vmem>>, vector<24x1xf32>
    %c0_8 = arith.constant 0 : index
    %c4 = arith.constant 4 : index
    %6 = vector.load %arg4[%c0_8, %c4] : memref<24x8xf32, #tpu.memory_space<vmem>>, vector<4x1xf32>
    %c0_9 = arith.constant 0 : index
    %c5 = arith.constant 5 : index
    %7 = vector.load %arg4[%c0_9, %c5] : memref<24x8xf32, #tpu.memory_space<vmem>>, vector<4x1xf32>
    %c0_10 = arith.constant 0 : index
    %c6 = arith.constant 6 : index
    %8 = vector.load %arg4[%c0_10, %c6] : memref<24x8xf32, #tpu.memory_space<vmem>>, vector<4x1xf32>
    %c0_11 = arith.constant 0 : index
    %9 = memref.load %arg5[%c0_11] : memref<1xf32, #tpu.memory_space<smem>>
    %cst = arith.constant 0.000000e+00 : f32
    %10 = vector.broadcast %cst : f32 to vector<24x1xf32>
    %cst_12 = arith.constant 0.000000e+00 : f32
    %11 = vector.broadcast %cst_12 : f32 to vector<24x1xf32>
    %c0_13 = arith.constant 0 : index
    %c0_14 = arith.constant 0 : index
    %c0_15 = arith.constant 0 : index
    %12 = vector.load %arg0[%c0_13, %c0_14, %c0_15] : memref<2x4x256xf32, #tpu.memory_space<vmem>>, vector<1x4x256xf32>
    %13 = vector.shape_cast %12 : vector<1x4x256xf32> to vector<4x256xf32>
    %cst_16 = arith.constant dense<0.000000e+00> : vector<8x256xf32>
    %14 = tpu.matmul %0, %13, %cst_16 {dimension_numbers = #tpu.dot_dimension_numbers<[1], [0], [0], [1], [0, 0, 1, 1], [], []>} : vector<8x4xf32>, vector<4x256xf32>, vector<8x256xf32> -> vector<8x256xf32>
    %15 = vector.broadcast %2 : vector<8x1xf32> to vector<8x256xf32>
    %16 = arith.addf %14, %15 : vector<8x256xf32>
    %17 = math.tanh %16 : vector<8x256xf32>
    %cst_17 = arith.constant 1.000000e+00 : f32
    %18 = vector.broadcast %cst_17 : f32 to vector<8x256xf32>
    %c0_18 = arith.constant 0 : index
    %c0_19 = arith.constant 0 : index
    %c0_20 = arith.constant 0 : index
    %19 = vector.load %arg2[%c0_18, %c0_19, %c0_20] : memref<3x24x8xf32, #tpu.memory_space<vmem>>, vector<1x24x8xf32>
    %20 = vector.shape_cast %19 : vector<1x24x8xf32> to vector<24x8xf32>
    %cst_21 = arith.constant dense<0.000000e+00> : vector<24x256xf32>
    %21 = tpu.matmul %20, %17, %cst_21 {dimension_numbers = #tpu.dot_dimension_numbers<[1], [0], [0], [1], [0, 0, 1, 1], [], []>} : vector<24x8xf32>, vector<8x256xf32>, vector<24x256xf32> -> vector<24x256xf32>
    %cst_22 = arith.constant 2.000000e+00 : f32
    %22 = vector.broadcast %cst_22 : f32 to vector<8x256xf32>
    %23 = arith.mulf %22, %17 : vector<8x256xf32>
    %24 = arith.mulf %23, %17 : vector<8x256xf32>
    %25 = arith.subf %24, %18 : vector<8x256xf32>
    %c1_23 = arith.constant 1 : index
    %c0_24 = arith.constant 0 : index
    %c0_25 = arith.constant 0 : index
    %26 = vector.load %arg2[%c1_23, %c0_24, %c0_25] : memref<3x24x8xf32, #tpu.memory_space<vmem>>, vector<1x24x8xf32>
    %27 = vector.shape_cast %26 : vector<1x24x8xf32> to vector<24x8xf32>
    %cst_26 = arith.constant dense<0.000000e+00> : vector<24x256xf32>
    %28 = tpu.matmul %27, %25, %cst_26 {dimension_numbers = #tpu.dot_dimension_numbers<[1], [0], [0], [1], [0, 0, 1, 1], [], []>} : vector<24x8xf32>, vector<8x256xf32>, vector<24x256xf32> -> vector<24x256xf32>
    %29 = arith.addf %21, %28 : vector<24x256xf32>
    %cst_27 = arith.constant 2.000000e+00 : f32
    %30 = vector.broadcast %cst_27 : f32 to vector<8x256xf32>
    %31 = arith.mulf %30, %17 : vector<8x256xf32>
    %32 = arith.mulf %31, %25 : vector<8x256xf32>
    %33 = arith.subf %32, %17 : vector<8x256xf32>
    %c2_28 = arith.constant 2 : index
    %c0_29 = arith.constant 0 : index
    %c0_30 = arith.constant 0 : index
    %34 = vector.load %arg2[%c2_28, %c0_29, %c0_30] : memref<3x24x8xf32, #tpu.memory_space<vmem>>, vector<1x24x8xf32>
    %35 = vector.shape_cast %34 : vector<1x24x8xf32> to vector<24x8xf32>
    %cst_31 = arith.constant dense<0.000000e+00> : vector<24x256xf32>
    %36 = tpu.matmul %35, %33, %cst_31 {dimension_numbers = #tpu.dot_dimension_numbers<[1], [0], [0], [1], [0, 0, 1, 1], [], []>} : vector<24x8xf32>, vector<8x256xf32>, vector<24x256xf32> -> vector<24x256xf32>
    %37 = arith.addf %29, %36 : vector<24x256xf32>
    %38 = vector.broadcast %3 : vector<24x1xf32> to vector<24x256xf32>
    %39 = arith.addf %37, %38 : vector<24x256xf32>
    %c0_32 = arith.constant 0 : index
    %c0_33 = arith.constant 0 : index
    %40 = vector.load %arg7[%c0_32, %c0_33] : memref<24x512xf32, #tpu.memory_space<vmem>>, vector<24x256xf32>
    tpu.vector_store %arg7[%c0_32, %c0_33], %39 {strides = array<i32>} : memref<24x512xf32, #tpu.memory_space<vmem>>, vector<24x256xf32>,
    %cst_34 = arith.constant dense<0.000000e+00> : vector<24xf32>
    %41 = vector.multi_reduction <add>, %39, %cst_34 [1] : vector<24x256xf32> to vector<24xf32>
    %42 = vector.shape_cast %41 : vector<24xf32> to vector<24x1xf32>
    %43 = arith.addf %10, %42 : vector<24x1xf32>
    %44 = arith.mulf %39, %39 : vector<24x256xf32>
    %cst_35 = arith.constant dense<0.000000e+00> : vector<24xf32>
    %45 = vector.multi_reduction <add>, %44, %cst_35 [1] : vector<24x256xf32> to vector<24xf32>
    %46 = vector.shape_cast %45 : vector<24xf32> to vector<24x1xf32>
    %47 = arith.addf %11, %46 : vector<24x1xf32>
    %c1_36 = arith.constant 1 : index
    %c0_37 = arith.constant 0 : index
    %c0_38 = arith.constant 0 : index
    %48 = vector.load %arg0[%c1_36, %c0_37, %c0_38] : memref<2x4x256xf32, #tpu.memory_space<vmem>>, vector<1x4x256xf32>
    %49 = vector.shape_cast %48 : vector<1x4x256xf32> to vector<4x256xf32>
    %cst_39 = arith.constant dense<0.000000e+00> : vector<8x256xf32>
    %50 = tpu.matmul %0, %49, %cst_39 {dimension_numbers = #tpu.dot_dimension_numbers<[1], [0], [0], [1], [0, 0, 1, 1], [], []>} : vector<8x4xf32>, vector<4x256xf32>, vector<8x256xf32> -> vector<8x256xf32>
    %51 = vector.broadcast %2 : vector<8x1xf32> to vector<8x256xf32>
    %52 = arith.addf %50, %51 : vector<8x256xf32>
    %53 = math.tanh %52 : vector<8x256xf32>
    %cst_40 = arith.constant 1.000000e+00 : f32
    %54 = vector.broadcast %cst_40 : f32 to vector<8x256xf32>
    %c0_41 = arith.constant 0 : index
    %c0_42 = arith.constant 0 : index
    %c0_43 = arith.constant 0 : index
    %55 = vector.load %arg2[%c0_41, %c0_42, %c0_43] : memref<3x24x8xf32, #tpu.memory_space<vmem>>, vector<1x24x8xf32>
    %56 = vector.shape_cast %55 : vector<1x24x8xf32> to vector<24x8xf32>
    %cst_44 = arith.constant dense<0.000000e+00> : vector<24x256xf32>
    %57 = tpu.matmul %56, %53, %cst_44 {dimension_numbers = #tpu.dot_dimension_numbers<[1], [0], [0], [1], [0, 0, 1, 1], [], []>} : vector<24x8xf32>, vector<8x256xf32>, vector<24x256xf32> -> vector<24x256xf32>
    %cst_45 = arith.constant 2.000000e+00 : f32
    %58 = vector.broadcast %cst_45 : f32 to vector<8x256xf32>
    %59 = arith.mulf %58, %53 : vector<8x256xf32>
    %60 = arith.mulf %59, %53 : vector<8x256xf32>
    %61 = arith.subf %60, %54 : vector<8x256xf32>
    %c1_46 = arith.constant 1 : index
    %c0_47 = arith.constant 0 : index
    %c0_48 = arith.constant 0 : index
    %62 = vector.load %arg2[%c1_46, %c0_47, %c0_48] : memref<3x24x8xf32, #tpu.memory_space<vmem>>, vector<1x24x8xf32>
    %63 = vector.shape_cast %62 : vector<1x24x8xf32> to vector<24x8xf32>
    %cst_49 = arith.constant dense<0.000000e+00> : vector<24x256xf32>
    %64 = tpu.matmul %63, %61, %cst_49 {dimension_numbers = #tpu.dot_dimension_numbers<[1], [0], [0], [1], [0, 0, 1, 1], [], []>} : vector<24x8xf32>, vector<8x256xf32>, vector<24x256xf32> -> vector<24x256xf32>
    %65 = arith.addf %57, %64 : vector<24x256xf32>
    %cst_50 = arith.constant 2.000000e+00 : f32
    %66 = vector.broadcast %cst_50 : f32 to vector<8x256xf32>
    %67 = arith.mulf %66, %53 : vector<8x256xf32>
    %68 = arith.mulf %67, %61 : vector<8x256xf32>
    %69 = arith.subf %68, %53 : vector<8x256xf32>
    %c2_51 = arith.constant 2 : index
    %c0_52 = arith.constant 0 : index
    %c0_53 = arith.constant 0 : index
    %70 = vector.load %arg2[%c2_51, %c0_52, %c0_53] : memref<3x24x8xf32, #tpu.memory_space<vmem>>, vector<1x24x8xf32>
    %71 = vector.shape_cast %70 : vector<1x24x8xf32> to vector<24x8xf32>
    %cst_54 = arith.constant dense<0.000000e+00> : vector<24x256xf32>
    %72 = tpu.matmul %71, %69, %cst_54 {dimension_numbers = #tpu.dot_dimension_numbers<[1], [0], [0], [1], [0, 0, 1, 1], [], []>} : vector<24x8xf32>, vector<8x256xf32>, vector<24x256xf32> -> vector<24x256xf32>
    %73 = arith.addf %65, %72 : vector<24x256xf32>
    %74 = vector.broadcast %3 : vector<24x1xf32> to vector<24x256xf32>
    %75 = arith.addf %73, %74 : vector<24x256xf32>
    %c0_55 = arith.constant 0 : index
    %c256 = arith.constant 256 : index
    %76 = vector.load %arg7[%c0_55, %c256] : memref<24x512xf32, #tpu.memory_space<vmem>>, vector<24x256xf32>
    tpu.vector_store %arg7[%c0_55, %c256], %75 {strides = array<i32>} : memref<24x512xf32, #tpu.memory_space<vmem>>, vector<24x256xf32>,
    %cst_56 = arith.constant dense<0.000000e+00> : vector<24xf32>
    %77 = vector.multi_reduction <add>, %75, %cst_56 [1] : vector<24x256xf32> to vector<24xf32>
    %78 = vector.shape_cast %77 : vector<24xf32> to vector<24x1xf32>
    %79 = arith.addf %43, %78 : vector<24x1xf32>
    %80 = arith.mulf %75, %75 : vector<24x256xf32>
    %cst_57 = arith.constant dense<0.000000e+00> : vector<24xf32>
    %81 = vector.multi_reduction <add>, %80, %cst_57 [1] : vector<24x256xf32> to vector<24xf32>
    %82 = vector.shape_cast %81 : vector<24xf32> to vector<24x1xf32>
    %83 = arith.addf %47, %82 : vector<24x1xf32>
    %cst_58 = arith.constant 0.001953125 : f32
    %84 = vector.broadcast %cst_58 : f32 to vector<24x1xf32>
    %85 = arith.mulf %79, %84 : vector<24x1xf32>
    %cst_59 = arith.constant 0.001953125 : f32
    %86 = vector.broadcast %cst_59 : f32 to vector<24x1xf32>
    %87 = arith.mulf %83, %86 : vector<24x1xf32>
    %88 = arith.mulf %85, %85 : vector<24x1xf32>
    %89 = arith.subf %87, %88 : vector<24x1xf32>
    %cst_60 = arith.constant 9.99999974E-6 : f32
    %90 = vector.broadcast %cst_60 : f32 to vector<24x1xf32>
    %91 = arith.addf %89, %90 : vector<24x1xf32>
    %92 = math.rsqrt %91 : vector<24x1xf32>
    %93 = arith.mulf %4, %92 : vector<24x1xf32>
    %94 = arith.mulf %85, %93 : vector<24x1xf32>
    %95 = arith.subf %5, %94 : vector<24x1xf32>
    %cst_61 = arith.constant 1.000000e+00 : f32
    %96 = vector.broadcast %cst_61 : f32 to vector<1x256xf32>
    %cst_62 = arith.constant 0.000000e+00 : f32
    %97 = vector.broadcast %cst_62 : f32 to vector<4x1xf32>
    %cst_63 = arith.constant 0.000000e+00 : f32
    %98 = vector.broadcast %cst_63 : f32 to vector<4x1xf32>
    %c0_64 = arith.constant 0 : index
    %c0_65 = arith.constant 0 : index
    %99 = vector.load %arg7[%c0_64, %c0_65] : memref<24x512xf32, #tpu.memory_space<vmem>>, vector<24x256xf32>
    %100 = vector.broadcast %93 : vector<24x1xf32> to vector<24x256xf32>
    %101 = arith.mulf %99, %100 : vector<24x256xf32>
    %102 = vector.broadcast %95 : vector<24x1xf32> to vector<24x256xf32>
    %103 = arith.addf %101, %102 : vector<24x256xf32>
    %104 = vector.extract_strided_slice %103 {offsets = [0, 0], sizes = [8, 256], strides = [1, 1]} : vector<24x256xf32> to vector<8x256xf32>
    %105 = vector.extract_strided_slice %103 {offsets = [8, 0], sizes = [8, 256], strides = [1, 1]} : vector<24x256xf32> to vector<8x256xf32>
    %106 = vector.extract_strided_slice %103 {offsets = [16, 0], sizes = [8, 256], strides = [1, 1]} : vector<24x256xf32> to vector<8x256xf32>
    %cst_66 = arith.constant dense<0.000000e+00> : vector<256x256xf32>
    %107 = tpu.matmul %104, %105, %cst_66 {dimension_numbers = #tpu.dot_dimension_numbers<[0], [0], [1], [1], [0, 1, 1, 1], [], []>} : vector<8x256xf32>, vector<8x256xf32>, vector<256x256xf32> -> vector<256x256xf32>
    %cst_67 = arith.constant dense<0xFF800000> : vector<256xf32>
    %108 = vector.multi_reduction <maximumf>, %107, %cst_67 [1] : vector<256x256xf32> to vector<256xf32>
    %109 = vector.shape_cast %108 : vector<256xf32> to vector<256x1xf32>
    %110 = vector.broadcast %109 : vector<256x1xf32> to vector<256x256xf32>
    %111 = arith.subf %107, %110 : vector<256x256xf32>
    %112 = math.exp %111 : vector<256x256xf32>
    %cst_68 = arith.constant dense<0.000000e+00> : vector<1x256xf32>
    %113 = tpu.matmul %96, %112, %cst_68 {dimension_numbers = #tpu.dot_dimension_numbers<[1], [1], [0], [0], [0, 0, 1, 0], [], []>} : vector<1x256xf32>, vector<256x256xf32>, vector<1x256xf32> -> vector<1x256xf32>
    %cst_69 = arith.constant dense<0.000000e+00> : vector<8x256xf32>
    %114 = tpu.matmul %106, %112, %cst_69 {dimension_numbers = #tpu.dot_dimension_numbers<[1], [1], [0], [0], [0, 0, 1, 0], [], []>} : vector<8x256xf32>, vector<256x256xf32>, vector<8x256xf32> -> vector<8x256xf32>
    %cst_70 = arith.constant 1.000000e+00 : f32
    %115 = vector.broadcast %cst_70 : f32 to vector<1x256xf32>
    %116 = arith.divf %115, %113 : vector<1x256xf32>
    %117 = vector.broadcast %116 : vector<1x256xf32> to vector<8x256xf32>
    %118 = arith.mulf %114, %117 : vector<8x256xf32>
    %cst_71 = arith.constant dense<0.000000e+00> : vector<4x256xf32>
    %119 = tpu.matmul %1, %118, %cst_71 {dimension_numbers = #tpu.dot_dimension_numbers<[1], [0], [0], [1], [0, 0, 1, 1], [], []>} : vector<4x8xf32>, vector<8x256xf32>, vector<4x256xf32> -> vector<4x256xf32>
    %120 = vector.broadcast %6 : vector<4x1xf32> to vector<4x256xf32>
    %121 = arith.addf %119, %120 : vector<4x256xf32>
    %c0_72 = arith.constant 0 : index
    %c0_73 = arith.constant 0 : index
    %c0_74 = arith.constant 0 : index
    %122 = vector.load %arg0[%c0_72, %c0_73, %c0_74] : memref<2x4x256xf32, #tpu.memory_space<vmem>>, vector<1x4x256xf32>
    %123 = vector.shape_cast %122 : vector<1x4x256xf32> to vector<4x256xf32>
    %124 = vector.broadcast %9 : f32 to vector<4x256xf32>
    %125 = arith.mulf %124, %123 : vector<4x256xf32>
    %126 = arith.addf %125, %121 : vector<4x256xf32>
    %c0_75 = arith.constant 0 : index
    %c0_76 = arith.constant 0 : index
    %c0_77 = arith.constant 0 : index
    %127 = vector.load %arg6[%c0_75, %c0_76, %c0_77] : memref<2x4x256xf32, #tpu.memory_space<vmem>>, vector<1x4x256xf32>
    %128 = vector.shape_cast %127 : vector<1x4x256xf32> to vector<4x256xf32>
    %129 = vector.shape_cast %126 : vector<4x256xf32> to vector<1x4x256xf32>
    tpu.vector_store %arg6[%c0_75, %c0_76, %c0_77], %129 {strides = array<i32>} : memref<2x4x256xf32, #tpu.memory_space<vmem>>, vector<1x4x256xf32>,
    %cst_78 = arith.constant dense<0.000000e+00> : vector<4xf32>
    %130 = vector.multi_reduction <add>, %126, %cst_78 [1] : vector<4x256xf32> to vector<4xf32>
    %131 = vector.shape_cast %130 : vector<4xf32> to vector<4x1xf32>
    %132 = arith.addf %97, %131 : vector<4x1xf32>
    %133 = arith.mulf %126, %126 : vector<4x256xf32>
    %cst_79 = arith.constant dense<0.000000e+00> : vector<4xf32>
    %134 = vector.multi_reduction <add>, %133, %cst_79 [1] : vector<4x256xf32> to vector<4xf32>
    %135 = vector.shape_cast %134 : vector<4xf32> to vector<4x1xf32>
    %136 = arith.addf %98, %135 : vector<4x1xf32>
    %c0_80 = arith.constant 0 : index
    %c256_81 = arith.constant 256 : index
    %137 = vector.load %arg7[%c0_80, %c256_81] : memref<24x512xf32, #tpu.memory_space<vmem>>, vector<24x256xf32>
    %138 = vector.broadcast %93 : vector<24x1xf32> to vector<24x256xf32>
    %139 = arith.mulf %137, %138 : vector<24x256xf32>
    %140 = vector.broadcast %95 : vector<24x1xf32> to vector<24x256xf32>
    %141 = arith.addf %139, %140 : vector<24x256xf32>
    %142 = vector.extract_strided_slice %141 {offsets = [0, 0], sizes = [8, 256], strides = [1, 1]} : vector<24x256xf32> to vector<8x256xf32>
    %143 = vector.extract_strided_slice %141 {offsets = [8, 0], sizes = [8, 256], strides = [1, 1]} : vector<24x256xf32> to vector<8x256xf32>
    %144 = vector.extract_strided_slice %141 {offsets = [16, 0], sizes = [8, 256], strides = [1, 1]} : vector<24x256xf32> to vector<8x256xf32>
    %cst_82 = arith.constant dense<0.000000e+00> : vector<256x256xf32>
    %145 = tpu.matmul %142, %143, %cst_82 {dimension_numbers = #tpu.dot_dimension_numbers<[0], [0], [1], [1], [0, 1, 1, 1], [], []>} : vector<8x256xf32>, vector<8x256xf32>, vector<256x256xf32> -> vector<256x256xf32>
    %cst_83 = arith.constant dense<0xFF800000> : vector<256xf32>
    %146 = vector.multi_reduction <maximumf>, %145, %cst_83 [1] : vector<256x256xf32> to vector<256xf32>
    %147 = vector.shape_cast %146 : vector<256xf32> to vector<256x1xf32>
    %148 = vector.broadcast %147 : vector<256x1xf32> to vector<256x256xf32>
    %149 = arith.subf %145, %148 : vector<256x256xf32>
    %150 = math.exp %149 : vector<256x256xf32>
    %cst_84 = arith.constant dense<0.000000e+00> : vector<1x256xf32>
    %151 = tpu.matmul %96, %150, %cst_84 {dimension_numbers = #tpu.dot_dimension_numbers<[1], [1], [0], [0], [0, 0, 1, 0], [], []>} : vector<1x256xf32>, vector<256x256xf32>, vector<1x256xf32> -> vector<1x256xf32>
    %cst_85 = arith.constant dense<0.000000e+00> : vector<8x256xf32>
    %152 = tpu.matmul %144, %150, %cst_85 {dimension_numbers = #tpu.dot_dimension_numbers<[1], [1], [0], [0], [0, 0, 1, 0], [], []>} : vector<8x256xf32>, vector<256x256xf32>, vector<8x256xf32> -> vector<8x256xf32>
    %cst_86 = arith.constant 1.000000e+00 : f32
    %153 = vector.broadcast %cst_86 : f32 to vector<1x256xf32>
    %154 = arith.divf %153, %151 : vector<1x256xf32>
    %155 = vector.broadcast %154 : vector<1x256xf32> to vector<8x256xf32>
    %156 = arith.mulf %152, %155 : vector<8x256xf32>
    %cst_87 = arith.constant dense<0.000000e+00> : vector<4x256xf32>
    %157 = tpu.matmul %1, %156, %cst_87 {dimension_numbers = #tpu.dot_dimension_numbers<[1], [0], [0], [1], [0, 0, 1, 1], [], []>} : vector<4x8xf32>, vector<8x256xf32>, vector<4x256xf32> -> vector<4x256xf32>
    %158 = vector.broadcast %6 : vector<4x1xf32> to vector<4x256xf32>
    %159 = arith.addf %157, %158 : vector<4x256xf32>
    %c1_88 = arith.constant 1 : index
    %c0_89 = arith.constant 0 : index
    %c0_90 = arith.constant 0 : index
    %160 = vector.load %arg0[%c1_88, %c0_89, %c0_90] : memref<2x4x256xf32, #tpu.memory_space<vmem>>, vector<1x4x256xf32>
    %161 = vector.shape_cast %160 : vector<1x4x256xf32> to vector<4x256xf32>
    %162 = vector.broadcast %9 : f32 to vector<4x256xf32>
    %163 = arith.mulf %162, %161 : vector<4x256xf32>
    %164 = arith.addf %163, %159 : vector<4x256xf32>
    %c1_91 = arith.constant 1 : index
    %c0_92 = arith.constant 0 : index
    %c0_93 = arith.constant 0 : index
    %165 = vector.load %arg6[%c1_91, %c0_92, %c0_93] : memref<2x4x256xf32, #tpu.memory_space<vmem>>, vector<1x4x256xf32>
    %166 = vector.shape_cast %165 : vector<1x4x256xf32> to vector<4x256xf32>
    %167 = vector.shape_cast %164 : vector<4x256xf32> to vector<1x4x256xf32>
    tpu.vector_store %arg6[%c1_91, %c0_92, %c0_93], %167 {strides = array<i32>} : memref<2x4x256xf32, #tpu.memory_space<vmem>>, vector<1x4x256xf32>,
    %cst_94 = arith.constant dense<0.000000e+00> : vector<4xf32>
    %168 = vector.multi_reduction <add>, %164, %cst_94 [1] : vector<4x256xf32> to vector<4xf32>
    %169 = vector.shape_cast %168 : vector<4xf32> to vector<4x1xf32>
    %170 = arith.addf %132, %169 : vector<4x1xf32>
    %171 = arith.mulf %164, %164 : vector<4x256xf32>
    %cst_95 = arith.constant dense<0.000000e+00> : vector<4xf32>
    %172 = vector.multi_reduction <add>, %171, %cst_95 [1] : vector<4x256xf32> to vector<4xf32>
    %173 = vector.shape_cast %172 : vector<4xf32> to vector<4x1xf32>
    %174 = arith.addf %136, %173 : vector<4x1xf32>
    %cst_96 = arith.constant 0.001953125 : f32
    %175 = vector.broadcast %cst_96 : f32 to vector<4x1xf32>
    %176 = arith.mulf %170, %175 : vector<4x1xf32>
    %cst_97 = arith.constant 0.001953125 : f32
    %177 = vector.broadcast %cst_97 : f32 to vector<4x1xf32>
    %178 = arith.mulf %174, %177 : vector<4x1xf32>
    %179 = arith.mulf %176, %176 : vector<4x1xf32>
    %180 = arith.subf %178, %179 : vector<4x1xf32>
    %cst_98 = arith.constant 9.99999974E-6 : f32
    %181 = vector.broadcast %cst_98 : f32 to vector<4x1xf32>
    %182 = arith.addf %180, %181 : vector<4x1xf32>
    %183 = math.rsqrt %182 : vector<4x1xf32>
    %184 = arith.mulf %7, %183 : vector<4x1xf32>
    %185 = arith.mulf %176, %184 : vector<4x1xf32>
    %186 = arith.subf %8, %185 : vector<4x1xf32>
    %c0_99 = arith.constant 0 : index
    %c0_100 = arith.constant 0 : index
    %c0_101 = arith.constant 0 : index
    %187 = vector.load %arg6[%c0_99, %c0_100, %c0_101] : memref<2x4x256xf32, #tpu.memory_space<vmem>>, vector<1x4x256xf32>
    %188 = vector.shape_cast %187 : vector<1x4x256xf32> to vector<4x256xf32>
    %189 = vector.broadcast %184 : vector<4x1xf32> to vector<4x256xf32>
    %190 = arith.mulf %188, %189 : vector<4x256xf32>
    %191 = vector.broadcast %186 : vector<4x1xf32> to vector<4x256xf32>
    %192 = arith.addf %190, %191 : vector<4x256xf32>
    %c0_102 = arith.constant 0 : index
    %c0_103 = arith.constant 0 : index
    %c0_104 = arith.constant 0 : index
    %193 = vector.load %arg6[%c0_102, %c0_103, %c0_104] : memref<2x4x256xf32, #tpu.memory_space<vmem>>, vector<1x4x256xf32>
    %194 = vector.shape_cast %193 : vector<1x4x256xf32> to vector<4x256xf32>
    %195 = vector.shape_cast %192 : vector<4x256xf32> to vector<1x4x256xf32>
    tpu.vector_store %arg6[%c0_102, %c0_103, %c0_104], %195 {strides = array<i32>} : memref<2x4x256xf32, #tpu.memory_space<vmem>>, vector<1x4x256xf32>,
    %c1_105 = arith.constant 1 : index
    %c0_106 = arith.constant 0 : index
    %c0_107 = arith.constant 0 : index
    %196 = vector.load %arg6[%c1_105, %c0_106, %c0_107] : memref<2x4x256xf32, #tpu.memory_space<vmem>>, vector<1x4x256xf32>
    %197 = vector.shape_cast %196 : vector<1x4x256xf32> to vector<4x256xf32>
    %198 = vector.broadcast %184 : vector<4x1xf32> to vector<4x256xf32>
    %199 = arith.mulf %197, %198 : vector<4x256xf32>
    %200 = vector.broadcast %186 : vector<4x1xf32> to vector<4x256xf32>
    %201 = arith.addf %199, %200 : vector<4x256xf32>
    %c1_108 = arith.constant 1 : index
    %c0_109 = arith.constant 0 : index
    %c0_110 = arith.constant 0 : index
    %202 = vector.load %arg6[%c1_108, %c0_109, %c0_110] : memref<2x4x256xf32, #tpu.memory_space<vmem>>, vector<1x4x256xf32>
    %203 = vector.shape_cast %202 : vector<1x4x256xf32> to vector<4x256xf32>
    %204 = vector.shape_cast %201 : vector<4x256xf32> to vector<1x4x256xf32>
    tpu.vector_store %arg6[%c1_108, %c0_109, %c0_110], %204 {strides = array<i32>} : memref<2x4x256xf32, #tpu.memory_space<vmem>>, vector<1x4x256xf32>,
    return
  }
}

</mosaic_0001>

<bundles_post_ra>
// kernel: self_kantention_forward.1
= control target key start
LH: loop header
LB: loop body
LE: loop exit
PB: predicated region body
PF: predicated region fallthrough
CT: control target
= control target key end

     0   :  { %vm43_vm0 = vcmask 1043456   ;;  %v4501_v1 = vmov 0.0   ;;  %v3407_v2 = vmov 0   ;;  %vm39_vm1 = vcmask 31744   ;;  %s4494_s0 = inlined_call_operand.vmem [shape: f32[2,4,256], index: 0, kind: input, shape index: {}]   ;;  %s4495_s1 = inlined_call_operand.vmem [shape: f32[8,4], index: 1, kind: input, shape index: {}]   ;;  %s4496_s4 = inlined_call_operand.vmem [shape: f32[24,8], index: 4, kind: input, shape index: {}]   ;;  %s4497_s2 = inlined_call_operand.vmem [shape: f32[3,24,8], index: 2, kind: input, shape index: {}]   ;;  %s4498_s3 = inlined_call_operand.vmem [shape: f32[4,8], index: 3, kind: input, shape index: {}]   ;;  %s4499_s5 = inlined_call_operand.<no memory space> [shape: f32[1], index: 5, kind: input, shape index: {}]   ;;  %s4500_s6 = inlined_call_operand.vmem [shape: f32[2,4,256], index: 6, kind: output, shape index: {}]  }
   0x1   :  { %v31_v0 = vld [vmem:[%s4494_s0] sm:$0xff]  ;;  %112 = vmatprep.mubr.f32.mxu0 %v4501_v1  ;;  %3109 = vset.pattern.permute.xlu0 %v3407_v2  ;;  %v3473_v6 = vld [vmem:[%s4496_s4 + $0x8] sm:$0xff]  ;;  %v3408_v7 = vmov 1   ;;  %vm134_vm2 = vcmask 64512   ;;  %v3504_v26 = vld [vmem:[%s4497_s2 + $0x18] sm:$0xff] }
   0x2   :  { %v3459_v3 = vld [vmem:[%s4496_s4] sm:$0xff]  ;;  %v38_v4 = vcombine.high %v31_v0, %v31_v0  ;;  %208 = vmatprep.mubr.f32.mxu1 %v4501_v1  ;;  %3111 = vset.pattern.permute.xlu1 %v3408_v7  ;;  %v3007_v13 = vld [vmem:[%s4494_s0 + $0x8] sm:$0xff]  ;;  %v3512_v28 = vld [vmem:[%s4497_s2 + $0x10] sm:$0xff] }
   0x3   :  { %34 = vperm.xlu0 %3109, %v3459_v3   ;;  %v24_v5 = vld [vmem:[%s4495_s1] sm:$0xff]  ;;  %431 = vperm.xlu1 %3111, %v3473_v6   ;;  %v484_v15 = vcombine.high %v3007_v13, %v3007_v13  ;;  %v3499_v23 = vld [vmem:[%s4497_s2 + $0x8] sm:$0xff]  ;;  %v3541_v33 = vld [vmem:[%s4497_s2 + $0x30] sm:$0xff] }
   0x4   :  { %2987 = vmatprep.subr.msk.mxu0 %vm43_vm0, %v38_v4  ;;  %v3489_v18 = vld [vmem:[%s4497_s2] sm:$0xff]  ;;  %v3531_v32 = vld [vmem:[%s4497_s2 + $0x28] sm:$0xff]  ;;  %v3549_v34 = vld [vmem:[%s4497_s2 + $0x38] sm:$0xff] }
   0x5   :  { %2988 = vmatpush1.msk.msra.mxu0 %vm43_vm0, %v31_v0  ;;  %v3520_v31 = vld [vmem:[%s4497_s2 + $0x20] sm:$0xff] }
   0x6   :  { %2989 = vmatmul.mubr.msk.f32.vlgmr.msra.gmra.mxu0 %vm39_vm1, %v24_v5  ;;  %v3557_v35 = vld [vmem:[%s4497_s2 + $0x40] sm:$0xff]  ;;  %s3410_s2 = smov 1  }
   0x7   :  { %300 = vmatprep.mubr.f32.mxu0 %v4501_v1  ;;  %3110 = vset.pattern.permute.xlu0 %v3408_v7 }
   0x8   :  { %426 = vperm.xlu0 %3110, %v3459_v3  }
  0x7e   :  { %v3479_v8 = vpop.permute.xlu0 %34 }
  0x83   :  { %v3566_v58 = vpop.permute.xlu0 %426 }
  0xc6   :  { %v114_v9 = vpop.f32.mrf.mxu0 }
  0xc7   :  { %v115_v10 = vadd.f32 %v114_v9, %v3479_v8 }
  0xc8   :  { %v116_v11 = vpop.f32.mrf.mxu0 }
  0xc9   :  { %3123 = vtanh.f32 %v115_v10  ;;  %v117_v12 = vadd.f32 %v116_v11, %v3479_v8 }
  0xcb   :  { %3125 = vtanh.f32 %v117_v12 }
  0xd6   :  { %v3124_v14 = vpop.eup %3123 }
  0xd7   :  { %v124_v16 = vmul.f32 2.0, %v3124_v14 }
  0xd8   :  { %v3126_v17 = vpop.eup %3125 }
  0xd9   :  { %266 = vmatprep.subr.mxu0 %v3126_v17  ;;  %v125_v19 = vmul.f32 2.0, %v3126_v17  ;;  %v126_v20 = vmul.f32 %v3124_v14, %v124_v16 }
  0xda   :  { %267 = vmatpush1.msra.mxu0 %v3124_v14 }
  0xdb   :  { %2998 = vmatmul.mubr.msk.f32.vlgmr.msra.gmra.mxu0 %vm134_vm2, %v3489_v18  ;;  %3008 = vmatprep.subr.msk.mxu0 %vm43_vm0, %v484_v15  ;;  %v127_v21 = vmul.f32 %v3126_v17, %v125_v19  ;;  %v2990_v22 = vadd.f32 -1.0, %v126_v20  ;;  %v3582_v15 = vpop.permute.xlu1 %431 }
  0xdc   :  { %306 = vmatprep.mubr.f32.mxu0 %v4501_v1  ;;  %3009 = vmatpush1.msk.msra.mxu0 %vm43_vm0, %v3007_v13 }
  0xdd   :  { %v2991_v24 = vadd.f32 -1.0, %v127_v21  ;;  %v319_v25 = vmul.f32 %v2990_v22, %v124_v16 }
  0xdf   :  { %174 = vmatprep.subr.mxu1 %v2991_v24  ;;  %v320_v27 = vmul.f32 %v2991_v24, %v125_v19  ;;  %2999 = vmatmul.mubr.msk.f32.gmra.mxu0 %vm134_vm2, %v3499_v23  ;;  %v321_v30 = vsub.f32 %v319_v25, %v3124_v14 }
  0xe0   :  { %175 = vmatpush1.msra.mxu1 %v2990_v22  ;;  %312 = vmatprep.mubr.f32.mxu0 %v4501_v1 }
  0xe1   :  { %2995 = vmatmul.mubr.msk.f32.vlgmr.msra.gmra.mxu1 %vm134_vm2, %v3504_v26  ;;  %v322_v29 = vsub.f32 %v320_v27, %v3126_v17 }
  0xe2   :  { %214 = vmatprep.mubr.f32.mxu1 %v4501_v1 }
  0xe3   :  { %3000 = vmatmul.mubr.msk.f32.gmra.mxu0 %vm134_vm2, %v3512_v28  ;;  %366 = vmatprep.subr.mxu1 %v322_v29 }
  0xe4   :  { %367 = vmatpush1.msra.mxu1 %v321_v30  ;;  %553 = vmatprep.mubr.f32.mxu0 %v4501_v1 }
  0xe5   :  { %2996 = vmatmul.mubr.msk.f32.gmra.mxu1 %vm134_vm2, %v3520_v31 }
  0xe6   :  { %220 = vmatprep.mubr.f32.mxu1 %v4501_v1 }
  0xe7   :  { %3010 = vmatmul.mubr.msk.f32.vlgmr.msra.gmra.mxu0 %vm39_vm1, %v24_v5 }
  0xe8   :  { %647 = vmatprep.mubr.f32.mxu0 %v4501_v1 }
  0xe9   :  { %2997 = vmatmul.mubr.msk.f32.gmra.mxu1 %vm134_vm2, %v3531_v32 }
  0xea   :  { %400 = vmatprep.mubr.f32.mxu1 %v4501_v1 }
  0xed   :  { %3004 = vmatmul.mubr.msk.f32.vlgmr.msra.gmra.mxu1 %vm134_vm2, %v3541_v33 }
  0xee   :  { %406 = vmatprep.mubr.f32.mxu1 %v4501_v1 }
  0xf1   :  { %3005 = vmatmul.mubr.msk.f32.gmra.mxu1 %vm134_vm2, %v3549_v34 }
  0xf2   :  { %412 = vmatprep.mubr.f32.mxu1 %v4501_v1 }
  0xf5   :  { %3006 = vmatmul.mubr.msk.f32.gmra.mxu1 %vm134_vm2, %v3557_v35 }
  0xf6   :  { %739 = vmatprep.mubr.f32.mxu1 %v4501_v1 }
 0x19b   :  { %v302_v36 = vpop.f32.mrf.mxu0 }
 0x19d   :  { %v304_v37 = vpop.f32.mrf.mxu0 }
 0x19f   :  { %v308_v38 = vpop.f32.mrf.mxu0 }
 0x1a1   :  { %v210_v39 = vpop.f32.mrf.mxu1  ;;  %v310_v40 = vpop.f32.mrf.mxu0 }
 0x1a2   :  { %v303_v53 = vadd.f32 %v302_v36, %v210_v39 }
 0x1a3   :  { %v212_v41 = vpop.f32.mrf.mxu1  ;;  %v314_v42 = vpop.f32.mrf.mxu0 }
 0x1a4   :  { %v305_v56 = vadd.f32 %v304_v37, %v212_v41 }
 0x1a5   :  { %v216_v43 = vpop.f32.mrf.mxu1  ;;  %v316_v44 = vpop.f32.mrf.mxu0 }
 0x1a6   :  { %v309_v4 = vadd.f32 %v308_v38, %v216_v43 }
 0x1a7   :  { %v218_v45 = vpop.f32.mrf.mxu1  ;;  %v555_v46 = vpop.f32.mrf.mxu0 }
 0x1a8   :  { %v556_v47 = vadd.f32 %v555_v46, %v3479_v8  ;;  %v311_v62 = vadd.f32 %v310_v40, %v218_v45 }
 0x1a9   :  { %v222_v48 = vpop.f32.mrf.mxu1  ;;  %v557_v49 = vpop.f32.mrf.mxu0 }
 0x1aa   :  { %3127 = vtanh.f32 %v556_v47  ;;  %v315_v50 = vadd.f32 %v314_v42, %v222_v48  ;;  %v558_v51 = vadd.f32 %v557_v49, %v3479_v8 }
 0x1ab   :  { %v224_v52 = vpop.f32.mrf.mxu1 }
 0x1ac   :  { %3129 = vtanh.f32 %v558_v51  ;;  %v3564_v54 = vadd.f32 %v316_v44, %v224_v52 }
 0x1ad   :  { %v402_v55 = vpop.f32.mrf.mxu1 }
 0x1ae   :  { %v419_v57 = vadd.f32 %v402_v55, %v303_v53 }
 0x1af   :  { %v404_v59 = vpop.f32.mrf.mxu1 }
 0x1b0   :  { %v420_v60 = vadd.f32 %v404_v59, %v305_v56  ;;  %v3569_v63 = vadd.f32 %v3566_v58, %v419_v57 }
 0x1b1   :  { %v408_v61 = vpop.f32.mrf.mxu1 }
 0x1b2   :  { %v3572_v0 = vadd.f32 %v3566_v58, %v420_v60  ;;  %v421_v11 = vadd.f32 %v408_v61, %v309_v4  ;;  %v463_v13 = vmul.f32 %v3569_v63, %v3569_v63 }
 0x1b3   :  { %v410_v2 = vpop.f32.mrf.mxu1 }
 0x1b4   :  { %v422_v5 = vadd.f32 %v410_v2, %v311_v62  ;;  %v451_v8 = vadd.f32 %v3572_v0, %v3569_v63  ;;  %v464_v9 = vmul.f32 %v3572_v0, %v3572_v0  ;;  %v3588_v21 = vadd.f32 %v3582_v15, %v421_v11 }
 0x1b5   :  { %v414_v10 = vpop.f32.mrf.mxu1 }
 0x1b6   :  { %v3578_v12 = vadd.f32 %v414_v10, %v315_v50  ;;  %452 = vadd.xlane.f32.xlu1 %v451_v8  ;;  %v3585_v16 = vadd.f32 %v3582_v15, %v422_v5  ;;  %v469_v17 = vadd.f32 %v464_v9, %v463_v13  ;;  %v465_v37 = vmul.f32 %v3588_v21, %v3588_v21 }
 0x1b7   :  { %v3128_v14 = vpop.eup %3127  ;;  %v3409_v13 = vmov 2  }
 0x1b8   :  { %v565_v19 = vmul.f32 2.0, %v3128_v14  ;;  %v454_v25 = vadd.f32 %v3585_v16, %v3588_v21  ;;  %v466_v30 = vmul.f32 %v3585_v16, %v3585_v16  ;;  %3112 = vset.pattern.permute.xlu1 %v3409_v13  ;;  %3114 = vset.pattern.permute.xlu0 %v3409_v13 }
 0x1b9   :  { %v3130_v20 = vpop.eup %3129 }
 0x1ba   :  { %705 = vmatprep.subr.mxu1 %v3130_v20  ;;  %470 = vadd.xlane.f32.xlu1 %v469_v17  ;;  %v566_v22 = vmul.f32 2.0, %v3130_v20  ;;  %v567_v24 = vmul.f32 %v3128_v14, %v565_v19  ;;  %v472_v39 = vadd.f32 %v466_v30, %v465_v37 }
 0x1bb   :  { %706 = vmatpush1.msra.mxu1 %v3128_v14 }
 0x1bc   :  { %v568_v27 = vmul.f32 %v3130_v20, %v566_v22  ;;  %v3011_v29 = vadd.f32 -1.0, %v567_v24  ;;  %3019 = vmatmul.mubr.msk.f32.vlgmr.msra.gmra.mxu1 %vm134_vm2, %v3489_v18 }
 0x1bd   :  { %745 = vmatprep.mubr.f32.mxu1 %v4501_v1 }
 0x1be   :  { %455 = vadd.xlane.f32.xlu1 %v454_v25  ;;  %v3012_v36 = vadd.f32 -1.0, %v568_v27  ;;  %v758_v38 = vmul.f32 %v3011_v29, %v565_v19 }
 0x1c0   :  { %613 = vmatprep.subr.mxu0 %v3012_v36  ;;  %v759_v40 = vmul.f32 %v3012_v36, %v566_v22  ;;  %3020 = vmatmul.mubr.msk.f32.gmra.mxu1 %vm134_vm2, %v3499_v23  ;;  %v760_v41 = vsub.f32 %v758_v38, %v3128_v14  ;;  %v3622_v23 = vpop.f32.mrf.mxu1 }
 0x1c1   :  { %614 = vmatpush1.msra.mxu0 %v3011_v29  ;;  %751 = vmatprep.mubr.f32.mxu1 %v4501_v1 }
 0x1c2   :  { %3016 = vmatmul.mubr.msk.f32.vlgmr.msra.gmra.mxu0 %vm134_vm2, %v3504_v26  ;;  %473 = vadd.xlane.f32.xlu1 %v472_v39  ;;  %v761_v18 = vsub.f32 %v759_v40, %v3130_v20 }
 0x1c3   :  { %653 = vmatprep.mubr.f32.mxu0 %v4501_v1 }
 0x1c4   :  { %804 = vmatprep.subr.mxu0 %v761_v18  ;;  %3021 = vmatmul.mubr.msk.f32.gmra.mxu1 %vm134_vm2, %v3512_v28 }
 0x1c5   :  { %805 = vmatpush1.msra.mxu0 %v760_v41  ;;  %1216 = vmatprep.mubr.f32.mxu1 %v4501_v1 }
 0x1c6   :  { %3017 = vmatmul.mubr.msk.f32.gmra.mxu0 %vm134_vm2, %v3520_v31 }
 0x1c7   :  { %659 = vmatprep.mubr.f32.mxu0 %v4501_v1 }
 0x1ca   :  { %3018 = vmatmul.mubr.msk.f32.gmra.mxu0 %vm134_vm2, %v3531_v32 }
 0x1cb   :  { %838 = vmatprep.mubr.f32.mxu0 %v4501_v1 }
 0x1ce   :  { %3025 = vmatmul.mubr.msk.f32.vlgmr.msra.gmra.mxu0 %vm134_vm2, %v3541_v33 }
 0x1cf   :  { %844 = vmatprep.mubr.f32.mxu0 %v4501_v1 }
 0x1d2   :  { %3026 = vmatmul.mubr.msk.f32.gmra.mxu0 %vm134_vm2, %v3549_v34 }
 0x1d3   :  { %850 = vmatprep.mubr.f32.mxu0 %v4501_v1 }
 0x1d6   :  { %3027 = vmatmul.mubr.msk.f32.gmra.mxu0 %vm134_vm2, %v3557_v35 }
 0x23f   :  { %v453_v14 = vpop.xlane.xlu1 %452 }
 0x27c   :  { %v741_v28 = vpop.f32.mrf.mxu1 }
 0x27e   :  { %v743_v42 = vpop.f32.mrf.mxu1 }
 0x280   :  { %v747_v33 = vpop.f32.mrf.mxu1 }
 0x282   :  { %v649_v26 = vpop.f32.mrf.mxu0  ;;  %v749_v49 = vpop.f32.mrf.mxu1 }
 0x283   :  { %v742_v46 = vadd.f32 %v741_v28, %v649_v26 }
 0x284   :  { %v651_v31 = vpop.f32.mrf.mxu0 }
 0x285   :  { %v744_v47 = vadd.f32 %v743_v42, %v651_v31 }
 0x286   :  { %v655_v32 = vpop.f32.mrf.mxu0 }
 0x287   :  { %v748_v57 = vadd.f32 %v747_v33, %v655_v32 }
 0x288   :  { %v657_v43 = vpop.f32.mrf.mxu0 }
 0x289   :  { %v750_v52 = vadd.f32 %v749_v49, %v657_v43 }
 0x28a   :  { %v3624_v44 = vpop.f32.mrf.mxu0 }
 0x28c   :  { %v3626_v45 = vpop.f32.mrf.mxu0 }
 0x28e   :  { %v840_v34 = vpop.f32.mrf.mxu0 }
 0x28f   :  { %v857_v48 = vadd.f32 %v840_v34, %v742_v46 }
 0x290   :  { %v842_v50 = vpop.f32.mrf.mxu0 }
 0x291   :  { %v858_v35 = vadd.f32 %v842_v50, %v744_v47  ;;  %v3629_v53 = vadd.f32 %v857_v48, %v3566_v58  ;;  %v3411_v48 = vmov 3  }
 0x292   :  { %v846_v51 = vpop.f32.mrf.mxu0 }
 0x293   :  { %4562 = vst [vmem:[#allocation4_spill] sm:$0xff] %v3629_v53  ;;  %v3632_v55 = vadd.f32 %v858_v35, %v3566_v58  ;;  %v859_v62 = vadd.f32 %v846_v51, %v748_v57  ;;  %v887_v2 = vmul.f32 %v3629_v53, %v3629_v53 }
 0x294   :  { %v848_v56 = vpop.f32.mrf.mxu0 }
 0x295   :  { %4563 = vst [vmem:[#allocation5_spill] sm:$0xff] %v3632_v55  ;;  %v860_v59 = vadd.f32 %v848_v56, %v750_v52  ;;  %v875_v60 = vadd.f32 %v3632_v55, %v3629_v53  ;;  %v888_v61 = vmul.f32 %v3632_v55, %v3632_v55  ;;  %v3644_v58 = vadd.f32 %v859_v62, %v3582_v15 }
 0x297   :  { %876 = vadd.xlane.f32.xlu0 %v875_v60  ;;  %v3641_v4 = vadd.f32 %v860_v59, %v3582_v15  ;;  %v893_v5 = vadd.f32 %v888_v61, %v887_v2  ;;  %4565 = vst [vmem:[#allocation7_spill] sm:$0xff] %v3644_v58  ;;  %v889_v10 = vmul.f32 %v3644_v58, %v3644_v58  ;;  %v471_v15 = vpop.xlane.xlu1 %470 }
 0x299   :  { %4564 = vst [vmem:[#allocation6_spill] sm:$0xff] %v3641_v4  ;;  %v878_v8 = vadd.f32 %v3641_v4, %v3644_v58  ;;  %v890_v9 = vmul.f32 %v3641_v4, %v3641_v4 }
 0x29b   :  { %894 = vadd.xlane.f32.xlu0 %v893_v5  ;;  %v896_v11 = vadd.f32 %v890_v9, %v889_v10  ;;  %v456_v25 = vpop.xlane.xlu1 %455  ;;  %v3684_v5 = vld [vmem:[%s4496_s4 + $0x10] sm:$0xff] }
 0x29f   :  { %879 = vadd.xlane.f32.xlu0 %v878_v8  ;;  %v474_v40 = vpop.xlane.xlu1 %473 }
 0x2a3   :  { %897 = vadd.xlane.f32.xlu0 %v896_v11 }
 0x320   :  { %v877_v17 = vpop.xlane.xlu0 %876 }
 0x321   :  { %v884_v19 = vadd.f32 %v877_v17, %v453_v14 }
 0x323   :  { %v905_v20 = vmul.f32 0.001953125, %v884_v19 }
 0x324   :  { %v895_v22 = vpop.xlane.xlu0 %894 }
 0x325   :  { %v902_v24 = vadd.f32 %v895_v22, %v471_v15  ;;  %v911_v27 = vmul.f32 %v905_v20, %v905_v20 }
 0x327   :  { %v908_v29 = vmul.f32 0.001953125, %v902_v24 }
 0x328   :  { %v880_v30 = vpop.xlane.xlu0 %879 }
 0x329   :  { %v914_v36 = vsub.f32 %v908_v29, %v911_v27  ;;  %v885_v37 = vadd.f32 %v880_v30, %v456_v25 }
 0x32b   :  { %v917_v38 = vadd.f32 1e-05, %v914_v36  ;;  %v906_v39 = vmul.f32 0.001953125, %v885_v37 }
 0x32c   :  { %v898_v18 = vpop.xlane.xlu0 %897 }
 0x32d   :  { %3131 = vrsqrt.f32 %v917_v38  ;;  %v903_v41 = vadd.f32 %v898_v18, %v474_v40  ;;  %v912_v26 = vmul.f32 %v906_v39, %v906_v39 }
 0x32f   :  { %v909_v28 = vmul.f32 0.001953125, %v903_v41 }
 0x331   :  { %v915_v31 = vsub.f32 %v909_v28, %v912_v26 }
 0x333   :  { %v918_v32 = vadd.f32 1e-05, %v915_v31 }
 0x335   :  { %3133 = vrsqrt.f32 %v918_v32 }
 0x33a   :  { %v3132_v42 = vpop.eup %3131 }
 0x33b   :  { %v923_v43 = vmul.f32 %v3132_v42, %v3459_v3 }
 0x33d   :  { %v926_v33 = vmul.f32 %v923_v43, %v905_v20 }
 0x33f   :  { %932 = vrot.lane.b32.xlu1 %v926_v33, %s3410_s2  ;;  %v852_v33 = vpop.f32.mrf.mxu0 }
 0x342   :  { %v3134_v46 = vpop.eup %3133 }
 0x343   :  { %952 = vperm.xlu1 %3112, %v923_v43   ;;  %v924_v34 = vmul.f32 %v3134_v46, %v3473_v6  ;;  %v753_v43 = vpop.f32.mrf.mxu1 }
 0x345   :  { %v927_v47 = vmul.f32 %v924_v34, %v906_v39 }
 0x347   :  { %934 = vrot.lane.b32.xlu0 %v927_v47, %s3410_s2  ;;  %3113 = vset.pattern.permute.xlu1 %v3411_v48  ;;  %v854_v47 = vpop.f32.mrf.mxu0  ;;  %v424_v48 = vadd.f32 %v3622_v23, %v3564_v54 }
 0x34b   :  { %957 = vperm.xlu0 %3114, %v924_v34   ;;  %v755_v34 = vpop.f32.mrf.mxu1 }
 0x3b1   :  { %v933_v49 = vpop.permute.xlu1 %932 }
 0x3b2   :  { %v941_v50 = vsub.f32 %v3459_v3, %v933_v49  ;;  %v754_v49 = vadd.f32 %v753_v43, %v3624_v44 }
 0x3b4   :  { %973 = vperm.xlu1 %3113, %v941_v50   ;;  %v756_v50 = vadd.f32 %v755_v34, %v3626_v45 }
 0x3b9   :  { %v935_v35 = vpop.permute.xlu0 %934 }
 0x3ba   :  { %v942_v51 = vsub.f32 %v3473_v6, %v935_v35 }
 0x3bc   :  { %978 = vperm.xlu1 %3113, %v942_v51   ;;  %v861_v51 = vadd.f32 %v852_v33, %v754_v49 }
 0x3be   :  { %v3660_v52 = vpop.permute.xlu1 %952 }
 0x3bf   :  { %4566 = vst [vmem:[#allocation8_spill] sm:$0xff] %v3660_v52  ;;  %v965_v56 = vmul.f32 %v3660_v52, %v3569_v63  ;;  %v966_v57 = vmul.f32 %v3660_v52, %v3572_v0 }
 0x3c6   :  { %v3670_v3 = vpop.permute.xlu0 %957 }
 0x3c7   :  { %4568 = vst [vmem:[#allocation10_spill] sm:$0xff] %v3670_v3  ;;  %v967_v6 = vmul.f32 %v3670_v3, %v3588_v21  ;;  %v968_v62 = vmul.f32 %v3670_v3, %v3585_v16 }
 0x42f   :  { %v3666_v59 = vpop.permute.xlu1 %973 }
 0x430   :  { %4567 = vst [vmem:[#allocation9_spill] sm:$0xff] %v3666_v59  ;;  %v987_v60 = vadd.f32 %v3666_v59, %v966_v57  ;;  %v986_v61 = vadd.f32 %v3666_v59, %v965_v56  ;;  %v862_v56 = vadd.f32 %v854_v47, %v756_v50 }
 0x432   :  { %1024 = vxpose.xlu0.b32.start.end [1/1] (short) %v987_v60, 128  ;;  %992 = vxpose.xlu1.b32.start.end [1/1] (short) %v986_v61, 128 }
 0x437   :  { %v3676_v63 = vpop.permute.xlu1 %978 }
 0x438   :  { %4569 = vst [vmem:[#allocation11_spill] sm:$0xff] %v3676_v63  ;;  %v988_v0 = vadd.f32 %v3676_v63, %v967_v6  ;;  %v989_v2 = vadd.f32 %v3676_v63, %v968_v62 }
 0x43a   :  { %1182 = vmatprep.subr.mxu1 %v989_v2 }
 0x43b   :  { %1183 = vmatpush1.msra.mxu1 %v988_v0 }
 0x45b   :  { %3115 = vset.pattern.permute.xlu0 %v3408_v7 }
 0x497   :  { %436 = vperm.xlu0 %3115, %v3684_v5  }
 0x49b   :  { %3116 = vset.pattern.permute.xlu0 %v3409_v13 }
 0x4ae   :  { %v1008_v16 = vpop.trf.xlu1  ;;  %v1040_v8 = vpop.trf.xlu0 }
 0x4af   :  { %3028 = vmatmul.mubr.msk.f32.vlgmr.msra.gmra.mxu1 %vm134_vm2, %v1008_v16 }
 0x4b0   :  { %1222 = vmatprep.mubr.f32.mxu1 %v4501_v1 }
 0x4b2   :  { %v1009_v21 = vpop.trf.xlu1  ;;  %v1041_v9 = vpop.trf.xlu0 }
 0x4b3   :  { %3029 = vmatmul.mubr.msk.f32.gmra.mxu1 %vm134_vm2, %v1009_v21 }
 0x4b4   :  { %1228 = vmatprep.mubr.f32.mxu1 %v4501_v1 }
 0x4b6   :  { %v1010_v7 = vpop.trf.xlu1  ;;  %v1042_v13 = vpop.trf.xlu0 }
 0x4b7   :  { %3030 = vmatmul.mubr.msk.f32.gmra.mxu1 %vm134_vm2, %v1010_v7 }
 0x4b8   :  { %1234 = vmatprep.mubr.f32.mxu1 %v4501_v1 }
 0x4ba   :  { %v1011_v10 = vpop.trf.xlu1  ;;  %v1043_v15 = vpop.trf.xlu0 }
 0x4bb   :  { %3031 = vmatmul.mubr.msk.f32.gmra.mxu1 %vm134_vm2, %v1011_v10 }
 0x4bc   :  { %1240 = vmatprep.mubr.f32.mxu1 %v4501_v1 }
 0x4be   :  { %v1012_v11 = vpop.trf.xlu1  ;;  %v1044_v20 = vpop.trf.xlu0 }
 0x4bf   :  { %3032 = vmatmul.mubr.msk.f32.gmra.mxu1 %vm134_vm2, %v1012_v11 }
 0x4c0   :  { %1246 = vmatprep.mubr.f32.mxu1 %v4501_v1 }
 0x4c2   :  { %v1013_v14 = vpop.trf.xlu1  ;;  %v1045_v24 = vpop.trf.xlu0 }
 0x4c3   :  { %3033 = vmatmul.mubr.msk.f32.gmra.mxu1 %vm134_vm2, %v1013_v14 }
 0x4c4   :  { %1252 = vmatprep.mubr.f32.mxu1 %v4501_v1 }
 0x4c6   :  { %v1014_v17 = vpop.trf.xlu1  ;;  %v1046_v29 = vpop.trf.xlu0 }
 0x4c7   :  { %3034 = vmatmul.mubr.msk.f32.gmra.mxu1 %vm134_vm2, %v1014_v17 }
 0x4c8   :  { %1258 = vmatprep.mubr.f32.mxu1 %v4501_v1 }
 0x4ca   :  { %v1015_v19 = vpop.trf.xlu1  ;;  %v1047_v36 = vpop.trf.xlu0 }
 0x4cb   :  { %3035 = vmatmul.mubr.msk.f32.gmra.mxu1 %vm134_vm2, %v1015_v19 }
 0x4cc   :  { %1264 = vmatprep.mubr.f32.mxu1 %v4501_v1 }
 0x4ce   :  { %v1016_v22 = vpop.trf.xlu1  ;;  %v1048_v39 = vpop.trf.xlu0 }
 0x4cf   :  { %3036 = vmatmul.mubr.msk.f32.gmra.mxu1 %vm134_vm2, %v1016_v22 }
 0x4d0   :  { %1270 = vmatprep.mubr.f32.mxu1 %v4501_v1 }
 0x4d2   :  { %v1017_v25 = vpop.trf.xlu1  ;;  %v1049_v18 = vpop.trf.xlu0 }
 0x4d3   :  { %3037 = vmatmul.mubr.msk.f32.gmra.mxu1 %vm134_vm2, %v1017_v25 }
 0x4d4   :  { %1276 = vmatprep.mubr.f32.mxu1 %v4501_v1 }
 0x4d6   :  { %v1018_v27 = vpop.trf.xlu1  ;;  %v1050_v26 = vpop.trf.xlu0 }
 0x4d7   :  { %3038 = vmatmul.mubr.msk.f32.gmra.mxu1 %vm134_vm2, %v1018_v27 }
 0x4d8   :  { %1282 = vmatprep.mubr.f32.mxu1 %v4501_v1 }
 0x4da   :  { %v1019_v30 = vpop.trf.xlu1  ;;  %v1051_v28 = vpop.trf.xlu0 }
 0x4db   :  { %3039 = vmatmul.mubr.msk.f32.gmra.mxu1 %vm134_vm2, %v1019_v30 }
 0x4dc   :  { %1288 = vmatprep.mubr.f32.mxu1 %v4501_v1 }
 0x4de   :  { %v1020_v37 = vpop.trf.xlu1  ;;  %v1052_v31 = vpop.trf.xlu0 }
 0x4df   :  { %3040 = vmatmul.mubr.msk.f32.gmra.mxu1 %vm134_vm2, %v1020_v37 }
 0x4e0   :  { %1294 = vmatprep.mubr.f32.mxu1 %v4501_v1 }
 0x4e2   :  { %v1021_v38 = vpop.trf.xlu1  ;;  %v1053_v32 = vpop.trf.xlu0 }
 0x4e3   :  { %3041 = vmatmul.mubr.msk.f32.gmra.mxu1 %vm134_vm2, %v1021_v38 }
 0x4e4   :  { %1300 = vmatprep.mubr.f32.mxu1 %v4501_v1 }
 0x4e6   :  { %v1022_v40 = vpop.trf.xlu1  ;;  %v1054_v42 = vpop.trf.xlu0 }
 0x4e7   :  { %3042 = vmatmul.mubr.msk.f32.gmra.mxu1 %vm134_vm2, %v1022_v40 }
 0x4e8   :  { %1306 = vmatprep.mubr.f32.mxu1 %v4501_v1 }
 0x4ea   :  { %v1023_v41 = vpop.trf.xlu1  ;;  %v1055_v46 = vpop.trf.xlu0 }
 0x4eb   :  { %3043 = vmatmul.mubr.msk.f32.gmra.mxu1 %vm134_vm2, %v1023_v41 }
 0x4ec   :  { %1312 = vmatprep.mubr.f32.mxu1 %v4501_v1 }
 0x4ef   :  { %3044 = vmatmul.mubr.msk.f32.gmra.mxu1 %vm134_vm2, %v1040_v8 }
 0x4f0   :  { %1318 = vmatprep.mubr.f32.mxu1 %v4501_v1 }
 0x4f3   :  { %3045 = vmatmul.mubr.msk.f32.gmra.mxu1 %vm134_vm2, %v1041_v9 }
 0x4f4   :  { %1324 = vmatprep.mubr.f32.mxu1 %v4501_v1 }
 0x4f7   :  { %3046 = vmatmul.mubr.msk.f32.gmra.mxu1 %vm134_vm2, %v1042_v13 }
 0x4f8   :  { %1330 = vmatprep.mubr.f32.mxu1 %v4501_v1 }
 0x4fb   :  { %3047 = vmatmul.mubr.msk.f32.gmra.mxu1 %vm134_vm2, %v1043_v15 }
 0x4fc   :  { %1336 = vmatprep.mubr.f32.mxu1 %v4501_v1 }
 0x4ff   :  { %3048 = vmatmul.mubr.msk.f32.gmra.mxu1 %vm134_vm2, %v1044_v20 }
 0x500   :  { %1342 = vmatprep.mubr.f32.mxu1 %v4501_v1 }
 0x503   :  { %3049 = vmatmul.mubr.msk.f32.gmra.mxu1 %vm134_vm2, %v1045_v24 }
 0x504   :  { %1348 = vmatprep.mubr.f32.mxu1 %v4501_v1 }
 0x507   :  { %3050 = vmatmul.mubr.msk.f32.gmra.mxu1 %vm134_vm2, %v1046_v29 }
 0x508   :  { %1354 = vmatprep.mubr.f32.mxu1 %v4501_v1 }
 0x50b   :  { %3051 = vmatmul.mubr.msk.f32.gmra.mxu1 %vm134_vm2, %v1047_v36 }
 0x50c   :  { %1360 = vmatprep.mubr.f32.mxu1 %v4501_v1 }
 0x50f   :  { %3052 = vmatmul.mubr.msk.f32.gmra.mxu1 %vm134_vm2, %v1048_v39 }
 0x510   :  { %1366 = vmatprep.mubr.f32.mxu1 %v4501_v1 }
 0x512   :  { %v437_v35 = vpop.permute.xlu0 %436 }
 0x513   :  { %3053 = vmatmul.mubr.msk.f32.gmra.mxu1 %vm134_vm2, %v1049_v18  ;;  %v3744_v57 = vadd.f32 %v437_v35, %v3578_v12  ;;  %v3746_v60 = vadd.f32 %v437_v35, %v424_v48  ;;  %v3751_v54 = vadd.f32 %v861_v51, %v437_v35  ;;  %v3753_v23 = vadd.f32 %v862_v56, %v437_v35 }
 0x514   :  { %1372 = vmatprep.mubr.f32.mxu1 %v4501_v1 }
 0x515   :  { %4570 = vst [vmem:[#allocation12_spill] sm:$0xff] %v3744_v57  ;;  %4571 = vst [vmem:[#allocation13_spill] sm:$0xff] %v3746_v60  ;;  %v457_v61 = vadd.f32 %v3746_v60, %v3744_v57  ;;  %v881_v12 = vadd.f32 %v3753_v23, %v3751_v54  ;;  %v468_v43 = vmul.f32 %v3746_v60, %v3746_v60 }
 0x516   :  { %4572 = vst [vmem:[#allocation14_spill] sm:$0xff] %v3751_v54  ;;  %4573 = vst [vmem:[#allocation15_spill] sm:$0xff] %v3753_v23  ;;  %v891_v48 = vmul.f32 %v3751_v54, %v3751_v54  ;;  %v892_v49 = vmul.f32 %v3753_v23, %v3753_v23 }
 0x517   :  { %3054 = vmatmul.mubr.msk.f32.gmra.mxu1 %vm134_vm2, %v1050_v26  ;;  %458 = vadd.xlane.f32.xlu1 %v457_v61 }
 0x518   :  { %1378 = vmatprep.mubr.f32.mxu1 %v4501_v1  ;;  %v899_v56 = vadd.f32 %v892_v49, %v891_v48 }
 0x51b   :  { %3055 = vmatmul.mubr.msk.f32.gmra.mxu1 %vm134_vm2, %v1051_v28  ;;  %882 = vadd.xlane.f32.xlu1 %v881_v12 }
 0x51c   :  { %1384 = vmatprep.mubr.f32.mxu1 %v4501_v1 }
 0x51f   :  { %3056 = vmatmul.mubr.msk.f32.gmra.mxu1 %vm134_vm2, %v1052_v31 }
 0x520   :  { %1390 = vmatprep.mubr.f32.mxu1 %v4501_v1 }
 0x523   :  { %3057 = vmatmul.mubr.msk.f32.gmra.mxu1 %vm134_vm2, %v1053_v32 }
 0x524   :  { %1396 = vmatprep.mubr.f32.mxu1 %v4501_v1 }
 0x527   :  { %3058 = vmatmul.mubr.msk.f32.gmra.mxu1 %vm134_vm2, %v1054_v42  ;;  %v467_v42 = vmul.f32 %v3744_v57, %v3744_v57 }
 0x528   :  { %1402 = vmatprep.mubr.f32.mxu1 %v4501_v1 }
 0x529   :  { %v475_v47 = vadd.f32 %v468_v43, %v467_v42 }
 0x52b   :  { %3059 = vmatmul.mubr.msk.f32.gmra.mxu1 %vm134_vm2, %v1055_v46 }
 0x56f   :  { %v3768_v44 = vpop.f32.mrf.mxu1 }
 0x570   :  { %4574 = vst [vmem:[#allocation16_spill] sm:$0xff] %v3768_v44 }
 0x571   :  { %v3770_v45 = vpop.f32.mrf.mxu1 }
 0x572   :  { %4575 = vst [vmem:[#allocation17_spill] sm:$0xff] %v3770_v45  ;;  %v1409_v48 = vmax.f32 %v3768_v44, %v3770_v45 }
 0x573   :  { %v3772_v6 = vpop.f32.mrf.mxu1 }
 0x574   :  { %4576 = vst [vmem:[#allocation18_spill] sm:$0xff] %v3772_v6 }
 0x575   :  { %v3774_v62 = vpop.f32.mrf.mxu1 }
 0x576   :  { %4577 = vst [vmem:[#allocation19_spill] sm:$0xff] %v3774_v62 }
 0x577   :  { %v3776_v0 = vpop.f32.mrf.mxu1 }
 0x578   :  { %4578 = vst [vmem:[#allocation20_spill] sm:$0xff] %v3776_v0 }
 0x579   :  { %v3778_v2 = vpop.f32.mrf.mxu1 }
 0x57a   :  { %4579 = vst [vmem:[#allocation21_spill] sm:$0xff] %v3778_v2  ;;  %v1415_v42 = vmax.f32 %v3776_v0, %v3778_v2 }
 0x57b   :  { %v3780_v16 = vpop.f32.mrf.mxu1 }
 0x57d   :  { %v3782_v21 = vpop.f32.mrf.mxu1 }
 0x57f   :  { %v3784_v8 = vpop.f32.mrf.mxu1 }
 0x581   :  { %v3786_v7 = vpop.f32.mrf.mxu1 }
 0x583   :  { %v3788_v9 = vpop.f32.mrf.mxu1 }
 0x585   :  { %v3790_v10 = vpop.f32.mrf.mxu1 }
 0x587   :  { %v3792_v11 = vpop.f32.mrf.mxu1 }
 0x589   :  { %v3794_v13 = vpop.f32.mrf.mxu1 }
 0x58a   :  { %v1427_v51 = vmax.f32 %v3792_v11, %v3794_v13 }
 0x58b   :  { %v3796_v14 = vpop.f32.mrf.mxu1 }
 0x58d   :  { %v3798_v15 = vpop.f32.mrf.mxu1 }
 0x58f   :  { %v3800_v17 = vpop.f32.mrf.mxu1 }
 0x591   :  { %v3802_v19 = vpop.f32.mrf.mxu1 }
 0x592   :  { %v1433_v34 = vmax.f32 %v3800_v17, %v3802_v19 }
 0x593   :  { %v3804_v20 = vpop.f32.mrf.mxu1 }
 0x595   :  { %v3806_v22 = vpop.f32.mrf.mxu1 }
 0x596   :  { %v1436_v49 = vmax.f32 %v3804_v20, %v3806_v22 }
 0x597   :  { %v3808_v24 = vpop.f32.mrf.mxu1 }
 0x599   :  { %v3810_v25 = vpop.f32.mrf.mxu1 }
 0x59a   :  { %v1439_v31 = vmax.f32 %v3808_v24, %v3810_v25 }
 0x59b   :  { %v3812_v27 = vpop.f32.mrf.mxu1 }
 0x59d   :  { %v3814_v29 = vpop.f32.mrf.mxu1 }
 0x59e   :  { %v1442_v43 = vmax.f32 %v3812_v27, %v3814_v29 }
 0x59f   :  { %v3816_v30 = vpop.f32.mrf.mxu1 }
 0x5a1   :  { %v3818_v36 = vpop.f32.mrf.mxu1 }
 0x5a3   :  { %v3820_v37 = vpop.f32.mrf.mxu1 }
 0x5a5   :  { %v3822_v38 = vpop.f32.mrf.mxu1 }
 0x5a6   :  { %v1448_v39 = vmax.f32 %v3820_v37, %v3822_v38 }
 0x5a7   :  { %v3826_v40 = vpop.f32.mrf.mxu1 }
 0x5a8   :  { %1449 = vmax.xlane.f32.xlu1 %v1448_v39  ;;  %v1421_v39 = vmax.f32 %v3784_v8, %v3786_v7 }
 0x5a9   :  { %v3828_v18 = vpop.f32.mrf.mxu1 }
 0x5aa   :  { %v1451_v41 = vmax.f32 %v3826_v40, %v3828_v18 }
 0x5ab   :  { %v3832_v26 = vpop.f32.mrf.mxu1 }
 0x5ac   :  { %1452 = vmax.xlane.f32.xlu0 %v1451_v41  ;;  %v1445_v41 = vmax.f32 %v3816_v30, %v3818_v36 }
 0x5ad   :  { %v3834_v28 = vpop.f32.mrf.mxu1 }
 0x5ae   :  { %v1454_v32 = vmax.f32 %v3832_v26, %v3834_v28 }
 0x5af   :  { %v3844_v33 = vpop.f32.mrf.mxu1 }
 0x5b0   :  { %4580 = vst [vmem:[#allocation22_spill] sm:$0xff] %v3844_v33  ;;  %1440 = vmax.xlane.f32.xlu0 %v1439_v31  ;;  %1455 = vmax.xlane.f32.xlu1 %v1454_v32 }
 0x5b1   :  { %v3846_v46 = vpop.f32.mrf.mxu1 }
 0x5b2   :  { %4581 = vst [vmem:[#allocation23_spill] sm:$0xff] %v3846_v46 }
 0x5b3   :  { %v3854_v50 = vpop.f32.mrf.mxu1 }
 0x5b4   :  { %4582 = vst [vmem:[#allocation24_spill] sm:$0xff] %v3854_v50  ;;  %1434 = vmax.xlane.f32.xlu0 %v1433_v34  ;;  %476 = vadd.xlane.f32.xlu1 %v475_v47 }
 0x5b5   :  { %v3856_v35 = vpop.f32.mrf.mxu1 }
 0x5b6   :  { %4583 = vst [vmem:[#allocation25_spill] sm:$0xff] %v3856_v35 }
 0x5b7   :  { %v3860_v61 = vpop.f32.mrf.mxu1 }
 0x5b8   :  { %4584 = vst [vmem:[#allocation26_spill] sm:$0xff] %v3860_v61  ;;  %1428 = vmax.xlane.f32.xlu0 %v1427_v51  ;;  %900 = vadd.xlane.f32.xlu1 %v899_v56 }
 0x5b9   :  { %v3862_v12 = vpop.f32.mrf.mxu1 }
 0x5ba   :  { %4585 = vst [vmem:[#allocation27_spill] sm:$0xff] %v3862_v12 }
 0x5bb   :  { %v3868_v31 = vpop.f32.mrf.mxu1 }
 0x5bc   :  { %4586 = vst [vmem:[#allocation28_spill] sm:$0xff] %v3868_v31  ;;  %1422 = vmax.xlane.f32.xlu0 %v1421_v39  ;;  %1446 = vmax.xlane.f32.xlu1 %v1445_v41  ;;  %v1430_v39 = vmax.f32 %v3796_v14, %v3798_v15 }
 0x5bd   :  { %v3870_v32 = vpop.f32.mrf.mxu1 }
 0x5be   :  { %4587 = vst [vmem:[#allocation29_spill] sm:$0xff] %v3870_v32 }
 0x5bf   :  { %v3876_v34 = vpop.f32.mrf.mxu1 }
 0x5c0   :  { %4588 = vst [vmem:[#allocation30_spill] sm:$0xff] %v3876_v34  ;;  %1416 = vmax.xlane.f32.xlu0 %v1415_v42  ;;  %1443 = vmax.xlane.f32.xlu1 %v1442_v43  ;;  %v1424_v43 = vmax.f32 %v3788_v9, %v3790_v10 }
 0x5c1   :  { %v3878_v47 = vpop.f32.mrf.mxu1 }
 0x5c2   :  { %4589 = vst [vmem:[#allocation31_spill] sm:$0xff] %v3878_v47 }
 0x5c3   :  { %v3884_v51 = vpop.f32.mrf.mxu1 }
 0x5c4   :  { %4590 = vst [vmem:[#allocation32_spill] sm:$0xff] %v3884_v51  ;;  %1410 = vmax.xlane.f32.xlu0 %v1409_v48  ;;  %1437 = vmax.xlane.f32.xlu1 %v1436_v49  ;;  %v1418_v48 = vmax.f32 %v3780_v16, %v3782_v21 }
 0x5c5   :  { %v3886_v56 = vpop.f32.mrf.mxu1 }
 0x5c6   :  { %4591 = vst [vmem:[#allocation33_spill] sm:$0xff] %v3886_v56 }
 0x5c7   :  { %v3890_v41 = vpop.f32.mrf.mxu1 }
 0x5c8   :  { %4592 = vst [vmem:[#allocation34_spill] sm:$0xff] %v3890_v41  ;;  %1431 = vmax.xlane.f32.xlu1 %v1430_v39  ;;  %v1412_v39 = vmax.f32 %v3772_v6, %v3774_v62 }
 0x5c9   :  { %v3892_v42 = vpop.f32.mrf.mxu1 }
 0x5cb   :  { %v3896_v1 = vpop.f32.mrf.mxu1 }
 0x5cc   :  { %1425 = vmax.xlane.f32.xlu1 %v1424_v43 }
 0x5cd   :  { %v3898_v54 = vpop.f32.mrf.mxu1 }
 0x5cf   :  { %v3902_v49 = vpop.f32.mrf.mxu1 }
 0x5d0   :  { %1419 = vmax.xlane.f32.xlu1 %v1418_v48 }
 0x5d1   :  { %v3904_v23 = vpop.f32.mrf.mxu1 }
 0x5d3   :  { %v3908_v63 = vpop.f32.mrf.mxu1 }
 0x5d4   :  { %1413 = vmax.xlane.f32.xlu1 %v1412_v39 }
 0x5d5   :  { %v3910_v58 = vpop.f32.mrf.mxu1 }
 0x5d7   :  { %v3912_v3 = vpop.f32.mrf.mxu1 }
 0x5d9   :  { %v3914_v43 = vpop.f32.mrf.mxu1 }
 0x5da   :  { %v1487_v0 = vmax.f32 %v3912_v3, %v3914_v43 }
 0x5db   :  { %v3916_v4 = vpop.f32.mrf.mxu1 }
 0x5dd   :  { %v3918_v60 = vpop.f32.mrf.mxu1 }
 0x5df   :  { %v3920_v57 = vpop.f32.mrf.mxu1 }
 0x5e0   :  { %4593 = vst [vmem:[#allocation35_spill] sm:$0xff] %v3920_v57 }
 0x5e1   :  { %v3922_v48 = vpop.f32.mrf.mxu1 }
 0x5e2   :  { %v1493_v45 = vmax.f32 %v3920_v57, %v3922_v48  ;;  %v1490_v57 = vmax.f32 %v3916_v4, %v3918_v60 }
 0x5e3   :  { %v3924_v55 = vpop.f32.mrf.mxu1 }
 0x5e5   :  { %v3926_v59 = vpop.f32.mrf.mxu1 }
 0x5e6   :  { %v1496_v2 = vmax.f32 %v3924_v55, %v3926_v59 }
 0x5e7   :  { %v3928_v52 = vpop.f32.mrf.mxu1 }
 0x5e9   :  { %v3930_v39 = vpop.f32.mrf.mxu1 }
 0x5ea   :  { %v1499_v53 = vmax.f32 %v3928_v52, %v3930_v39 }
 0x5eb   :  { %v3934_v44 = vpop.f32.mrf.mxu1 }
 0x5ec   :  { %1500 = vmax.xlane.f32.xlu0 %v1499_v53  ;;  %v1481_v53 = vmax.f32 %v3902_v49, %v3904_v23 }
 0x5ed   :  { %v3938_v6 = vpop.f32.mrf.mxu1 }
 0x5ee   :  { %v1502_v62 = vmax.f32 %v3934_v44, %v3938_v6 }
 0x5f0   :  { %1494 = vmax.xlane.f32.xlu0 %v1493_v45  ;;  %1503 = vmax.xlane.f32.xlu1 %v1502_v62  ;;  %v1475_v45 = vmax.f32 %v3890_v41, %v3892_v42  ;;  %v1484_v62 = vmax.f32 %v3908_v63, %v3910_v58 }
 0x5f4   :  { %1488 = vmax.xlane.f32.xlu0 %v1487_v0  ;;  %1497 = vmax.xlane.f32.xlu1 %v1496_v2  ;;  %v1478_v0 = vmax.f32 %v3896_v1, %v3898_v54  ;;  %v1472_v2 = vmax.f32 %v3884_v51, %v3886_v56 }
 0x5f8   :  { %1482 = vmax.xlane.f32.xlu0 %v1481_v53  ;;  %1491 = vmax.xlane.f32.xlu1 %v1490_v57  ;;  %v1469_v53 = vmax.f32 %v3876_v34, %v3878_v47  ;;  %v1466_v57 = vmax.f32 %v3868_v31, %v3870_v32 }
 0x5fc   :  { %1476 = vmax.xlane.f32.xlu0 %v1475_v45  ;;  %1485 = vmax.xlane.f32.xlu1 %v1484_v62  ;;  %v1463_v45 = vmax.f32 %v3860_v61, %v3862_v12  ;;  %v1460_v62 = vmax.f32 %v3854_v50, %v3856_v35 }
 0x600   :  { %1479 = vmax.xlane.f32.xlu1 %v1478_v0  ;;  %v1457_v0 = vmax.f32 %v3844_v33, %v3846_v46 }
 0x604   :  { %1473 = vmax.xlane.f32.xlu1 %v1472_v2  ;;  %v459_v2 = vpop.xlane.xlu1 %458 }
 0x608   :  { %1470 = vmax.xlane.f32.xlu1 %v1469_v53  ;;  %v883_v51 = vpop.xlane.xlu1 %882 }
 0x60c   :  { %1467 = vmax.xlane.f32.xlu1 %v1466_v57 }
 0x610   :  { %1464 = vmax.xlane.f32.xlu1 %v1463_v45  ;;  %v886_v45 = vadd.f32 %v883_v51, %v459_v2 }
 0x612   :  { %v3973_v46 = vmul.f32 0.001953125, %v886_v45 }
 0x614   :  { %1461 = vmax.xlane.f32.xlu1 %v1460_v62 }
 0x618   :  { %1458 = vmax.xlane.f32.xlu1 %v1457_v0 }
 0x631   :  { %v1450_v34 = vpop.xlane.xlu1 %1449 }
 0x632   :  { %v1532_v33 = vsub.f32 %v3822_v38, %v1450_v34  ;;  %v1531_v35 = vsub.f32 %v3820_v37, %v1450_v34 }
 0x634   :  { %v1623_v41 = vmul.f32 1.442695, %v1532_v33 }
 0x635   :  { %v1453_v53 = vpop.xlane.xlu0 %1452 }
 0x636   :  { %v1534_v57 = vsub.f32 %v3828_v18, %v1453_v53  ;;  %v1533_v62 = vsub.f32 %v3826_v40, %v1453_v53 }
 0x638   :  { %v1627_v0 = vmul.f32 1.442695, %v1534_v57  ;;  %v1625_v56 = vmul.f32 1.442695, %v1533_v62 }
 0x639   :  { %v1456_v47 = vpop.xlane.xlu1 %1455 }
 0x63a   :  { %v1535_v31 = vsub.f32 %v3832_v26, %v1456_v47  ;;  %v1536_v61 = vsub.f32 %v3834_v28, %v1456_v47  ;;  %v913_v28 = vmul.f32 %v3973_v46, %v3973_v46 }
 0x63c   :  { %v1629_v12 = vmul.f32 1.442695, %v1535_v31  ;;  %v1631_v32 = vmul.f32 1.442695, %v1536_v61  ;;  %v1621_v31 = vmul.f32 1.442695, %v1531_v35 }
 0x63d   :  { %v477_v50 = vpop.xlane.xlu1 %476 }
 0x63e   :  { %3135 = vpow2.f32 %v1629_v12 }
 0x63f   :  { %3137 = vpow2.f32 %v1631_v32  ;;  %v1441_v32 = vpop.xlane.xlu0 %1440 }
 0x640   :  { %3139 = vpow2.f32 %v1627_v0  ;;  %v1526_v35 = vsub.f32 %v3810_v25, %v1441_v32  ;;  %v1525_v57 = vsub.f32 %v3808_v24, %v1441_v32 }
 0x641   :  { %v901_v26 = vpop.xlane.xlu1 %900  ;;  %3141 = vpow2.f32 %v1625_v56 }
 0x642   :  { %v904_v18 = vadd.f32 %v901_v26, %v477_v50  ;;  %3143 = vpow2.f32 %v1623_v41  ;;  %v1611_v62 = vmul.f32 1.442695, %v1526_v35  ;;  %v1609_v0 = vmul.f32 1.442695, %v1525_v57 }
 0x643   :  { %3145 = vpow2.f32 %v1621_v31 }
 0x644   :  { %v910_v61 = vmul.f32 0.001953125, %v904_v18 }
 0x645   :  { %v1447_v40 = vpop.xlane.xlu1 %1446 }
 0x646   :  { %v916_v38 = vsub.f32 %v910_v61, %v913_v28  ;;  %v1529_v47 = vsub.f32 %v3816_v30, %v1447_v40  ;;  %v1530_v12 = vsub.f32 %v3818_v36, %v1447_v40 }
 0x648   :  { %v919_v37 = vadd.f32 1e-05, %v916_v38  ;;  %v1617_v34 = vmul.f32 1.442695, %v1529_v47  ;;  %v1619_v33 = vmul.f32 1.442695, %v1530_v12 }
 0x649   :  { %v1444_v50 = vpop.xlane.xlu1 %1443 }
 0x64a   :  { %3147 = vrsqrt.f32 %v919_v37  ;;  %v1527_v51 = vsub.f32 %v3812_v27, %v1444_v50  ;;  %v1528_v2 = vsub.f32 %v3814_v29, %v1444_v50  ;;  %v1435_v29 = vpop.xlane.xlu0 %1434 }
 0x64b   :  { %v3136_v56 = vpop.eup %3135  ;;  %3149 = vpow2.f32 %v1617_v34  ;;  %v1522_v24 = vsub.f32 %v3802_v19, %v1435_v29  ;;  %v1521_v40 = vsub.f32 %v3800_v17, %v1435_v29 }
 0x64c   :  { %v1613_v41 = vmul.f32 1.442695, %v1527_v51  ;;  %v3138_v30 = vpop.eup %3137  ;;  %3151 = vpow2.f32 %v1619_v33  ;;  %v1615_v36 = vmul.f32 1.442695, %v1528_v2 }
 0x64d   :  { %v1438_v53 = vpop.xlane.xlu1 %1437  ;;  %1697 = vmatprep.subr.mxu0 %v3138_v30  ;;  %1768 = vmatprep.subr.mxu1 %v3138_v30  ;;  %v3140_v45 = vpop.eup %3139  ;;  %v1603_v47 = vmul.f32 1.442695, %v1522_v24  ;;  %v1601_v50 = vmul.f32 1.442695, %v1521_v40 }
 0x64e   :  { %1698 = vmatpush1.xpose.msra.mxu0 %v3136_v56  ;;  %1769 = vmatpush1.xpose.msra.mxu1 %v3136_v56  ;;  %v1524_v27 = vsub.f32 %v3806_v22, %v1438_v53  ;;  %3153 = vpow2.f32 %v1613_v41  ;;  %v3142_v25 = vpop.eup %3141  ;;  %v1523_v26 = vsub.f32 %v3804_v20, %v1438_v53  ;;  %v1429_v12 = vpop.xlane.xlu0 %1428 }
 0x64f   :  { %1699 = vmatprep.subr.mxu0 %v3140_v45  ;;  %1770 = vmatprep.subr.mxu1 %v3140_v45  ;;  %3155 = vpow2.f32 %v1615_v36  ;;  %v3144_v18 = vpop.eup %3143  ;;  %v1518_v17 = vsub.f32 %v3794_v13, %v1429_v12 }
 0x650   :  { %3157 = vpow2.f32 %v1611_v62  ;;  %v1607_v28 = vmul.f32 1.442695, %v1524_v27  ;;  %v3146_v22 = vpop.eup %3145  ;;  %v1605_v38 = vmul.f32 1.442695, %v1523_v26 }
 0x651   :  { %v1432_v61 = vpop.xlane.xlu1 %1431  ;;  %3159 = vpow2.f32 %v1609_v0  ;;  %v1595_v56 = vmul.f32 1.442695, %v1518_v17  ;;  %v4598_v17 = vld [vmem:[#allocation17_spill] sm:$0xff] }
 0x652   :  { %1700 = vmatpush1.xpose.msra.mxu0 %v3142_v25  ;;  %1771 = vmatpush1.xpose.msra.mxu1 %v3142_v25  ;;  %3161 = vpow2.f32 %v1607_v28  ;;  %v1520_v20 = vsub.f32 %v3798_v15, %v1432_v61  ;;  %v1519_v33 = vsub.f32 %v3796_v14, %v1432_v61  ;;  %v1423_v41 = vpop.xlane.xlu0 %1422  ;;  %v4594_v28 = vld [vmem:[#allocation21_spill] sm:$0xff] }
 0x653   :  { %1701 = vmatprep.subr.mxu0 %v3144_v18  ;;  %1772 = vmatprep.subr.mxu1 %v3144_v18  ;;  %3163 = vpow2.f32 %v1605_v38  ;;  %v1513_v62 = vsub.f32 %v3784_v8, %v1423_v41 }
 0x654   :  { %3165 = vpow2.f32 %v1603_v47  ;;  %v1599_v51 = vmul.f32 1.442695, %v1520_v20  ;;  %v1597_v35 = vmul.f32 1.442695, %v1519_v33 }
 0x655   :  { %v1426_v15 = vpop.xlane.xlu1 %1425  ;;  %3167 = vpow2.f32 %v1601_v50 }
 0x656   :  { %1702 = vmatpush1.xpose.msra.mxu0 %v3146_v22  ;;  %1773 = vmatpush1.xpose.msra.mxu1 %v3146_v22  ;;  %3169 = vpow2.f32 %v1599_v51  ;;  %v1516_v14 = vsub.f32 %v3790_v10, %v1426_v15  ;;  %v1515_v30 = vsub.f32 %v3788_v9, %v1426_v15  ;;  %v1417_v26 = vpop.xlane.xlu0 %1416 }
 0x657   :  { %v3148_v31 = vpop.eup %3147  ;;  %3171 = vpow2.f32 %v1597_v35  ;;  %v1510_v8 = vsub.f32 %v4594_v28, %v1417_v26 }
 0x658   :  { %v925_v19 = vmul.f32 %v3148_v31, %v3684_v5  ;;  %v3150_v37 = vpop.eup %3149  ;;  %3173 = vpow2.f32 %v1595_v56  ;;  %v1591_v57 = vmul.f32 1.442695, %v1516_v14  ;;  %v1589_v27 = vmul.f32 1.442695, %v1515_v30 }
 0x659   :  { %v3152_v34 = vpop.eup %3151  ;;  %v1420_v10 = vpop.xlane.xlu1 %1419  ;;  %v1579_v20 = vmul.f32 1.442695, %v1510_v8 }
 0x65a   :  { %v928_v32 = vmul.f32 %v925_v19, %v3973_v46  ;;  %1703 = vmatprep.subr.mxu0 %v3152_v34  ;;  %1774 = vmatprep.subr.mxu1 %v3152_v34  ;;  %v1517_v46 = vsub.f32 %v3792_v11, %v1429_v12  ;;  %v1514_v11 = vsub.f32 %v3786_v7, %v1423_v41  ;;  %v1585_v7 = vmul.f32 1.442695, %v1513_v62  ;;  %v4597_v34 = vld [vmem:[#allocation18_spill] sm:$0xff] }
 0x65b   :  { %1704 = vmatpush1.xpose.msra.mxu0 %v3150_v37  ;;  %1775 = vmatpush1.xpose.msra.mxu1 %v3150_v37  ;;  %v3154_v2 = vpop.eup %3153  ;;  %v1512_v9 = vsub.f32 %v3782_v21, %v1420_v10  ;;  %v1511_v18 = vsub.f32 %v3780_v16, %v1420_v10  ;;  %v4595_v21 = vld [vmem:[#allocation20_spill] sm:$0xff]  ;;  %v1411_v37 = vpop.xlane.xlu0 %1410 }
 0x65c   :  { %936 = vrot.lane.b32.xlu0 %v928_v32, %s3410_s2  ;;  %v3156_v5 = vpop.eup %3155  ;;  %v1593_v53 = vmul.f32 1.442695, %v1517_v46  ;;  %v1587_v25 = vmul.f32 1.442695, %v1514_v11  ;;  %v1509_v40 = vsub.f32 %v4595_v21, %v1417_v26  ;;  %v1506_v51 = vsub.f32 %v4598_v17, %v1411_v37 }
 0x65d   :  { %1705 = vmatprep.subr.mxu0 %v3156_v5  ;;  %1776 = vmatprep.subr.mxu1 %v3156_v5  ;;  %v3158_v13 = vpop.eup %3157  ;;  %v1583_v61 = vmul.f32 1.442695, %v1512_v9  ;;  %v1414_v31 = vpop.xlane.xlu1 %1413  ;;  %v1581_v38 = vmul.f32 1.442695, %v1511_v18  ;;  %v4599_v5 = vld [vmem:[#allocation16_spill] sm:$0xff]  ;;  %v4539_v26 = vmov 1.0  }
 0x65e   :  { %v3160_v36 = vpop.eup %3159  ;;  %3175 = vpow2.f32 %v1593_v53  ;;  %v1577_v32 = vmul.f32 1.442695, %v1509_v40  ;;  %v1507_v50 = vsub.f32 %v4597_v34, %v1414_v31  ;;  %v1505_v46 = vsub.f32 %v4599_v5, %v1411_v37  ;;  %v4601_v9 = vld [vmem:[#allocation8_spill] sm:$0xff]  ;;  %1761 = vmatprep.mubr.f32.mxu0 %v4539_v26 }
 0x65f   :  { %1706 = vmatpush1.xpose.msra.mxu0 %v3154_v2  ;;  %1777 = vmatpush1.xpose.msra.mxu1 %v3154_v2  ;;  %v3162_v45 = vpop.eup %3161  ;;  %3177 = vpow2.f32 %v1591_v57  ;;  %v1571_v14 = vmul.f32 1.442695, %v1506_v51 }
 0x660   :  { %1707 = vmatprep.subr.mxu0 %v3158_v13  ;;  %1778 = vmatprep.subr.mxu1 %v3158_v13  ;;  %v3164_v29 = vpop.eup %3163  ;;  %3179 = vpow2.f32 %v1589_v27  ;;  %v1573_v35 = vmul.f32 1.442695, %v1507_v50 }
 0x661   :  { %962 = vperm.xlu0 %3116, %v925_v19   ;;  %v3166_v0 = vpop.eup %3165  ;;  %3181 = vpow2.f32 %v1587_v25  ;;  %v4596_v19 = vld [vmem:[#allocation19_spill] sm:$0xff]  ;;  %v4600_v25 = vld [vmem:[#allocation4_spill] sm:$0xff] }
 0x662   :  { %v3168_v24 = vpop.eup %3167  ;;  %3183 = vpow2.f32 %v1585_v7  ;;  %v1508_v16 = vsub.f32 %v4596_v19, %v1414_v31  ;;  %v4602_v7 = vld [vmem:[#allocation9_spill] sm:$0xff] }
 0x663   :  { %1708 = vmatpush1.xpose.msra.mxu0 %v3160_v36  ;;  %1779 = vmatpush1.xpose.msra.mxu1 %v3160_v36  ;;  %v3170_v22 = vpop.eup %3169  ;;  %3185 = vpow2.f32 %v1583_v61  ;;  %v1569_v36 = vmul.f32 1.442695, %v1505_v46 }
 0x664   :  { %1709 = vmatprep.subr.mxu0 %v3162_v45  ;;  %1780 = vmatprep.subr.mxu1 %v3162_v45  ;;  %v3172_v47 = vpop.eup %3171  ;;  %3187 = vpow2.f32 %v1581_v38  ;;  %v1575_v15 = vmul.f32 1.442695, %v1508_v16 }
 0x665   :  { %v3174_v12 = vpop.eup %3173  ;;  %3189 = vpow2.f32 %v1579_v20 }
 0x666   :  { %3191 = vpow2.f32 %v1577_v32 }
 0x667   :  { %1710 = vmatpush1.xpose.msra.mxu0 %v3164_v29  ;;  %1781 = vmatpush1.xpose.msra.mxu1 %v3164_v29  ;;  %3193 = vpow2.f32 %v1575_v15 }
 0x668   :  { %1711 = vmatprep.subr.mxu0 %v3166_v0  ;;  %1782 = vmatprep.subr.mxu1 %v3166_v0  ;;  %3195 = vpow2.f32 %v1573_v35  ;;  %v1966_v0 = vmul.f32 %v4601_v9, %v4600_v25 }
 0x669   :  { %3197 = vpow2.f32 %v1571_v14 }
 0x66a   :  { %3199 = vpow2.f32 %v1569_v36 }
 0x66b   :  { %1712 = vmatpush1.xpose.msra.mxu0 %v3168_v24  ;;  %1783 = vmatpush1.xpose.msra.mxu1 %v3168_v24  ;;  %v3176_v33 = vpop.eup %3175 }
 0x66c   :  { %1713 = vmatprep.subr.mxu0 %v3170_v22  ;;  %1784 = vmatprep.subr.mxu1 %v3170_v22  ;;  %v3178_v2 = vpop.eup %3177 }
 0x66d   :  { %v3180_v56 = vpop.eup %3179 }
 0x66e   :  { %v3182_v13 = vpop.eup %3181 }
 0x66f   :  { %1714 = vmatpush1.xpose.msra.mxu0 %v3172_v47  ;;  %1785 = vmatpush1.xpose.msra.mxu1 %v3172_v47  ;;  %v3184_v57 = vpop.eup %3183 }
 0x670   :  { %1715 = vmatprep.subr.mxu0 %v3174_v12  ;;  %1786 = vmatprep.subr.mxu1 %v3174_v12  ;;  %v3186_v62 = vpop.eup %3185 }
 0x673   :  { %1716 = vmatpush1.xpose.msra.mxu0 %v3176_v33  ;;  %1787 = vmatpush1.xpose.msra.mxu1 %v3176_v33 }
 0x674   :  { %1717 = vmatprep.subr.mxu0 %v3178_v2  ;;  %1788 = vmatprep.subr.mxu1 %v3178_v2 }
 0x675   :  { %v1501_v41 = vpop.xlane.xlu0 %1500 }
 0x676   :  { %v1566_v45 = vsub.f32 %v3930_v39, %v1501_v41  ;;  %v1972_v39 = vadd.f32 %v1966_v0, %v4602_v7 }
 0x677   :  { %1718 = vmatpush1.xpose.msra.mxu0 %v3180_v56  ;;  %1789 = vmatpush1.xpose.msra.mxu1 %v3180_v56 }
 0x678   :  { %1719 = vmatprep.subr.mxu0 %v3182_v13  ;;  %1790 = vmatprep.subr.mxu1 %v3182_v13  ;;  %v1691_v18 = vmul.f32 1.442695, %v1566_v45 }
 0x679   :  { %v1504_v53 = vpop.xlane.xlu1 %1503  ;;  %v1495_v8 = vpop.xlane.xlu0 %1494 }
 0x67a   :  { %v1567_v30 = vsub.f32 %v3934_v44, %v1504_v53  ;;  %v1568_v11 = vsub.f32 %v3938_v6, %v1504_v53  ;;  %v1565_v44 = vsub.f32 %v3928_v52, %v1501_v41  ;;  %v3188_v6 = vpop.eup %3187  ;;  %v1562_v21 = vsub.f32 %v3922_v48, %v1495_v8 }
 0x67b   :  { %1720 = vmatpush1.xpose.msra.mxu0 %v3184_v57  ;;  %1791 = vmatpush1.xpose.msra.mxu1 %v3184_v57  ;;  %v3190_v28 = vpop.eup %3189 }
 0x67c   :  { %v1693_v10 = vmul.f32 1.442695, %v1567_v30  ;;  %v1695_v27 = vmul.f32 1.442695, %v1568_v11  ;;  %1721 = vmatprep.subr.mxu0 %v3186_v62  ;;  %1792 = vmatprep.subr.mxu1 %v3186_v62  ;;  %v1689_v22 = vmul.f32 1.442695, %v1565_v44  ;;  %v3192_v31 = vpop.eup %3191 }
 0x67d   :  { %v1498_v29 = vpop.xlane.xlu1 %1497  ;;  %v3194_v38 = vpop.eup %3193  ;;  %v1683_v12 = vmul.f32 1.442695, %v1562_v21  ;;  %v4607_v21 = vld [vmem:[#allocation31_spill] sm:$0xff] }
 0x67e   :  { %3201 = vpow2.f32 %v1693_v10  ;;  %v1564_v24 = vsub.f32 %v3926_v59, %v1498_v29  ;;  %v1563_v52 = vsub.f32 %v3924_v55, %v1498_v29  ;;  %v4603_v59 = vld [vmem:[#allocation35_spill] sm:$0xff]  ;;  %v3196_v16 = vpop.eup %3195  ;;  %v1489_v32 = vpop.xlane.xlu0 %1488 }
 0x67f   :  { %3203 = vpow2.f32 %v1695_v27  ;;  %1722 = vmatpush1.xpose.msra.mxu0 %v3188_v6  ;;  %1793 = vmatpush1.xpose.msra.mxu1 %v3188_v6  ;;  %v1561_v47 = vsub.f32 %v4603_v59, %v1495_v8  ;;  %v3198_v37 = vpop.eup %3197  ;;  %v1558_v33 = vsub.f32 %v3914_v43, %v1489_v32  ;;  %v1557_v2 = vsub.f32 %v3912_v3, %v1489_v32 }
 0x680   :  { %1978 = vxpose.xlu0.b32.start.end [1/1] (short) %v1972_v39, 128  ;;  %1723 = vmatprep.subr.mxu0 %v3190_v28  ;;  %3205 = vpow2.f32 %v1691_v18  ;;  %v1687_v40 = vmul.f32 1.442695, %v1564_v24  ;;  %v1685_v20 = vmul.f32 1.442695, %v1563_v52  ;;  %v3200_v50 = vpop.eup %3199 }
 0x681   :  { %v1492_v61 = vpop.xlane.xlu1 %1491  ;;  %1794 = vmatprep.subr.mxu1 %v3190_v28  ;;  %3207 = vpow2.f32 %v1689_v22  ;;  %v1681_v48 = vmul.f32 1.442695, %v1561_v47  ;;  %v1675_v46 = vmul.f32 1.442695, %v1558_v33  ;;  %v1673_v43 = vmul.f32 1.442695, %v1557_v2 }
 0x682   :  { %3209 = vpow2.f32 %v1687_v40  ;;  %v1560_v55 = vsub.f32 %v3918_v60, %v1492_v61  ;;  %v1559_v34 = vsub.f32 %v3916_v4, %v1492_v61  ;;  %v1483_v56 = vpop.xlane.xlu0 %1482  ;;  %v4606_v61 = vld [vmem:[#allocation32_spill] sm:$0xff] }
 0x683   :  { %1724 = vmatpush1.xpose.msra.mxu0 %v3192_v31  ;;  %1795 = vmatpush1.xpose.msra.mxu1 %v3192_v31  ;;  %3211 = vpow2.f32 %v1685_v20  ;;  %v1554_v41 = vsub.f32 %v3904_v23, %v1483_v56  ;;  %v4608_v20 = vld [vmem:[#allocation30_spill] sm:$0xff] }
 0x684   :  { %1725 = vmatprep.subr.mxu0 %v3194_v38  ;;  %1796 = vmatprep.subr.mxu1 %v3194_v38  ;;  %3213 = vpow2.f32 %v1683_v12  ;;  %v1679_v17 = vmul.f32 1.442695, %v1560_v55  ;;  %v1677_v5 = vmul.f32 1.442695, %v1559_v34  ;;  %v4609_v55 = vld [vmem:[#allocation29_spill] sm:$0xff]  ;;  %v4610_v34 = vld [vmem:[#allocation28_spill] sm:$0xff] }
 0x685   :  { %v1486_v19 = vpop.xlane.xlu1 %1485  ;;  %3215 = vpow2.f32 %v1681_v48  ;;  %v1667_v57 = vmul.f32 1.442695, %v1554_v41 }
 0x686   :  { %3217 = vpow2.f32 %v1679_v17  ;;  %v1556_v4 = vsub.f32 %v3910_v58, %v1486_v19  ;;  %v1555_v14 = vsub.f32 %v3908_v63, %v1486_v19  ;;  %v1553_v58 = vsub.f32 %v3902_v49, %v1483_v56  ;;  %v1477_v10 = vpop.xlane.xlu0 %1476 }
 0x687   :  { %1726 = vmatpush1.xpose.msra.mxu0 %v3196_v16  ;;  %1797 = vmatpush1.xpose.msra.mxu1 %v3196_v16  ;;  %3219 = vpow2.f32 %v1677_v5  ;;  %v1550_v49 = vsub.f32 %v3892_v42, %v1477_v10 }
 0x688   :  { %1727 = vmatprep.subr.mxu0 %v3198_v37  ;;  %1798 = vmatprep.subr.mxu1 %v3198_v37  ;;  %3221 = vpow2.f32 %v1675_v46  ;;  %v1671_v53 = vmul.f32 1.442695, %v1556_v4  ;;  %v1669_v36 = vmul.f32 1.442695, %v1555_v14  ;;  %v1665_v23 = vmul.f32 1.442695, %v1553_v58 }
 0x689   :  { %v1480_v15 = vpop.xlane.xlu1 %1479  ;;  %3223 = vpow2.f32 %v1673_v43  ;;  %v1659_v24 = vmul.f32 1.442695, %v1550_v49  ;;  %v4612_v46 = vld [vmem:[#allocation26_spill] sm:$0xff]  ;;  %v4613_v43 = vld [vmem:[#allocation25_spill] sm:$0xff] }
 0x68a   :  { %3225 = vpow2.f32 %v1671_v53  ;;  %v1552_v63 = vsub.f32 %v3898_v54, %v1480_v15  ;;  %v1551_v27 = vsub.f32 %v3896_v1, %v1480_v15  ;;  %v4604_v54 = vld [vmem:[#allocation34_spill] sm:$0xff]  ;;  %v4605_v1 = vld [vmem:[#allocation33_spill] sm:$0xff]  ;;  %v4611_v15 = vld [vmem:[#allocation27_spill] sm:$0xff] }
 0x68b   :  { %v3202_v51 = vpop.eup %3201  ;;  %1728 = vmatpush1.xpose.msra.mxu0 %v3200_v50  ;;  %1799 = vmatpush1.xpose.msra.mxu1 %v3200_v50  ;;  %3227 = vpow2.f32 %v1669_v36  ;;  %v1549_v44 = vsub.f32 %v4604_v54, %v1477_v10  ;;  %v4614_v53 = vld [vmem:[#allocation24_spill] sm:$0xff]  ;;  %v4616_v10 = vld [vmem:[#allocation22_spill] sm:$0xff] }
 0x68c   :  { %v3204_v60 = vpop.eup %3203  ;;  %3229 = vpow2.f32 %v1667_v57  ;;  %v1663_v25 = vmul.f32 1.442695, %v1552_v63  ;;  %v1661_v6 = vmul.f32 1.442695, %v1551_v27 }
 0x68d   :  { %1729 = vmatprep.subr.mxu0 %v3204_v60  ;;  %1800 = vmatprep.subr.mxu1 %v3204_v60  ;;  %v3206_v35 = vpop.eup %3205  ;;  %v4025_v13 = vpop.xlane.xlu1 %1473  ;;  %3231 = vpow2.f32 %v1665_v23  ;;  %v1657_v42 = vmul.f32 1.442695, %v1549_v44 }
 0x68e   :  { %v3208_v3 = vpop.eup %3207  ;;  %3233 = vpow2.f32 %v1663_v25  ;;  %v1548_v28 = vsub.f32 %v4605_v1, %v4025_v13  ;;  %v1547_v22 = vsub.f32 %v4606_v61, %v4025_v13  ;;  %v4617_v61 = vmov 0.0  }
 0x68f   :  { %1730 = vmatpush2.xpose.msra.mxu0 %v3202_v51  ;;  %1801 = vmatpush2.xpose.msra.mxu1 %v3202_v51  ;;  %v3210_v30 = vpop.eup %3209  ;;  %3235 = vpow2.f32 %v1661_v6 }
 0x690   :  { %1731 = vmatprep.subr.mxu0 %v3206_v35  ;;  %1802 = vmatprep.subr.mxu1 %v3206_v35  ;;  %v3212_v11 = vpop.eup %3211  ;;  %3237 = vpow2.f32 %v1659_v24  ;;  %v1655_v31 = vmul.f32 1.442695, %v1548_v28  ;;  %v1653_v47 = vmul.f32 1.442695, %v1547_v22  ;;  %v4618_v22 = vld [vmem:[#allocation5_spill] sm:$0xff] }
 0x691   :  { %v3214_v45 = vpop.eup %3213  ;;  %v1471_v62 = vpop.xlane.xlu1 %1470  ;;  %3239 = vpow2.f32 %v1657_v42 }
 0x692   :  { %v3216_v29 = vpop.eup %3215  ;;  %v1546_v40 = vsub.f32 %v4607_v21, %v1471_v62  ;;  %v1545_v19 = vsub.f32 %v4608_v20, %v1471_v62  ;;  %3241 = vpow2.f32 %v1655_v31 }
 0x693   :  { %1732 = vmatpush2.xpose.msra.mxu0 %v3208_v3  ;;  %1803 = vmatpush2.xpose.msra.mxu1 %v3208_v3  ;;  %v3218_v0 = vpop.eup %3217  ;;  %3243 = vpow2.f32 %v1653_v47 }
 0x694   :  { %1733 = vmatprep.subr.mxu0 %v3210_v30  ;;  %1804 = vmatprep.subr.mxu1 %v3210_v30  ;;  %v3220_v18 = vpop.eup %3219  ;;  %v1651_v12 = vmul.f32 1.442695, %v1546_v40  ;;  %v1649_v48 = vmul.f32 1.442695, %v1545_v19  ;;  %v4620_v40 = vld [vmem:[#allocation12_spill] sm:$0xff] }
 0x695   :  { %v1468_v39 = vpop.xlane.xlu1 %1467  ;;  %v3222_v8 = vpop.eup %3221 }
 0x696   :  { %v3224_v52 = vpop.eup %3223  ;;  %v1544_v37 = vsub.f32 %v4609_v55, %v1468_v39  ;;  %v1543_v50 = vsub.f32 %v4610_v34, %v1468_v39  ;;  %3245 = vpow2.f32 %v1651_v12 }
 0x697   :  { %1734 = vmatpush2.xpose.msra.mxu0 %v3212_v11  ;;  %1805 = vmatpush2.xpose.msra.mxu1 %v3212_v11  ;;  %v3226_v38 = vpop.eup %3225  ;;  %3247 = vpow2.f32 %v1649_v48  ;;  %v4615_v11 = vld [vmem:[#allocation23_spill] sm:$0xff] }
 0x698   :  { %1735 = vmatprep.subr.mxu0 %v3214_v45  ;;  %1806 = vmatprep.subr.mxu1 %v3214_v45  ;;  %v3228_v16 = vpop.eup %3227  ;;  %v1647_v51 = vmul.f32 1.442695, %v1544_v37  ;;  %v1645_v5 = vmul.f32 1.442695, %v1543_v50  ;;  %v1843_v37 = vlaneseq }
 0x699   :  { %v1465_v59 = vpop.xlane.xlu1 %1464  ;;  %v3230_v32 = vpop.eup %3229 }
 0x69a   :  { %v3232_v17 = vpop.eup %3231  ;;  %v1542_v60 = vsub.f32 %v4611_v15, %v1465_v59  ;;  %v1541_v4 = vsub.f32 %v4612_v46, %v1465_v59  ;;  %3249 = vpow2.f32 %v1647_v51  ;;  %v4621_v59 = vld [vmem:[#allocation13_spill] sm:$0xff]  ;;  %v4066_v48 = vshrl.u32 %v1843_v37, 7 }
 0x69b   :  { %1736 = vmatpush2.xpose.msra.mxu0 %v3216_v29  ;;  %1807 = vmatpush2.xpose.msra.mxu1 %v3216_v29  ;;  %v3234_v2 = vpop.eup %3233  ;;  %3251 = vpow2.f32 %v1645_v5 }
 0x69c   :  { %1737 = vmatprep.subr.mxu0 %v3218_v0  ;;  %1808 = vmatprep.subr.mxu1 %v3218_v0  ;;  %v3236_v35 = vpop.eup %3235  ;;  %v1643_v56 = vmul.f32 1.442695, %v1542_v60  ;;  %v1641_v41 = vmul.f32 1.442695, %v1541_v4  ;;  %4623 = vst [vmem:[#allocation19_spill] sm:$0xff] %v4066_v48  ;;  %v4069_v34 = vsub.s32 0, %v4066_v48 }
 0x69d   :  { %v1462_v33 = vpop.xlane.xlu1 %1461  ;;  %v3238_v13 = vpop.eup %3237  ;;  %v4625_v4 = vld [vmem:[#allocation6_spill] sm:$0xff] }
 0x69e   :  { %v1540_v14 = vsub.f32 %v4613_v43, %v1462_v33  ;;  %v1539_v30 = vsub.f32 %v4614_v53, %v1462_v33  ;;  %v3240_v58 = vpop.eup %3239  ;;  %3253 = vpow2.f32 %v1643_v56  ;;  %4624 = vst [vmem:[#allocation18_spill] sm:$0xff] %v4069_v34  ;;  %v4627_v43 = vld [vmem:[#allocation7_spill] sm:$0xff] }
 0x69f   :  { %1738 = vmatpush2.xpose.msra.mxu0 %v3220_v18  ;;  %1809 = vmatpush2.xpose.msra.mxu1 %v3220_v18  ;;  %v3242_v63 = vpop.eup %3241  ;;  %3255 = vpow2.f32 %v1641_v41  ;;  %v4628_v41 = vld [vmem:[#allocation11_spill] sm:$0xff] }
 0x6a0   :  { %1739 = vmatprep.subr.mxu0 %v3222_v8  ;;  %1810 = vmatprep.subr.mxu1 %v3222_v8  ;;  %v1639_v36 = vmul.f32 1.442695, %v1540_v14  ;;  %v1637_v45 = vmul.f32 1.442695, %v1539_v30  ;;  %v3244_v23 = vpop.eup %3243  ;;  %v3403_v8 = vld [vmem:[%s4496_s4 + $0x10] sm:$0xff] }
 0x6a1   :  { %v1459_v3 = vpop.xlane.xlu1 %1458 }
 0x6a2   :  { %v1538_v57 = vsub.f32 %v4615_v11, %v1459_v3  ;;  %v1537_v62 = vsub.f32 %v4616_v10, %v1459_v3  ;;  %3257 = vpow2.f32 %v1639_v36  ;;  %v25_v3 = vld [vmem:[%s4498_s3] sm:$0xf] }
 0x6a3   :  { %1740 = vmatpush2.xpose.msra.mxu0 %v3224_v52  ;;  %1811 = vmatpush2.xpose.msra.mxu1 %v3224_v52  ;;  %v3246_v29 = vpop.eup %3245  ;;  %3259 = vpow2.f32 %v1637_v45  ;;  %v1967_v52 = vmul.f32 %v4601_v9, %v4618_v22 }
 0x6a4   :  { %1741 = vmatprep.subr.mxu0 %v3226_v38  ;;  %1812 = vmatprep.subr.mxu1 %v3226_v38  ;;  %v1635_v27 = vmul.f32 1.442695, %v1538_v57  ;;  %v1633_v49 = vmul.f32 1.442695, %v1537_v62  ;;  %v3248_v25 = vpop.eup %3247 }
 0x6a5   :  { %v1973_v31 = vadd.f32 %v1967_v52, %v4602_v7 }
 0x6a6   :  { %3261 = vpow2.f32 %v1635_v27 }
 0x6a7   :  { %1742 = vmatpush2.xpose.msra.mxu0 %v3228_v16  ;;  %1813 = vmatpush2.xpose.msra.mxu1 %v3228_v16  ;;  %v3250_v0 = vpop.eup %3249  ;;  %3263 = vpow2.f32 %v1633_v49 }
 0x6a8   :  { %1743 = vmatprep.subr.mxu0 %v3230_v32  ;;  %1814 = vmatprep.subr.mxu1 %v3230_v32  ;;  %v3252_v54 = vpop.eup %3251 }
 0x6ab   :  { %1744 = vmatpush2.xpose.msra.mxu0 %v3232_v17  ;;  %1815 = vmatpush2.xpose.msra.mxu1 %v3232_v17  ;;  %v3254_v44 = vpop.eup %3253 }
 0x6ac   :  { %1745 = vmatprep.subr.mxu0 %v3234_v2  ;;  %1816 = vmatprep.subr.mxu1 %v3234_v2  ;;  %v3256_v6 = vpop.eup %3255 }
 0x6af   :  { %1746 = vmatpush2.xpose.msra.mxu0 %v3236_v35  ;;  %1817 = vmatpush2.xpose.msra.mxu1 %v3236_v35  ;;  %v3258_v39 = vpop.eup %3257  ;;  %v4626_v35 = vld [vmem:[#allocation10_spill] sm:$0xff] }
 0x6b0   :  { %1747 = vmatprep.subr.mxu0 %v3238_v13  ;;  %1818 = vmatprep.subr.mxu1 %v3238_v13  ;;  %v3260_v18 = vpop.eup %3259  ;;  %v1969_v56 = vmul.f32 %v4626_v35, %v4625_v4  ;;  %v1968_v14 = vmul.f32 %v4626_v35, %v4627_v43  ;;  %v3413_v4 = vmov 4  }
 0x6b2   :  { %v1975_v53 = vadd.f32 %v1969_v56, %v4628_v41  ;;  %v1974_v30 = vadd.f32 %v1968_v14, %v4628_v41 }
 0x6b3   :  { %1748 = vmatpush2.xpose.msra.mxu0 %v3240_v58  ;;  %1819 = vmatpush2.xpose.msra.mxu1 %v3240_v58  ;;  %v3262_v24 = vpop.eup %3261 }
 0x6b4   :  { %1749 = vmatprep.subr.mxu0 %v3242_v63  ;;  %1820 = vmatprep.subr.mxu1 %v3242_v63  ;;  %v3264_v1 = vpop.eup %3263 }
 0x6b7   :  { %1750 = vmatpush2.xpose.msra.mxu0 %v3244_v23  ;;  %1821 = vmatpush2.xpose.msra.mxu1 %v3244_v23 }
 0x6b8   :  { %1751 = vmatprep.subr.mxu0 %v3246_v29  ;;  %1822 = vmatprep.subr.mxu1 %v3246_v29 }
 0x6bb   :  { %1752 = vmatpush2.xpose.msra.mxu0 %v3248_v25  ;;  %1823 = vmatpush2.xpose.msra.mxu1 %v3248_v25 }
 0x6bc   :  { %1753 = vmatprep.subr.mxu0 %v3250_v0  ;;  %1824 = vmatprep.subr.mxu1 %v3250_v0 }
 0x6bf   :  { %1754 = vmatpush2.xpose.msra.mxu0 %v3252_v54  ;;  %1825 = vmatpush2.xpose.msra.mxu1 %v3252_v54 }
 0x6c0   :  { %1755 = vmatprep.subr.mxu0 %v3254_v44  ;;  %1826 = vmatprep.subr.mxu1 %v3254_v44 }
 0x6c3   :  { %1756 = vmatpush2.xpose.msra.mxu0 %v3256_v6  ;;  %1827 = vmatpush2.xpose.msra.mxu1 %v3256_v6 }
 0x6c4   :  { %1757 = vmatprep.subr.mxu0 %v3258_v39  ;;  %1828 = vmatprep.subr.mxu1 %v3258_v39 }
 0x6c7   :  { %1758 = vmatpush2.xpose.msra.mxu0 %v3260_v18  ;;  %1829 = vmatpush2.xpose.msra.mxu1 %v3260_v18 }
 0x6c8   :  { %1759 = vmatprep.subr.mxu0 %v3262_v24  ;;  %1830 = vmatprep.subr.mxu1 %v3262_v24 }
 0x6cb   :  { %1760 = vmatpush2.xpose.msra.mxu0 %v3264_v1  ;;  %1831 = vmatpush2.xpose.msra.mxu1 %v3264_v1 }
 0x6ce   :  { %v937_v28 = vpop.permute.xlu0 %936  ;;  %1762 = vmatmul.mubr.f32.vlgmr.msra.gmra.mxu0 %v4539_v26 }
 0x6cf   :  { %v943_v42 = vsub.f32 %v3403_v8, %v937_v28  ;;  %1925 = vmatprep.mubr.f32.mxu0 %v4617_v61 }
 0x6d1   :  { %983 = vperm.xlu1 %3113, %v943_v42  }
 0x6dc   :  { %v4055_v21 = vpop.permute.xlu0 %962 }
 0x6dd   :  { %4619 = vst [vmem:[#allocation21_spill] sm:$0xff] %v4055_v21  ;;  %v969_v38 = vmul.f32 %v4055_v21, %v4620_v40  ;;  %v970_v47 = vmul.f32 %v4055_v21, %v4621_v59 }
 0x6fa   :  { %2010 = vxpose.xlu1.b32.start.end [1/1] (short) %v1973_v31, 128  ;;  %v4629_v31 = vld [vmem:[#allocation15_spill] sm:$0xff] }
 0x6fb   :  { %v1971_v40 = vmul.f32 %v4055_v21, %v4629_v31 }
 0x6fc   :  { %v1994_v7 = vpop.trf.xlu0 }
 0x700   :  { %v1995_v55 = vpop.trf.xlu0 }
 0x704   :  { %v1996_v32 = vpop.trf.xlu0 }
 0x708   :  { %v1997_v50 = vpop.trf.xlu0 }
 0x70c   :  { %v1998_v5 = vpop.trf.xlu0 }
 0x710   :  { %v1999_v58 = vpop.trf.xlu0 }
 0x714   :  { %v2000_v36 = vpop.trf.xlu0 }
 0x718   :  { %v2001_v11 = vpop.trf.xlu0  ;;  %3117 = vset.pattern.permute.xlu1 %v3413_v4 }
 0x71c   :  { %v2002_v57 = vpop.trf.xlu0 }
 0x720   :  { %v2003_v63 = vpop.trf.xlu0 }
 0x724   :  { %v2004_v45 = vpop.trf.xlu0 }
 0x728   :  { %v2005_v62 = vpop.trf.xlu0 }
 0x72c   :  { %v2006_v27 = vpop.trf.xlu0 }
 0x730   :  { %v2007_v49 = vpop.trf.xlu0 }
 0x734   :  { %v2008_v0 = vpop.trf.xlu0 }
 0x738   :  { %v2009_v44 = vpop.trf.xlu0 }
 0x74c   :  { %v4061_v20 = vpop.permute.xlu1 %983 }
 0x74d   :  { %4622 = vst [vmem:[#allocation20_spill] sm:$0xff] %v4061_v20  ;;  %v990_v19 = vadd.f32 %v4061_v20, %v969_v38  ;;  %v991_v16 = vadd.f32 %v4061_v20, %v970_v47  ;;  %v1977_v59 = vadd.f32 %v1971_v40, %v4061_v20 }
 0x74f   :  { %1832 = vmatprep.mubr.f32.mxu1 %v991_v16 }
 0x750   :  { %1833 = vmatmul.mubr.f32.vlgmr.msra.gmra.mxu1 %v990_v19 }
 0x751   :  { %2747 = vmatprep.mubr.f32.mxu1 %v4539_v26 }
 0x776   :  { %v2026_v10 = vpop.trf.xlu1 }
 0x77a   :  { %v2027_v23 = vpop.trf.xlu1 }
 0x77e   :  { %v2028_v29 = vpop.trf.xlu1 }
 0x782   :  { %v2029_v25 = vpop.trf.xlu1 }
 0x786   :  { %v2030_v54 = vpop.trf.xlu1 }
 0x78a   :  { %v2031_v6 = vpop.trf.xlu1 }
 0x78e   :  { %v1763_v9 = vpop.f32.mrf.mxu0  ;;  %v2032_v39 = vpop.trf.xlu1 }
 0x78f   :  { %3265 = vrcp.f32 %v1763_v9 }
 0x790   :  { %v1765_v12 = vpop.f32.mrf.mxu0 }
 0x791   :  { %3267 = vrcp.f32 %v1765_v12 }
 0x792   :  { %v2033_v18 = vpop.trf.xlu1 }
 0x796   :  { %v2034_v24 = vpop.trf.xlu1 }
 0x79a   :  { %v2035_v1 = vpop.trf.xlu1 }
 0x79c   :  { %v3266_v33 = vpop.eup %3265 }
 0x79d   :  { %v1846_v15 = vrot.slane %v3266_v33, %v4069_v34 }
 0x79e   :  { %v3268_v17 = vpop.eup %3267  ;;  %v2036_v28 = vpop.trf.xlu1 }
 0x79f   :  { %v1850_v60 = vrot.slane %v3268_v17, %v4069_v34 }
 0x7a2   :  { %v2037_v8 = vpop.trf.xlu1 }
 0x7a6   :  { %v2038_v42 = vpop.trf.xlu1 }
 0x7aa   :  { %v2039_v22 = vpop.trf.xlu1 }
 0x7ae   :  { %v2040_v52 = vpop.trf.xlu1 }
 0x7b2   :  { %v2041_v38 = vpop.trf.xlu1 }
 0x810   :  { %v1834_v51 = vpop.f32.mrf.mxu1 }
 0x811   :  { %v1851_v13 = vmul.f32 %v1846_v15, %v1834_v51 }
 0x812   :  { %v1836_v2 = vpop.f32.mrf.mxu1 }
 0x813   :  { %v1852_v46 = vmul.f32 %v1850_v60, %v1836_v2 }
 0x815   :  { %1891 = vmatprep.subr.mxu0 %v1852_v46 }
 0x816   :  { %1892 = vmatpush1.msra.mxu0 %v1851_v13 }
 0x817   :  { %3060 = vmatmul.mubr.msk.f32.vlgmr.msra.gmra.mxu0 %vm134_vm2, %v25_v3  ;;  %2168 = vmatprep.subr.mxu0 %v1975_v53 }
 0x818   :  { %2169 = vmatpush1.msra.mxu0 %v1974_v30  ;;  %2202 = vmatprep.mubr.f32.mxu0 %v4617_v61 }
 0x81b   :  { %3061 = vmatmul.mubr.msk.f32.vlgmr.msra.gmra.mxu0 %vm134_vm2, %v1994_v7 }
 0x81c   :  { %2208 = vmatprep.mubr.f32.mxu0 %v4617_v61 }
 0x81f   :  { %3062 = vmatmul.mubr.msk.f32.gmra.mxu0 %vm134_vm2, %v1995_v55 }
 0x820   :  { %2214 = vmatprep.mubr.f32.mxu0 %v4617_v61 }
 0x823   :  { %3063 = vmatmul.mubr.msk.f32.gmra.mxu0 %vm134_vm2, %v1996_v32 }
 0x824   :  { %2220 = vmatprep.mubr.f32.mxu0 %v4617_v61 }
 0x827   :  { %3064 = vmatmul.mubr.msk.f32.gmra.mxu0 %vm134_vm2, %v1997_v50 }
 0x828   :  { %2226 = vmatprep.mubr.f32.mxu0 %v4617_v61 }
 0x82b   :  { %3065 = vmatmul.mubr.msk.f32.gmra.mxu0 %vm134_vm2, %v1998_v5 }
 0x82c   :  { %2232 = vmatprep.mubr.f32.mxu0 %v4617_v61 }
 0x82f   :  { %3066 = vmatmul.mubr.msk.f32.gmra.mxu0 %vm134_vm2, %v1999_v58 }
 0x830   :  { %2238 = vmatprep.mubr.f32.mxu0 %v4617_v61 }
 0x833   :  { %3067 = vmatmul.mubr.msk.f32.gmra.mxu0 %vm134_vm2, %v2000_v36 }
 0x834   :  { %2244 = vmatprep.mubr.f32.mxu0 %v4617_v61 }
 0x837   :  { %3068 = vmatmul.mubr.msk.f32.gmra.mxu0 %vm134_vm2, %v2001_v11 }
 0x838   :  { %2250 = vmatprep.mubr.f32.mxu0 %v4617_v61 }
 0x83b   :  { %3069 = vmatmul.mubr.msk.f32.gmra.mxu0 %vm134_vm2, %v2002_v57 }
 0x83c   :  { %2256 = vmatprep.mubr.f32.mxu0 %v4617_v61 }
 0x83f   :  { %3070 = vmatmul.mubr.msk.f32.gmra.mxu0 %vm134_vm2, %v2003_v63 }
 0x840   :  { %2262 = vmatprep.mubr.f32.mxu0 %v4617_v61 }
 0x843   :  { %3071 = vmatmul.mubr.msk.f32.gmra.mxu0 %vm134_vm2, %v2004_v45 }
 0x844   :  { %2268 = vmatprep.mubr.f32.mxu0 %v4617_v61 }
 0x847   :  { %3072 = vmatmul.mubr.msk.f32.gmra.mxu0 %vm134_vm2, %v2005_v62 }
 0x848   :  { %2274 = vmatprep.mubr.f32.mxu0 %v4617_v61 }
 0x84b   :  { %3073 = vmatmul.mubr.msk.f32.gmra.mxu0 %vm134_vm2, %v2006_v27 }
 0x84c   :  { %2280 = vmatprep.mubr.f32.mxu0 %v4617_v61 }
 0x84f   :  { %3074 = vmatmul.mubr.msk.f32.gmra.mxu0 %vm134_vm2, %v2007_v49 }
 0x850   :  { %2286 = vmatprep.mubr.f32.mxu0 %v4617_v61 }
 0x853   :  { %3075 = vmatmul.mubr.msk.f32.gmra.mxu0 %vm134_vm2, %v2008_v0 }
 0x854   :  { %2292 = vmatprep.mubr.f32.mxu0 %v4617_v61 }
 0x857   :  { %3076 = vmatmul.mubr.msk.f32.gmra.mxu0 %vm134_vm2, %v2009_v44 }
 0x858   :  { %2298 = vmatprep.mubr.f32.mxu0 %v4617_v61 }
 0x85b   :  { %3077 = vmatmul.mubr.msk.f32.gmra.mxu0 %vm134_vm2, %v2026_v10 }
 0x85c   :  { %2304 = vmatprep.mubr.f32.mxu0 %v4617_v61 }
 0x85f   :  { %3078 = vmatmul.mubr.msk.f32.gmra.mxu0 %vm134_vm2, %v2027_v23 }
 0x860   :  { %2310 = vmatprep.mubr.f32.mxu0 %v4617_v61 }
 0x863   :  { %3079 = vmatmul.mubr.msk.f32.gmra.mxu0 %vm134_vm2, %v2028_v29 }
 0x864   :  { %2316 = vmatprep.mubr.f32.mxu0 %v4617_v61 }
 0x867   :  { %3080 = vmatmul.mubr.msk.f32.gmra.mxu0 %vm134_vm2, %v2029_v25 }
 0x868   :  { %2322 = vmatprep.mubr.f32.mxu0 %v4617_v61 }
 0x86b   :  { %3081 = vmatmul.mubr.msk.f32.gmra.mxu0 %vm134_vm2, %v2030_v54 }
 0x86c   :  { %2328 = vmatprep.mubr.f32.mxu0 %v4617_v61 }
 0x86f   :  { %3082 = vmatmul.mubr.msk.f32.gmra.mxu0 %vm134_vm2, %v2031_v6 }
 0x870   :  { %2334 = vmatprep.mubr.f32.mxu0 %v4617_v61 }
 0x873   :  { %3083 = vmatmul.mubr.msk.f32.gmra.mxu0 %vm134_vm2, %v2032_v39 }
 0x874   :  { %2340 = vmatprep.mubr.f32.mxu0 %v4617_v61 }
 0x877   :  { %3084 = vmatmul.mubr.msk.f32.gmra.mxu0 %vm134_vm2, %v2033_v18 }
 0x878   :  { %2346 = vmatprep.mubr.f32.mxu0 %v4617_v61 }
 0x87b   :  { %3085 = vmatmul.mubr.msk.f32.gmra.mxu0 %vm134_vm2, %v2034_v24 }
 0x87c   :  { %2352 = vmatprep.mubr.f32.mxu0 %v4617_v61 }
 0x87f   :  { %3086 = vmatmul.mubr.msk.f32.gmra.mxu0 %vm134_vm2, %v2035_v1 }
 0x880   :  { %2358 = vmatprep.mubr.f32.mxu0 %v4617_v61 }
 0x883   :  { %3087 = vmatmul.mubr.msk.f32.gmra.mxu0 %vm134_vm2, %v2036_v28 }
 0x884   :  { %2364 = vmatprep.mubr.f32.mxu0 %v4617_v61 }
 0x887   :  { %3088 = vmatmul.mubr.msk.f32.gmra.mxu0 %vm134_vm2, %v2037_v8 }
 0x888   :  { %2370 = vmatprep.mubr.f32.mxu0 %v4617_v61 }
 0x88b   :  { %3089 = vmatmul.mubr.msk.f32.gmra.mxu0 %vm134_vm2, %v2038_v42 }
 0x88c   :  { %2376 = vmatprep.mubr.f32.mxu0 %v4617_v61 }
 0x88f   :  { %3090 = vmatmul.mubr.msk.f32.gmra.mxu0 %vm134_vm2, %v2039_v22 }
 0x890   :  { %2382 = vmatprep.mubr.f32.mxu0 %v4617_v61 }
 0x893   :  { %3091 = vmatmul.mubr.msk.f32.gmra.mxu0 %vm134_vm2, %v2040_v52 }
 0x894   :  { %2388 = vmatprep.mubr.f32.mxu0 %v4617_v61 }
 0x897   :  { %3092 = vmatmul.mubr.msk.f32.gmra.mxu0 %vm134_vm2, %v2041_v38 }
 0x898   :  { %2818 = vmatprep.mubr.f32.mxu0 %v1977_v59 }
 0x8d7   :  { %v4150_v47 = vpop.f32.mrf.mxu0 }
 0x8d8   :  { %4630 = vst [vmem:[#allocation17_spill] sm:$0xff] %v4150_v47 }
 0x8d9   :  { %v4152_v19 = vpop.f32.mrf.mxu0 }
 0x8da   :  { %4631 = vst [vmem:[#allocation16_spill] sm:$0xff] %v4152_v19 }
 0x8db   :  { %v4154_v16 = vpop.f32.mrf.mxu0 }
 0x8dc   :  { %4632 = vst [vmem:[#allocation4_spill] sm:$0xff] %v4154_v16 }
 0x8dd   :  { %v4156_v9 = vpop.f32.mrf.mxu0 }
 0x8de   :  { %4633 = vst [vmem:[#allocation8_spill] sm:$0xff] %v4156_v9 }
 0x8df   :  { %v4158_v7 = vpop.f32.mrf.mxu0 }
 0x8e0   :  { %4634 = vst [vmem:[#allocation9_spill] sm:$0xff] %v4158_v7 }
 0x8e1   :  { %v4160_v12 = vpop.f32.mrf.mxu0 }
 0x8e2   :  { %4635 = vst [vmem:[#allocation35_spill] sm:$0xff] %v4160_v12  ;;  %v2398_v22 = vmax.f32 %v4158_v7, %v4160_v12 }
 0x8e3   :  { %v4162_v55 = vpop.f32.mrf.mxu0 }
 0x8e4   :  { %4636 = vst [vmem:[#allocation34_spill] sm:$0xff] %v4162_v55 }
 0x8e5   :  { %v4164_v37 = vpop.f32.mrf.mxu0 }
 0x8e7   :  { %v4166_v32 = vpop.f32.mrf.mxu0 }
 0x8e9   :  { %v4168_v50 = vpop.f32.mrf.mxu0 }
 0x8ea   :  { %v2404_v1 = vmax.f32 %v4166_v32, %v4168_v50 }
 0x8eb   :  { %v4170_v33 = vpop.f32.mrf.mxu0 }
 0x8ed   :  { %v4172_v17 = vpop.f32.mrf.mxu0 }
 0x8ef   :  { %v4174_v51 = vpop.f32.mrf.mxu0 }
 0x8f1   :  { %v4176_v15 = vpop.f32.mrf.mxu0 }
 0x8f2   :  { %v2410_v6 = vmax.f32 %v4174_v51, %v4176_v15 }
 0x8f3   :  { %v4178_v60 = vpop.f32.mrf.mxu0 }
 0x8f5   :  { %v4180_v2 = vpop.f32.mrf.mxu0 }
 0x8f7   :  { %v4182_v5 = vpop.f32.mrf.mxu0 }
 0x8f9   :  { %v4184_v46 = vpop.f32.mrf.mxu0 }
 0x8fa   :  { %v2416_v25 = vmax.f32 %v4182_v5, %v4184_v46 }
 0x8fb   :  { %v4186_v35 = vpop.f32.mrf.mxu0 }
 0x8fd   :  { %v4188_v56 = vpop.f32.mrf.mxu0 }
 0x8fe   :  { %v2419_v38 = vmax.f32 %v4186_v35, %v4188_v56 }
 0x8ff   :  { %v4190_v43 = vpop.f32.mrf.mxu0 }
 0x901   :  { %v4192_v14 = vpop.f32.mrf.mxu0 }
 0x902   :  { %v2422_v23 = vmax.f32 %v4190_v43, %v4192_v14 }
 0x903   :  { %v4194_v13 = vpop.f32.mrf.mxu0 }
 0x905   :  { %v4196_v3 = vpop.f32.mrf.mxu0 }
 0x906   :  { %v2425_v52 = vmax.f32 %v4194_v13, %v4196_v3 }
 0x907   :  { %v4198_v41 = vpop.f32.mrf.mxu0 }
 0x909   :  { %v4200_v53 = vpop.f32.mrf.mxu0 }
 0x90a   :  { %v2428_v28 = vmax.f32 %v4198_v41, %v4200_v53 }
 0x90b   :  { %v4202_v30 = vpop.f32.mrf.mxu0 }
 0x90d   :  { %v4204_v58 = vpop.f32.mrf.mxu0 }
 0x90e   :  { %v2431_v39 = vmax.f32 %v4202_v30, %v4204_v58 }
 0x90f   :  { %v4206_v36 = vpop.f32.mrf.mxu0 }
 0x911   :  { %v4208_v11 = vpop.f32.mrf.mxu0 }
 0x912   :  { %v2434_v0 = vmax.f32 %v4206_v36, %v4208_v11 }
 0x913   :  { %v4210_v57 = vpop.f32.mrf.mxu0 }
 0x915   :  { %v4212_v63 = vpop.f32.mrf.mxu0 }
 0x916   :  { %v2437_v45 = vmax.f32 %v4210_v57, %v4212_v63 }
 0x917   :  { %v4216_v10 = vpop.f32.mrf.mxu0 }
 0x918   :  { %2438 = vmax.xlane.f32.xlu1 %v2437_v45  ;;  %v2413_v45 = vmax.f32 %v4178_v60, %v4180_v2 }
 0x919   :  { %v4218_v62 = vpop.f32.mrf.mxu0 }
 0x91a   :  { %v2440_v27 = vmax.f32 %v4216_v10, %v4218_v62 }
 0x91b   :  { %v4224_v29 = vpop.f32.mrf.mxu0 }
 0x91c   :  { %4637 = vst [vmem:[#allocation33_spill] sm:$0xff] %v4224_v29  ;;  %2423 = vmax.xlane.f32.xlu1 %v2422_v23  ;;  %2441 = vmax.xlane.f32.xlu0 %v2440_v27 }
 0x91d   :  { %v4226_v49 = vpop.f32.mrf.mxu0 }
 0x91e   :  { %4638 = vst [vmem:[#allocation32_spill] sm:$0xff] %v4226_v49 }
 0x91f   :  { %v4232_v54 = vpop.f32.mrf.mxu0 }
 0x920   :  { %4639 = vst [vmem:[#allocation31_spill] sm:$0xff] %v4232_v54  ;;  %2417 = vmax.xlane.f32.xlu1 %v2416_v25  ;;  %2435 = vmax.xlane.f32.xlu0 %v2434_v0  ;;  %v2407_v25 = vmax.f32 %v4170_v33, %v4172_v17 }
 0x921   :  { %v4234_v44 = vpop.f32.mrf.mxu0 }
 0x922   :  { %4640 = vst [vmem:[#allocation30_spill] sm:$0xff] %v4234_v44 }
 0x923   :  { %v4240_v18 = vpop.f32.mrf.mxu0 }
 0x924   :  { %4641 = vst [vmem:[#allocation29_spill] sm:$0xff] %v4240_v18  ;;  %2411 = vmax.xlane.f32.xlu1 %v2410_v6  ;;  %2432 = vmax.xlane.f32.xlu0 %v2431_v39  ;;  %v2401_v39 = vmax.f32 %v4162_v55, %v4164_v37 }
 0x925   :  { %v4242_v24 = vpop.f32.mrf.mxu0 }
 0x926   :  { %4642 = vst [vmem:[#allocation28_spill] sm:$0xff] %v4242_v24 }
 0x927   :  { %v4248_v8 = vpop.f32.mrf.mxu0 }
 0x928   :  { %4643 = vst [vmem:[#allocation27_spill] sm:$0xff] %v4248_v8  ;;  %2405 = vmax.xlane.f32.xlu1 %v2404_v1  ;;  %2429 = vmax.xlane.f32.xlu0 %v2428_v28 }
 0x929   :  { %v4250_v42 = vpop.f32.mrf.mxu0 }
 0x92a   :  { %4644 = vst [vmem:[#allocation26_spill] sm:$0xff] %v4250_v42 }
 0x92b   :  { %v4256_v31 = vpop.f32.mrf.mxu0 }
 0x92c   :  { %2399 = vmax.xlane.f32.xlu1 %v2398_v22  ;;  %2426 = vmax.xlane.f32.xlu0 %v2425_v52  ;;  %v2395_v22 = vmax.f32 %v4154_v16, %v4156_v9 }
 0x92d   :  { %v4258_v40 = vpop.f32.mrf.mxu0 }
 0x92f   :  { %v4262_v59 = vpop.f32.mrf.mxu0 }
 0x930   :  { %2420 = vmax.xlane.f32.xlu0 %v2419_v38 }
 0x931   :  { %v4264_v4 = vpop.f32.mrf.mxu0 }
 0x933   :  { %v4268_v23 = vpop.f32.mrf.mxu0 }
 0x934   :  { %2414 = vmax.xlane.f32.xlu0 %v2413_v45 }
 0x935   :  { %v4270_v27 = vpop.f32.mrf.mxu0 }
 0x937   :  { %v4274_v0 = vpop.f32.mrf.mxu0 }
 0x938   :  { %2408 = vmax.xlane.f32.xlu0 %v2407_v25 }
 0x939   :  { %v4276_v6 = vpop.f32.mrf.mxu0 }
 0x93b   :  { %v4280_v1 = vpop.f32.mrf.mxu0 }
 0x93c   :  { %2402 = vmax.xlane.f32.xlu0 %v2401_v39 }
 0x93d   :  { %v4282_v28 = vpop.f32.mrf.mxu0 }
 0x93f   :  { %v4286_v52 = vpop.f32.mrf.mxu0 }
 0x940   :  { %2396 = vmax.xlane.f32.xlu0 %v2395_v22 }
 0x941   :  { %v4288_v38 = vpop.f32.mrf.mxu0 }
 0x943   :  { %v4290_v45 = vpop.f32.mrf.mxu0 }
 0x945   :  { %v4292_v25 = vpop.f32.mrf.mxu0 }
 0x946   :  { %v2473_v12 = vmax.f32 %v4290_v45, %v4292_v25 }
 0x947   :  { %v4294_v26 = vpop.f32.mrf.mxu0 }
 0x949   :  { %v4296_v48 = vpop.f32.mrf.mxu0 }
 0x94b   :  { %v4298_v34 = vpop.f32.mrf.mxu0 }
 0x94d   :  { %v4300_v39 = vpop.f32.mrf.mxu0 }
 0x94e   :  { %v2479_v9 = vmax.f32 %v4298_v34, %v4300_v39 }
 0x94f   :  { %v4302_v61 = vpop.f32.mrf.mxu0 }
 0x951   :  { %v4304_v20 = vpop.f32.mrf.mxu0 }
 0x952   :  { %v2482_v55 = vmax.f32 %v4302_v61, %v4304_v20 }
 0x953   :  { %v4306_v21 = vpop.f32.mrf.mxu0 }
 0x954   :  { %4645 = vst [vmem:[#allocation25_spill] sm:$0xff] %v4306_v21 }
 0x955   :  { %v4308_v22 = vpop.f32.mrf.mxu0 }
 0x956   :  { %v2485_v19 = vmax.f32 %v4306_v21, %v4308_v22  ;;  %v2476_v21 = vmax.f32 %v4294_v26, %v4296_v48 }
 0x957   :  { %v4312_v47 = vpop.f32.mrf.mxu0 }
 0x958   :  { %2486 = vmax.xlane.f32.xlu0 %v2485_v19  ;;  %v2467_v19 = vmax.f32 %v4280_v1, %v4282_v28 }
 0x959   :  { %v4314_v16 = vpop.f32.mrf.mxu0 }
 0x95a   :  { %v2488_v7 = vmax.f32 %v4312_v47, %v4314_v16 }
 0x95c   :  { %2480 = vmax.xlane.f32.xlu0 %v2479_v9  ;;  %2489 = vmax.xlane.f32.xlu1 %v2488_v7  ;;  %v2461_v9 = vmax.f32 %v4268_v23, %v4270_v27  ;;  %v2470_v7 = vmax.f32 %v4286_v52, %v4288_v38 }
 0x960   :  { %2474 = vmax.xlane.f32.xlu0 %v2473_v12  ;;  %2483 = vmax.xlane.f32.xlu1 %v2482_v55  ;;  %v2455_v12 = vmax.f32 %v4256_v31, %v4258_v40  ;;  %v2464_v55 = vmax.f32 %v4274_v0, %v4276_v6 }
 0x964   :  { %2468 = vmax.xlane.f32.xlu0 %v2467_v19  ;;  %2477 = vmax.xlane.f32.xlu1 %v2476_v21  ;;  %v2449_v19 = vmax.f32 %v4240_v18, %v4242_v24  ;;  %v2458_v21 = vmax.f32 %v4262_v59, %v4264_v4 }
 0x968   :  { %2462 = vmax.xlane.f32.xlu0 %v2461_v9  ;;  %2471 = vmax.xlane.f32.xlu1 %v2470_v7  ;;  %v2443_v9 = vmax.f32 %v4224_v29, %v4226_v49  ;;  %v2452_v7 = vmax.f32 %v4248_v8, %v4250_v42 }
 0x96c   :  { %2456 = vmax.xlane.f32.xlu0 %v2455_v12  ;;  %2465 = vmax.xlane.f32.xlu1 %v2464_v55  ;;  %v2446_v12 = vmax.f32 %v4232_v54, %v4234_v44  ;;  %v4349_v55 = vld [vmem:[%s4496_s4] sm:$0xf] }
 0x96d   :  { %4646 = vst [vmem:[#allocation24_spill] sm:$0xff] %v4349_v55 }
 0x970   :  { %2450 = vmax.xlane.f32.xlu0 %v2449_v19  ;;  %2459 = vmax.xlane.f32.xlu1 %v2458_v21 }
 0x974   :  { %2444 = vmax.xlane.f32.xlu0 %v2443_v9  ;;  %2453 = vmax.xlane.f32.xlu1 %v2452_v7 }
 0x978   :  { %2447 = vmax.xlane.f32.xlu1 %v2446_v12 }
 0x989   :  { %1855 = vperm.xlu1 %3117, %v4349_v55  }
 0x9a1   :  { %v2439_v19 = vpop.xlane.xlu1 %2438 }
 0x9a2   :  { %v2520_v21 = vsub.f32 %v4212_v63, %v2439_v19  ;;  %v2519_v7 = vsub.f32 %v4210_v57, %v2439_v19 }
 0x9a4   :  { %v2613_v12 = vmul.f32 1.442695, %v2520_v21  ;;  %v2611_v8 = vmul.f32 1.442695, %v2519_v7 }
 0x9a5   :  { %v2442_v29 = vpop.xlane.xlu0 %2441 }
 0x9a6   :  { %v2521_v49 = vsub.f32 %v4216_v10, %v2442_v29  ;;  %v2522_v9 = vsub.f32 %v4218_v62, %v2442_v29 }
 0x9a8   :  { %v2615_v18 = vmul.f32 1.442695, %v2521_v49  ;;  %v2617_v54 = vmul.f32 1.442695, %v2522_v9 }
 0x9a9   :  { %v2436_v44 = vpop.xlane.xlu0 %2435 }
 0x9aa   :  { %3269 = vpow2.f32 %v2615_v18  ;;  %v2518_v24 = vsub.f32 %v4208_v11, %v2436_v44  ;;  %v2517_v55 = vsub.f32 %v4206_v36, %v2436_v44 }
 0x9ab   :  { %3271 = vpow2.f32 %v2617_v54 }
 0x9ac   :  { %3273 = vpow2.f32 %v2613_v12  ;;  %v2609_v63 = vmul.f32 1.442695, %v2518_v24  ;;  %v2607_v62 = vmul.f32 1.442695, %v2517_v55  ;;  %v2424_v24 = vpop.xlane.xlu1 %2423 }
 0x9ad   :  { %v2433_v42 = vpop.xlane.xlu0 %2432  ;;  %3275 = vpow2.f32 %v2611_v8 }
 0x9ae   :  { %v2516_v10 = vsub.f32 %v4204_v58, %v2433_v42  ;;  %v2515_v57 = vsub.f32 %v4202_v30, %v2433_v42  ;;  %3277 = vpow2.f32 %v2609_v63  ;;  %v2510_v42 = vsub.f32 %v4192_v14, %v2424_v24 }
 0x9af   :  { %3279 = vpow2.f32 %v2607_v62 }
 0x9b0   :  { %v2605_v29 = vmul.f32 1.442695, %v2516_v10  ;;  %v2603_v11 = vmul.f32 1.442695, %v2515_v57  ;;  %v2593_v12 = vmul.f32 1.442695, %v2510_v42  ;;  %v2418_v63 = vpop.xlane.xlu1 %2417 }
 0x9b1   :  { %v2430_v49 = vpop.xlane.xlu0 %2429 }
 0x9b2   :  { %v2514_v18 = vsub.f32 %v4200_v53, %v2430_v49  ;;  %v2513_v54 = vsub.f32 %v4198_v41, %v2430_v49  ;;  %3281 = vpow2.f32 %v2605_v29 }
 0x9b3   :  { %3283 = vpow2.f32 %v2603_v11 }
 0x9b4   :  { %v2601_v36 = vmul.f32 1.442695, %v2514_v18  ;;  %v2599_v55 = vmul.f32 1.442695, %v2513_v54 }
 0x9b5   :  { %v2427_v44 = vpop.xlane.xlu0 %2426 }
 0x9b6   :  { %v2512_v19 = vsub.f32 %v4196_v3, %v2427_v44  ;;  %v2511_v30 = vsub.f32 %v4194_v13, %v2427_v44  ;;  %3285 = vpow2.f32 %v2601_v36  ;;  %v2509_v3 = vsub.f32 %v4190_v43, %v2424_v24  ;;  %v2412_v24 = vpop.xlane.xlu1 %2411 }
 0x9b7   :  { %v3270_v58 = vpop.eup %3269  ;;  %3287 = vpow2.f32 %v2599_v55  ;;  %v2506_v43 = vsub.f32 %v4184_v46, %v2418_v63 }
 0x9b8   :  { %v3272_v8 = vpop.eup %3271  ;;  %v2597_v53 = vmul.f32 1.442695, %v2512_v19  ;;  %v2595_v9 = vmul.f32 1.442695, %v2511_v30  ;;  %v2591_v10 = vmul.f32 1.442695, %v2509_v3 }
 0x9b9   :  { %2683 = vmatprep.subr.mxu1 %v3272_v8  ;;  %2754 = vmatprep.subr.mxu0 %v3272_v8  ;;  %v3274_v21 = vpop.eup %3273  ;;  %v2421_v41 = vpop.xlane.xlu0 %2420  ;;  %v2585_v36 = vmul.f32 1.442695, %v2506_v43 }
 0x9ba   :  { %2684 = vmatpush1.xpose.msra.mxu1 %v3270_v58  ;;  %2755 = vmatpush1.xpose.msra.mxu0 %v3270_v58  ;;  %v3276_v7 = vpop.eup %3275  ;;  %3289 = vpow2.f32 %v2597_v53  ;;  %v2508_v13 = vsub.f32 %v4188_v56, %v2421_v41  ;;  %v2507_v62 = vsub.f32 %v4186_v35, %v2421_v41  ;;  %v2505_v56 = vsub.f32 %v4182_v5, %v2418_v63  ;;  %v2406_v3 = vpop.xlane.xlu1 %2405 }
 0x9bb   :  { %2685 = vmatprep.subr.mxu1 %v3274_v21  ;;  %2756 = vmatprep.subr.mxu0 %v3274_v21  ;;  %v3278_v14 = vpop.eup %3277  ;;  %3291 = vpow2.f32 %v2595_v9  ;;  %v2502_v5 = vsub.f32 %v4176_v15, %v2412_v24 }
 0x9bc   :  { %v3280_v57 = vpop.eup %3279  ;;  %3293 = vpow2.f32 %v2593_v12  ;;  %v2589_v29 = vmul.f32 1.442695, %v2508_v13  ;;  %v2587_v11 = vmul.f32 1.442695, %v2507_v62  ;;  %v2583_v46 = vmul.f32 1.442695, %v2505_v56 }
 0x9bd   :  { %v2415_v18 = vpop.xlane.xlu0 %2414  ;;  %3295 = vpow2.f32 %v2591_v10  ;;  %v2577_v21 = vmul.f32 1.442695, %v2502_v5  ;;  %v4648_v56 = vld [vmem:[#allocation35_spill] sm:$0xff] }
 0x9be   :  { %2686 = vmatpush1.xpose.msra.mxu1 %v3276_v7  ;;  %2757 = vmatpush1.xpose.msra.mxu0 %v3276_v7  ;;  %3297 = vpow2.f32 %v2589_v29  ;;  %v2504_v35 = vsub.f32 %v4180_v2, %v2415_v18  ;;  %v2503_v19 = vsub.f32 %v4178_v60, %v2415_v18  ;;  %v2501_v2 = vsub.f32 %v4174_v51, %v2412_v24  ;;  %v2400_v43 = vpop.xlane.xlu1 %2399  ;;  %v4647_v29 = vld [vmem:[#allocation34_spill] sm:$0xff] }
 0x9bf   :  { %2687 = vmatprep.subr.mxu1 %v3278_v14  ;;  %2758 = vmatprep.subr.mxu0 %v3278_v14  ;;  %v3282_v49 = vpop.eup %3281  ;;  %3299 = vpow2.f32 %v2587_v11  ;;  %v2498_v51 = vsub.f32 %v4168_v50, %v2406_v3 }
 0x9c0   :  { %v3284_v54 = vpop.eup %3283  ;;  %3301 = vpow2.f32 %v2585_v36  ;;  %v2581_v8 = vmul.f32 1.442695, %v2504_v35  ;;  %v2579_v42 = vmul.f32 1.442695, %v2503_v19  ;;  %v2575_v15 = vmul.f32 1.442695, %v2501_v2 }
 0x9c1   :  { %v2409_v30 = vpop.xlane.xlu0 %2408  ;;  %3303 = vpow2.f32 %v2583_v46  ;;  %v2569_v62 = vmul.f32 1.442695, %v2498_v51  ;;  %v4650_v19 = vld [vmem:[#allocation8_spill] sm:$0xff] }
 0x9c2   :  { %2688 = vmatpush1.xpose.msra.mxu1 %v3280_v57  ;;  %2759 = vmatpush1.xpose.msra.mxu0 %v3280_v57  ;;  %3305 = vpow2.f32 %v2581_v8  ;;  %v2500_v60 = vsub.f32 %v4172_v17, %v2409_v30  ;;  %v2499_v9 = vsub.f32 %v4170_v33, %v2409_v30  ;;  %v2497_v17 = vsub.f32 %v4166_v32, %v2406_v3 }
 0x9c3   :  { %2689 = vmatprep.subr.mxu1 %v3282_v49  ;;  %2760 = vmatprep.subr.mxu0 %v3282_v49  ;;  %v3286_v44 = vpop.eup %3285  ;;  %3307 = vpow2.f32 %v2579_v42  ;;  %v2494_v32 = vsub.f32 %v4648_v56, %v2400_v43 }
 0x9c4   :  { %v3288_v58 = vpop.eup %3287  ;;  %3309 = vpow2.f32 %v2577_v21  ;;  %v2573_v12 = vmul.f32 1.442695, %v2500_v60  ;;  %v2571_v63 = vmul.f32 1.442695, %v2499_v9  ;;  %v2567_v50 = vmul.f32 1.442695, %v2497_v17 }
 0x9c5   :  { %v2403_v14 = vpop.xlane.xlu0 %2402  ;;  %3311 = vpow2.f32 %v2575_v15  ;;  %v2561_v46 = vmul.f32 1.442695, %v2494_v32 }
 0x9c6   :  { %2690 = vmatpush1.xpose.msra.mxu1 %v3284_v54  ;;  %2761 = vmatpush1.xpose.msra.mxu0 %v3284_v54  ;;  %3313 = vpow2.f32 %v2573_v12  ;;  %v2496_v33 = vsub.f32 %v4164_v37, %v2403_v14  ;;  %v2495_v49 = vsub.f32 %v4647_v29, %v2403_v14  ;;  %v4649_v37 = vld [vmem:[#allocation9_spill] sm:$0xff] }
 0x9c7   :  { %2691 = vmatprep.subr.mxu1 %v3286_v44  ;;  %2762 = vmatprep.subr.mxu0 %v3286_v44  ;;  %v3290_v55 = vpop.eup %3289  ;;  %3315 = vpow2.f32 %v2571_v63  ;;  %v2493_v35 = vsub.f32 %v4649_v37, %v2400_v43 }
 0x9c8   :  { %v3292_v53 = vpop.eup %3291  ;;  %3317 = vpow2.f32 %v2569_v62  ;;  %v2565_v11 = vmul.f32 1.442695, %v2496_v33  ;;  %v2563_v44 = vmul.f32 1.442695, %v2495_v49 }
 0x9c9   :  { %v3294_v41 = vpop.eup %3293  ;;  %v2397_v36 = vpop.xlane.xlu0 %2396  ;;  %3319 = vpow2.f32 %v2567_v50  ;;  %v2559_v8 = vmul.f32 1.442695, %v2493_v35 }
 0x9ca   :  { %2692 = vmatpush1.xpose.msra.mxu1 %v3288_v58  ;;  %2763 = vmatpush1.xpose.msra.mxu0 %v3288_v58  ;;  %v3296_v7 = vpop.eup %3295  ;;  %3321 = vpow2.f32 %v2565_v11  ;;  %v2492_v58 = vsub.f32 %v4650_v19, %v2397_v36 }
 0x9cb   :  { %2693 = vmatprep.subr.mxu1 %v3290_v55  ;;  %2764 = vmatprep.subr.mxu0 %v3290_v55  ;;  %v3298_v13 = vpop.eup %3297  ;;  %3323 = vpow2.f32 %v2563_v44  ;;  %v4651_v55 = vld [vmem:[#allocation4_spill] sm:$0xff] }
 0x9cc   :  { %v3300_v10 = vpop.eup %3299  ;;  %v2491_v30 = vsub.f32 %v4651_v55, %v2397_v36  ;;  %3325 = vpow2.f32 %v2561_v46  ;;  %v2557_v42 = vmul.f32 1.442695, %v2492_v58 }
 0x9cd   :  { %v3302_v57 = vpop.eup %3301  ;;  %3327 = vpow2.f32 %v2559_v8 }
 0x9ce   :  { %2694 = vmatpush1.xpose.msra.mxu1 %v3292_v53  ;;  %2765 = vmatpush1.xpose.msra.mxu0 %v3292_v53  ;;  %v3304_v18 = vpop.eup %3303  ;;  %v2555_v21 = vmul.f32 1.442695, %v2491_v30  ;;  %3329 = vpow2.f32 %v2557_v42 }
 0x9cf   :  { %2695 = vmatprep.subr.mxu1 %v3294_v41  ;;  %2766 = vmatprep.subr.mxu0 %v3294_v41  ;;  %v3306_v54 = vpop.eup %3305 }
 0x9d0   :  { %v3308_v24 = vpop.eup %3307  ;;  %3331 = vpow2.f32 %v2555_v21 }
 0x9d1   :  { %v3310_v5 = vpop.eup %3309 }
 0x9d2   :  { %2696 = vmatpush1.xpose.msra.mxu1 %v3296_v7  ;;  %2767 = vmatpush1.xpose.msra.mxu0 %v3296_v7  ;;  %v3312_v2 = vpop.eup %3311 }
 0x9d3   :  { %2697 = vmatprep.subr.mxu1 %v3298_v13  ;;  %2768 = vmatprep.subr.mxu0 %v3298_v13  ;;  %v3314_v53 = vpop.eup %3313 }
 0x9d4   :  { %v3316_v41 = vpop.eup %3315 }
 0x9d5   :  { %v3318_v15 = vpop.eup %3317 }
 0x9d6   :  { %2698 = vmatpush1.xpose.msra.mxu1 %v3300_v10  ;;  %2769 = vmatpush1.xpose.msra.mxu0 %v3300_v10  ;;  %v3320_v13 = vpop.eup %3319  ;;  %v4652_v10 = vld [vmem:[#allocation25_spill] sm:$0xff] }
 0x9d7   :  { %2699 = vmatprep.subr.mxu1 %v3302_v57  ;;  %2770 = vmatprep.subr.mxu0 %v3302_v57  ;;  %v3322_v63 = vpop.eup %3321 }
 0x9da   :  { %2700 = vmatpush1.xpose.msra.mxu1 %v3304_v18  ;;  %2771 = vmatpush1.xpose.msra.mxu0 %v3304_v18 }
 0x9db   :  { %2701 = vmatprep.subr.mxu1 %v3306_v54  ;;  %2772 = vmatprep.subr.mxu0 %v3306_v54 }
 0x9de   :  { %2702 = vmatpush1.xpose.msra.mxu1 %v3308_v24  ;;  %2773 = vmatpush1.xpose.msra.mxu0 %v3308_v24 }
 0x9df   :  { %2703 = vmatprep.subr.mxu1 %v3310_v5  ;;  %2774 = vmatprep.subr.mxu0 %v3310_v5 }
 0x9e1   :  { %v2487_v60 = vpop.xlane.xlu0 %2486 }
 0x9e2   :  { %2704 = vmatpush1.xpose.msra.mxu1 %v3312_v2  ;;  %2775 = vmatpush1.xpose.msra.mxu0 %v3312_v2  ;;  %v2552_v7 = vsub.f32 %v4308_v22, %v2487_v60  ;;  %v2551_v62 = vsub.f32 %v4652_v10, %v2487_v60 }
 0x9e3   :  { %2705 = vmatprep.subr.mxu1 %v3314_v53  ;;  %2776 = vmatprep.subr.mxu0 %v3314_v53 }
 0x9e4   :  { %v2677_v33 = vmul.f32 1.442695, %v2552_v7  ;;  %v2675_v50 = vmul.f32 1.442695, %v2551_v62  ;;  %v4654_v62 = vld [vmem:[#allocation16_spill] sm:$0xff] }
 0x9e5   :  { %v2490_v3 = vpop.xlane.xlu1 %2489 }
 0x9e6   :  { %2706 = vmatpush1.xpose.msra.mxu1 %v3316_v41  ;;  %2777 = vmatpush1.xpose.msra.mxu0 %v3316_v41  ;;  %v2553_v9 = vsub.f32 %v4312_v47, %v2490_v3  ;;  %v2554_v51 = vsub.f32 %v4314_v16, %v2490_v3  ;;  %v2481_v47 = vpop.xlane.xlu0 %2480  ;;  %v3324_v16 = vpop.eup %3323 }
 0x9e7   :  { %2707 = vmatprep.subr.mxu1 %v3318_v15  ;;  %2778 = vmatprep.subr.mxu0 %v3318_v15  ;;  %v3326_v43 = vpop.eup %3325  ;;  %v2548_v49 = vsub.f32 %v4300_v39, %v2481_v47  ;;  %v2547_v11 = vsub.f32 %v4298_v34, %v2481_v47  ;;  %v1933_v15 = vstv %s4499_s5 }
 0x9e8   :  { %v2679_v12 = vmul.f32 1.442695, %v2553_v9  ;;  %v2681_v14 = vmul.f32 1.442695, %v2554_v51 }
 0x9e9   :  { %v2484_v17 = vpop.xlane.xlu1 %2483  ;;  %v2669_v36 = vmul.f32 1.442695, %v2548_v49  ;;  %v2667_v44 = vmul.f32 1.442695, %v2547_v11 }
 0x9ea   :  { %2708 = vmatpush1.xpose.msra.mxu1 %v3320_v13  ;;  %2779 = vmatpush1.xpose.msra.mxu0 %v3320_v13  ;;  %v2550_v57 = vsub.f32 %v4304_v20, %v2484_v17  ;;  %3333 = vpow2.f32 %v2679_v12  ;;  %v2549_v29 = vsub.f32 %v4302_v61, %v2484_v17  ;;  %v3328_v20 = vpop.eup %3327  ;;  %v2475_v37 = vpop.xlane.xlu0 %2474 }
 0x9eb   :  { %2709 = vmatprep.subr.mxu1 %v3322_v63  ;;  %2780 = vmatprep.subr.mxu0 %v3322_v63  ;;  %3335 = vpow2.f32 %v2681_v14  ;;  %v3330_v32 = vpop.eup %3329  ;;  %v2544_v34 = vsub.f32 %v4292_v25, %v2475_v37  ;;  %v2543_v5 = vsub.f32 %v4290_v45, %v2475_v37  ;;  %v4653_v63 = vld [vmem:[#allocation17_spill] sm:$0xff] }
 0x9ec   :  { %3337 = vpow2.f32 %v2677_v33  ;;  %v2673_v18 = vmul.f32 1.442695, %v2550_v57  ;;  %v2671_v54 = vmul.f32 1.442695, %v2549_v29  ;;  %v3332_v39 = vpop.eup %3331 }
 0x9ed   :  { %v2478_v22 = vpop.xlane.xlu1 %2477  ;;  %3339 = vpow2.f32 %v2675_v50  ;;  %v2661_v55 = vmul.f32 1.442695, %v2544_v34  ;;  %v2659_v42 = vmul.f32 1.442695, %v2543_v5 }
 0x9ee   :  { %2710 = vmatpush1.xpose.msra.mxu1 %v3324_v16  ;;  %2781 = vmatpush1.xpose.msra.mxu0 %v3324_v16  ;;  %3341 = vpow2.f32 %v2673_v18  ;;  %v2546_v61 = vsub.f32 %v4296_v48, %v2478_v22  ;;  %v2545_v24 = vsub.f32 %v4294_v26, %v2478_v22  ;;  %v2469_v2 = vpop.xlane.xlu0 %2468 }
 0x9ef   :  { %2711 = vmatprep.subr.mxu1 %v3326_v43  ;;  %2782 = vmatprep.subr.mxu0 %v3326_v43  ;;  %3343 = vpow2.f32 %v2671_v54  ;;  %v2540_v21 = vsub.f32 %v4282_v28, %v2469_v2  ;;  %v2539_v41 = vsub.f32 %v4280_v1, %v2469_v2  ;;  %v3404_v1 = vld [vmem:[%s4494_s0] sm:$0xff] }
 0x9f0   :  { %3345 = vpow2.f32 %v2669_v36  ;;  %v2665_v46 = vmul.f32 1.442695, %v2546_v61  ;;  %v2663_v8 = vmul.f32 1.442695, %v2545_v24  ;;  %v1934_v13 = vmul.f32 %v3404_v1, %v1933_v15 }
 0x9f1   :  { %v2472_v56 = vpop.xlane.xlu1 %2471  ;;  %3347 = vpow2.f32 %v2667_v44  ;;  %v2653_v7 = vmul.f32 1.442695, %v2540_v21  ;;  %v2651_v14 = vmul.f32 1.442695, %v2539_v41 }
 0x9f2   :  { %2712 = vmatpush1.xpose.msra.mxu1 %v3328_v20  ;;  %2783 = vmatpush1.xpose.msra.mxu0 %v3328_v20  ;;  %3349 = vpow2.f32 %v2665_v46  ;;  %v2542_v30 = vsub.f32 %v4288_v38, %v2472_v56  ;;  %v2541_v53 = vsub.f32 %v4286_v52, %v2472_v56  ;;  %v2463_v12 = vpop.xlane.xlu0 %2462 }
 0x9f3   :  { %2713 = vmatprep.subr.mxu1 %v3330_v32  ;;  %2784 = vmatprep.subr.mxu0 %v3330_v32  ;;  %3351 = vpow2.f32 %v2663_v8  ;;  %v2536_v47 = vsub.f32 %v4270_v27, %v2463_v12  ;;  %v2535_v50 = vsub.f32 %v4268_v23, %v2463_v12 }
 0x9f4   :  { %3353 = vpow2.f32 %v2661_v55  ;;  %v2657_v60 = vmul.f32 1.442695, %v2542_v30  ;;  %v2655_v52 = vmul.f32 1.442695, %v2541_v53  ;;  %v4657_v53 = vld [vmem:[#allocation28_spill] sm:$0xff] }
 0x9f5   :  { %v4393_v35 = vpop.xlane.xlu1 %2465  ;;  %3355 = vpow2.f32 %v2659_v42  ;;  %v2645_v18 = vmul.f32 1.442695, %v2536_v47  ;;  %v2643_v11 = vmul.f32 1.442695, %v2535_v50 }
 0x9f6   :  { %2714 = vmatpush1.xpose.msra.mxu1 %v3332_v39  ;;  %2785 = vmatpush1.xpose.msra.mxu0 %v3332_v39  ;;  %3357 = vpow2.f32 %v2657_v60  ;;  %v2538_v28 = vsub.f32 %v4276_v6, %v4393_v35  ;;  %v2537_v6 = vsub.f32 %v4274_v0, %v4393_v35  ;;  %v2457_v56 = vpop.xlane.xlu0 %2456 }
 0x9f7   :  { %v3334_v19 = vpop.eup %3333  ;;  %3359 = vpow2.f32 %v2655_v52  ;;  %v2532_v39 = vsub.f32 %v4258_v40, %v2457_v56  ;;  %v2531_v34 = vsub.f32 %v4256_v31, %v2457_v56  ;;  %v4656_v31 = vld [vmem:[#allocation27_spill] sm:$0xff] }
 0x9f8   :  { %v3336_v48 = vpop.eup %3335  ;;  %3361 = vpow2.f32 %v2653_v7  ;;  %v2649_v16 = vmul.f32 1.442695, %v2538_v28  ;;  %v2647_v0 = vmul.f32 1.442695, %v2537_v6 }
 0x9f9   :  { %v4397_v58 = vpop.xlane.xlu1 %2459  ;;  %2715 = vmatprep.subr.mxu1 %v3336_v48  ;;  %2786 = vmatprep.subr.mxu0 %v3336_v48  ;;  %v3338_v26 = vpop.eup %3337  ;;  %3363 = vpow2.f32 %v2651_v14  ;;  %v4655_v48 = vld [vmem:[#allocation26_spill] sm:$0xff] }
 0x9fa   :  { %2716 = vmatpush2.xpose.msra.mxu1 %v3334_v19  ;;  %2787 = vmatpush2.xpose.msra.mxu0 %v3334_v19  ;;  %v3340_v45 = vpop.eup %3339  ;;  %3365 = vpow2.f32 %v2649_v16  ;;  %v2534_v20 = vsub.f32 %v4264_v4, %v4397_v58  ;;  %v2533_v54 = vsub.f32 %v4262_v59, %v4397_v58  ;;  %v2637_v58 = vmul.f32 1.442695, %v2532_v39  ;;  %v2451_v55 = vpop.xlane.xlu0 %2450 }
 0x9fb   :  { %2717 = vmatprep.subr.mxu1 %v3338_v26  ;;  %2788 = vmatprep.subr.mxu0 %v3338_v26  ;;  %v3342_v38 = vpop.eup %3341  ;;  %3367 = vpow2.f32 %v2647_v0  ;;  %v2635_v26 = vmul.f32 1.442695, %v2531_v34  ;;  %v4666_v39 = vmov 1.0  }
 0x9fc   :  { %v3344_v9 = vpop.eup %3343  ;;  %3369 = vpow2.f32 %v2645_v18  ;;  %v2641_v35 = vmul.f32 1.442695, %v2534_v20  ;;  %v2639_v46 = vmul.f32 1.442695, %v2533_v54  ;;  %v4663_v54 = vld [vmem:[#allocation14_spill] sm:$0xff] }
 0x9fd   :  { %v4401_v25 = vpop.xlane.xlu1 %2453  ;;  %v3346_v51 = vpop.eup %3345  ;;  %3371 = vpow2.f32 %v2643_v11 }
 0x9fe   :  { %2718 = vmatpush2.xpose.msra.mxu1 %v3340_v45  ;;  %2789 = vmatpush2.xpose.msra.mxu0 %v3340_v45  ;;  %v3348_v57 = vpop.eup %3347  ;;  %3373 = vpow2.f32 %v2641_v35  ;;  %v2530_v40 = vsub.f32 %v4655_v48, %v4401_v25  ;;  %v2529_v2 = vsub.f32 %v4656_v31, %v4401_v25  ;;  %v2528_v45 = vsub.f32 %v4657_v53, %v2451_v55  ;;  %v4659_v25 = vld [vmem:[#allocation30_spill] sm:$0xff]  ;;  %v2445_v12 = vpop.xlane.xlu0 %2444 }
 0x9ff   :  { %2719 = vmatprep.subr.mxu1 %v3342_v38  ;;  %2790 = vmatprep.subr.mxu0 %v3342_v38  ;;  %v3350_v22 = vpop.eup %3349  ;;  %3375 = vpow2.f32 %v2639_v46  ;;  %v4658_v38 = vld [vmem:[#allocation29_spill] sm:$0xff]  ;;  %v4667_v35 = vmov 0.0  }
 0xa00   :  { %v3352_v49 = vpop.eup %3351  ;;  %3377 = vpow2.f32 %v2637_v58  ;;  %v2633_v21 = vmul.f32 1.442695, %v2530_v40  ;;  %v2527_v41 = vsub.f32 %v4658_v38, %v2451_v55  ;;  %v2631_v52 = vmul.f32 1.442695, %v2529_v2  ;;  %v3405_v55 = vld [vmem:[%s4498_s3] sm:$0xf] }
 0xa01   :  { %v4406_v3 = vpop.xlane.xlu1 %2447  ;;  %v3354_v27 = vpop.eup %3353  ;;  %3379 = vpow2.f32 %v2635_v26  ;;  %v2629_v7 = vmul.f32 1.442695, %v2528_v45  ;;  %v3094_v26 = vld [vmem:[%s4494_s0 + $0x8] sm:$0xff] }
 0xa02   :  { %2720 = vmatpush2.xpose.msra.mxu1 %v3344_v9  ;;  %2791 = vmatpush2.xpose.msra.mxu0 %v3344_v9  ;;  %v3356_v37 = vpop.eup %3355  ;;  %3381 = vpow2.f32 %v2633_v21  ;;  %v2526_v28 = vsub.f32 %v4659_v25, %v4406_v3  ;;  %v2627_v1 = vmul.f32 1.442695, %v2527_v41  ;;  %v2911_v53 = vmul.f32 %v3094_v26, %v1933_v15 }
 0xa03   :  { %2721 = vmatprep.subr.mxu1 %v3346_v51  ;;  %2792 = vmatprep.subr.mxu0 %v3346_v51  ;;  %v3358_v24 = vpop.eup %3357  ;;  %3383 = vpow2.f32 %v2631_v52 }
 0xa04   :  { %v3360_v19 = vpop.eup %3359  ;;  %3385 = vpow2.f32 %v2629_v7 }
 0xa05   :  { %v4420_v17 = vpop.permute.xlu1 %1855  ;;  %v3362_v8 = vpop.eup %3361  ;;  %3387 = vpow2.f32 %v2627_v1 }
 0xa06   :  { %v1928_v10 = vadd.f32 %v4653_v63, %v4420_v17  ;;  %v1930_v33 = vadd.f32 %v4654_v62, %v4420_v17  ;;  %2722 = vmatpush2.xpose.msra.mxu1 %v3348_v57  ;;  %2793 = vmatpush2.xpose.msra.mxu0 %v3348_v57  ;;  %v3364_v42 = vpop.eup %3363  ;;  %v4661_v63 = vld [vmem:[#allocation32_spill] sm:$0xff]  ;;  %v2625_v62 = vmul.f32 1.442695, %v2526_v28  ;;  %v4662_v57 = vld [vmem:[#allocation33_spill] sm:$0xff] }
 0xa07   :  { %2723 = vmatprep.subr.mxu1 %v3350_v22  ;;  %2794 = vmatprep.subr.mxu0 %v3350_v22  ;;  %v3366_v60 = vpop.eup %3365  ;;  %v2523_v47 = vsub.f32 %v4662_v57, %v2445_v12 }
 0xa08   :  { %v1937_v43 = vcombine.low %v1928_v10, %v1930_v33  ;;  %v3368_v9 = vpop.eup %3367  ;;  %v2524_v10 = vsub.f32 %v4661_v63, %v2445_v12  ;;  %3389 = vpow2.f32 %v2625_v62 }
 0xa09   :  { %v3370_v51 = vpop.eup %3369 }
 0xa0a   :  { %v4430_v29 = vadd.f32 %v1937_v43, %v1934_v13  ;;  %2724 = vmatpush2.xpose.msra.mxu1 %v3352_v49  ;;  %2795 = vmatpush2.xpose.msra.mxu0 %v3352_v49  ;;  %v4660_v13 = vld [vmem:[#allocation31_spill] sm:$0xff]  ;;  %v3372_v6 = vpop.eup %3371  ;;  %v2621_v43 = vmul.f32 1.442695, %v2524_v10 }
 0xa0b   :  { %2725 = vmatprep.subr.mxu1 %v3354_v27  ;;  %2796 = vmatprep.subr.mxu0 %v3354_v27  ;;  %v2525_v14 = vsub.f32 %v4660_v13, %v4406_v3  ;;  %v3374_v33 = vpop.eup %3373  ;;  %v2619_v3 = vmul.f32 1.442695, %v2523_v47  ;;  %v3415_v47 = vmov 6  }
 0xa0c   :  { %v1942_v32 = vcombine.high %v4430_v29, %v4430_v29  ;;  %v1950_v23 = vmul.f32 %v4430_v29, %v4430_v29  ;;  %v1944_v4 = vsel %vm43_vm0, %v4430_v29, 0.0  ;;  %v3376_v22 = vpop.eup %3375  ;;  %3119 = vset.pattern.permute.xlu1 %v3415_v47 }
 0xa0d   :  { %v2623_v16 = vmul.f32 1.442695, %v2525_v14  ;;  %v3378_v50 = vpop.eup %3377 }
 0xa0e   :  { %v1945_v36 = vsel %vm43_vm0, %v1942_v32, 0.0  ;;  %v1952_v61 = vcombine.high %v1950_v23, %v1950_v23  ;;  %2726 = vmatpush2.xpose.msra.mxu1 %v3356_v37  ;;  %2797 = vmatpush2.xpose.msra.mxu0 %v3356_v37  ;;  %v1954_v5 = vsel %vm43_vm0, %v1950_v23, 0.0  ;;  %v3380_v0 = vpop.eup %3379 }
 0xa0f   :  { %v1946_v44 = vadd.f32 %v1945_v36, %v1944_v4  ;;  %2727 = vmatprep.subr.mxu1 %v3358_v24  ;;  %2798 = vmatprep.subr.mxu0 %v3358_v24  ;;  %3391 = vpow2.f32 %v2623_v16  ;;  %v3382_v49 = vpop.eup %3381  ;;  %v4664_v4 = vld [vmem:[#allocation21_spill] sm:$0xff] }
 0xa10   :  { %v1955_v59 = vsel %vm43_vm0, %v1952_v61, 0.0  ;;  %3393 = vpow2.f32 %v2621_v43  ;;  %v3384_v18 = vpop.eup %3383  ;;  %v1970_v36 = vmul.f32 %v4664_v4, %v4663_v54  ;;  %v4665_v61 = vld [vmem:[#allocation20_spill] sm:$0xff] }
 0xa11   :  { %1947 = vadd.xlane.f32.xlu0 %v1946_v44  ;;  %v1956_v30 = vadd.f32 %v1955_v59, %v1954_v5  ;;  %3395 = vpow2.f32 %v2619_v3  ;;  %v3386_v20 = vpop.eup %3385 }
 0xa12   :  { %2728 = vmatpush2.xpose.msra.mxu1 %v3360_v19  ;;  %2799 = vmatpush2.xpose.msra.mxu0 %v3360_v19  ;;  %v3388_v27 = vpop.eup %3387  ;;  %v1976_v37 = vadd.f32 %v1970_v36, %v4665_v61  ;;  %v4668_v19 = vld [vmem:[#allocation18_spill] sm:$0xff] }
 0xa13   :  { %2729 = vmatprep.subr.mxu1 %v3362_v8  ;;  %2800 = vmatprep.subr.mxu0 %v3362_v8 }
 0xa15   :  { %1957 = vadd.xlane.f32.xlu0 %v1956_v30  ;;  %v3390_v56 = vpop.eup %3389 }
 0xa16   :  { %2730 = vmatpush2.xpose.msra.mxu1 %v3364_v42  ;;  %2801 = vmatpush2.xpose.msra.mxu0 %v3364_v42 }
 0xa17   :  { %2731 = vmatprep.subr.mxu1 %v3366_v60  ;;  %2802 = vmatprep.subr.mxu0 %v3366_v60 }
 0xa1a   :  { %2732 = vmatpush2.xpose.msra.mxu1 %v3368_v9  ;;  %2803 = vmatpush2.xpose.msra.mxu0 %v3368_v9 }
 0xa1b   :  { %2733 = vmatprep.subr.mxu1 %v3370_v51  ;;  %2804 = vmatprep.subr.mxu0 %v3370_v51  ;;  %v3414_v51 = vmov 5  }
 0xa1c   :  { %v3392_v32 = vpop.eup %3391  ;;  %3118 = vset.pattern.permute.xlu0 %v3414_v51 }
 0xa1d   :  { %v3394_v23 = vpop.eup %3393 }
 0xa1e   :  { %2734 = vmatpush2.xpose.msra.mxu1 %v3372_v6  ;;  %2805 = vmatpush2.xpose.msra.mxu0 %v3372_v6  ;;  %v3396_v11 = vpop.eup %3395 }
 0xa1f   :  { %2735 = vmatprep.subr.mxu1 %v3374_v33  ;;  %2806 = vmatprep.subr.mxu0 %v3374_v33 }
 0xa22   :  { %2736 = vmatpush2.xpose.msra.mxu1 %v3376_v22  ;;  %2807 = vmatpush2.xpose.msra.mxu0 %v3376_v22  ;;  %v4669_v22 = vld [vmem:[#allocation24_spill] sm:$0xff] }
 0xa23   :  { %2737 = vmatprep.subr.mxu1 %v3378_v50  ;;  %2808 = vmatprep.subr.mxu0 %v3378_v50 }
 0xa26   :  { %2738 = vmatpush2.xpose.msra.mxu1 %v3380_v0  ;;  %2809 = vmatpush2.xpose.msra.mxu0 %v3380_v0 }
 0xa27   :  { %2739 = vmatprep.subr.mxu1 %v3382_v49  ;;  %2810 = vmatprep.subr.mxu0 %v3382_v49  ;;  %v3416_v49 = vmov 839922192  }
 0xa2a   :  { %2740 = vmatpush2.xpose.msra.mxu1 %v3384_v18  ;;  %2811 = vmatpush2.xpose.msra.mxu0 %v3384_v18  ;;  %v2957_v18 = vunpack.c.l.s4 %v3416_v49 }
 0xa2b   :  { %2741 = vmatprep.subr.mxu1 %v3386_v20  ;;  %2812 = vmatprep.subr.mxu0 %v3386_v20 }
 0xa2c   :  { %v2958_v20 = vunpack.c.0.s8 %v2957_v18 }
 0xa2e   :  { %2742 = vmatpush2.xpose.msra.mxu1 %v3388_v27  ;;  %2813 = vmatpush2.xpose.msra.mxu0 %v3388_v27  ;;  %v4670_v27 = vld [vmem:[#allocation19_spill] sm:$0xff] }
 0xa2f   :  { %2743 = vmatprep.subr.mxu1 %v3390_v56  ;;  %2814 = vmatprep.subr.mxu0 %v3390_v56  ;;  %v2961_v56 = vsub.s32 %v2958_v20, %v4670_v27 }
 0xa32   :  { %2744 = vmatpush2.xpose.msra.mxu1 %v3392_v32  ;;  %2815 = vmatpush2.xpose.msra.mxu0 %v3392_v32 }
 0xa33   :  { %2745 = vmatprep.subr.mxu1 %v3394_v23  ;;  %2816 = vmatprep.subr.mxu0 %v3394_v23 }
 0xa36   :  { %2746 = vmatpush2.xpose.msra.mxu1 %v3396_v11  ;;  %2817 = vmatpush2.xpose.msra.mxu0 %v3396_v11 }
 0xa39   :  { %2748 = vmatmul.mubr.f32.vlgmr.msra.gmra.mxu1 %v4666_v39  ;;  %2819 = vmatmul.mubr.f32.vlgmr.msra.gmra.mxu0 %v1976_v37 }
 0xa3a   :  { %2903 = vmatprep.mubr.f32.mxu1 %v4667_v35 }
 0xa9a   :  { %v1948_v15 = vpop.xlane.xlu0 %1947 }
 0xa9e   :  { %v1958_v12 = vpop.xlane.xlu0 %1957 }
 0xaf9   :  { %v2749_v44 = vpop.f32.mrf.mxu1  ;;  %v2820_v34 = vpop.f32.mrf.mxu0 }
 0xafa   :  { %3397 = vrcp.f32 %v2749_v44 }
 0xafb   :  { %v2751_v24 = vpop.f32.mrf.mxu1  ;;  %v2822_v40 = vpop.f32.mrf.mxu0 }
 0xafc   :  { %3399 = vrcp.f32 %v2751_v24 }
 0xb07   :  { %v3398_v59 = vpop.eup %3397 }
 0xb08   :  { %v2832_v58 = vrot.slane %v3398_v59, %v4668_v19 }
 0xb09   :  { %v3400_v46 = vpop.eup %3399 }
 0xb0a   :  { %v2836_v48 = vrot.slane %v3400_v46, %v4668_v19  ;;  %v2837_v8 = vmul.f32 %v2832_v58, %v2820_v34 }
 0xb0c   :  { %v2838_v5 = vmul.f32 %v2836_v48, %v2822_v40 }
 0xb0e   :  { %2869 = vmatprep.subr.mxu1 %v2838_v5 }
 0xb0f   :  { %2870 = vmatpush1.msra.mxu1 %v2837_v8 }
 0xb10   :  { %3093 = vmatmul.mubr.msk.f32.vlgmr.msra.gmra.mxu1 %vm134_vm2, %v3405_v55 }
 0xbd0   :  { %v2905_v30 = vpop.f32.mrf.mxu1 }
 0xbd1   :  { %v2906_v2 = vadd.f32 %v2905_v30, %v4420_v17 }
 0xbd2   :  { %v2907_v31 = vpop.f32.mrf.mxu1 }
 0xbd3   :  { %v2908_v42 = vadd.f32 %v2907_v31, %v4420_v17 }
 0xbd5   :  { %v2914_v45 = vcombine.low %v2906_v2, %v2908_v42 }
 0xbd7   :  { %v2916_v21 = vadd.f32 %v2914_v45, %v2911_v53 }
 0xbd9   :  { %v2920_v60 = vcombine.high %v2916_v21, %v2916_v21  ;;  %v2928_v38 = vmul.f32 %v2916_v21, %v2916_v21  ;;  %v2922_v41 = vsel %vm43_vm0, %v2916_v21, 0.0 }
 0xbdb   :  { %v2923_v52 = vsel %vm43_vm0, %v2920_v60, 0.0  ;;  %v2930_v9 = vcombine.high %v2928_v38, %v2928_v38  ;;  %v2932_v17 = vsel %vm43_vm0, %v2928_v38, 0.0 }
 0xbdc   :  { %v2924_v7 = vadd.f32 %v2923_v52, %v2922_v41 }
 0xbdd   :  { %v2933_v25 = vsel %vm43_vm0, %v2930_v9, 0.0 }
 0xbde   :  { %2925 = vadd.xlane.f32.xlu0 %v2924_v7  ;;  %v2934_v28 = vadd.f32 %v2933_v25, %v2932_v17 }
 0xbe2   :  { %2935 = vadd.xlane.f32.xlu0 %v2934_v28 }
 0xc67   :  { %v2926_v1 = vpop.xlane.xlu0 %2925 }
 0xc68   :  { %v2927_v13 = vadd.f32 %v2926_v1, %v1948_v15 }
 0xc6a   :  { %v2938_v14 = vmul.f32 0.001953125, %v2927_v13 }
 0xc6b   :  { %v2936_v6 = vpop.xlane.xlu0 %2935 }
 0xc6c   :  { %v2937_v63 = vadd.f32 %v2936_v6, %v1958_v12  ;;  %v2940_v10 = vmul.f32 %v2938_v14, %v2938_v14 }
 0xc6e   :  { %v2939_v62 = vmul.f32 0.001953125, %v2937_v63 }
 0xc70   :  { %v2941_v33 = vsub.f32 %v2939_v62, %v2940_v10 }
 0xc72   :  { %v2942_v57 = vadd.f32 1e-05, %v2941_v33 }
 0xc74   :  { %3401 = vrsqrt.f32 %v2942_v57 }
 0xc81   :  { %v3402_v16 = vpop.eup %3401 }
 0xc82   :  { %v2944_v43 = vmul.f32 %v3402_v16, %v4669_v22 }
 0xc84   :  { %2954 = vperm.xlu0 %3118, %v2944_v43   ;;  %v2945_v50 = vmul.f32 %v2944_v43, %v2938_v14 }
 0xc86   :  { %2947 = vrot.lane.b32.xlu1 %v2945_v50, %s3410_s2 }
 0xc88   :  { %3120 = vset.pattern.permute.xlu0 %v3415_v47 }
 0xcf8   :  { %v2948_v3 = vpop.permute.xlu1 %2947 }
 0xcf9   :  { %v2950_v0 = vsub.f32 %v4669_v22, %v2948_v3 }
 0xcfb   :  { %2967 = vperm.xlu1 %3119, %v2950_v0  }
 0xcff   :  { %v2955_v32 = vpop.permute.xlu0 %2954 }
 0xd00   :  { %v2962_v23 = vrot.slane %v2955_v32, %v2961_v56 }
 0xd02   :  { %v2964_v54 = vmul.f32 %v2962_v23, %v4430_v29  ;;  %v2980_v4 = vmul.f32 %v2962_v23, %v2916_v21 }
 0xd76   :  { %v2968_v11 = vpop.permute.xlu1 %2967 }
 0xd77   :  { %v2975_v36 = vrot.slane %v2968_v11, %v2961_v56 }
 0xd79   :  { %v2977_v61 = vadd.f32 %v2975_v36, %v2964_v54  ;;  %v2981_v37 = vadd.f32 %v2980_v4, %v2975_v36 }
 0xd7b   :  { %2978 = vst [vmem:[%s4500_s6] sm:$0xff] %v2977_v61  ;;  %3097 = vst [vmem:[%s4500_s6 + $0x8] sm:$0xff] %v2981_v37 }

</bundles_post_ra>
